<compile_context>
chip_gen: v7x
topology: tpu7x:2x2x1
jax: 0.10.0
libtpu: 0.0.40
codegen_flags: <defaults>
</compile_context>

<pallas_src>
import math
import functools

import jax
import jax.numpy as jnp
from jax import lax
from jax.experimental import pallas as pl
from jax.experimental.pallas import tpu as pltpu

# ---------------- config (small, consistent with the module) ----------------
CONFIG = dict(patch_size=32, emb_size=32, Data_shape=[2, 3, 256], num_labels=4)
N_FFT = 128
N_FREQ = N_FFT // 2 + 1          # 65 (onesided)
HEADS = 8
DEPTH = 4
FF_MULT = 4
LN_EPS = 1e-5


# ---------------- fused forward kernel (whole batch in one grid step) ----------------
def biot_fused_kernel(frames_ref, basis_ref, wp_ref, bias_ref, hm_ref,
                      seg_bl_ref, seg_lb_ref, seg_b3_ref,
                      ln1g_ref, ln1b_ref, wq_ref, wk_ref, wv_ref, wo_ref, bo_ref,
                      ln2g_ref, ln2b_ref, w1_ref, b1_ref, w2_ref, b2_ref,
                      wc_ref, bc_ref, out_ref, *, depth, batch, seq_len):
    D = wp_ref.shape[1]

    ones_d = jnp.ones((D, 1), jnp.float32)
    inv_d = 1.0 / D

    def layer_norm(x, g, b):
        # Mean / variance via MXU matmuls with ones(D,1) (MXU is idle; keeps XLU off the chain).
        mu = jnp.dot(x, ones_d, preferred_element_type=jnp.float32) * inv_d
        xm = x - mu
        var = jnp.dot(xm * xm, ones_d, preferred_element_type=jnp.float32) * inv_d
        return xm * lax.rsqrt(var + LN_EPS) * g + b

    # ---- |STFT| -> patch embedding -> + (bp + channel token + positional encoding) ----
    f = frames_ref[...]                                                        # (R, 128), R = B*L
    spec = jnp.dot(f, basis_ref[...], preferred_element_type=jnp.float32)      # (R, 256)
    real = spec[:, :N_FFT]                                                     # 128-lane aligned slices
    imag = spec[:, N_FFT:]
    mag = jnp.sqrt(real * real + imag * imag)                                  # (R, 128); cols >= 65 are 0
    x = jnp.dot(mag, wp_ref[...], preferred_element_type=jnp.float32) + bias_ref[...]

    hm = hm_ref[...]                                                           # (D, D) head block mask
    seg_bl = seg_bl_ref[...]                                                   # (B, R) batch-segment mask
    seg_lb = seg_lb_ref[...]                                                   # (R, B) its transpose

    for d in range(depth):
        # ---------------- pre-LN global linear attention (lucidrains defaults) ----------------
        xn = layer_norm(x, ln1g_ref[d], ln1b_ref[d])
        q = jnp.dot(xn, wq_ref[d], preferred_element_type=jnp.float32)
        k = jnp.dot(xn, wk_ref[d], preferred_element_type=jnp.float32)
        v = jnp.dot(xn, wv_ref[d], preferred_element_type=jnp.float32)

        # softmax(q) within each head (groups of dim_head lanes).  Subtracting the row-global max
        # is per-group shift-invariant, so the group softmax is exact and overflow-safe.
        eq = jnp.exp(q - jnp.max(q, axis=-1, keepdims=True))
        qsum = jnp.dot(eq, hm, preferred_element_type=jnp.float32)             # per-head group sums
        qs = eq * pl.reciprocal(qsum, approx=True)

        # softmax(k) over the sequence dim, independently per batch element.  Global (all-rows)
        # max subtraction is valid (per-column shift invariance); the per-batch denominators and
        # their row-broadcast come from two tiny segment matmuls on the MXU.
        ek = jnp.exp(k - jnp.max(k, axis=0, keepdims=True))
        denom = jnp.dot(seg_bl, ek, preferred_element_type=jnp.float32)        # (B, D)
        inv_rows = jnp.dot(seg_lb, pl.reciprocal(denom, approx=True),
                           preferred_element_type=jnp.float32)                 # (R, D)
        ks = ek * inv_rows

        # Per-batch, per-head contexts.  head_mask keeps the block-diagonal head structure; the
        # dim_head**-0.5 post-softmax scale is folded into wo on the host.
        attn = jnp.zeros_like(q)
        for b in range(batch):
            mb = seg_b3_ref[b]                                                 # (R, 1) batch-row mask
            ctx = lax.dot_general(ks * mb, v, (((0,), (0,)), ((), ())),
                                  preferred_element_type=jnp.float32)          # (D, D)
            attn = attn + mb * jnp.dot(qs, ctx * hm,
                                       preferred_element_type=jnp.float32)
        x = x + jnp.dot(attn, wo_ref[d], preferred_element_type=jnp.float32) + bo_ref[d]

        # ---------------- pre-LN feedforward ----------------
        yn = layer_norm(x, ln2g_ref[d], ln2b_ref[d])
        h = jnp.dot(yn, w1_ref[d], preferred_element_type=jnp.float32) + b1_ref[d]
        # TODO(synk): torch nn.GELU default is the exact erf form; tanh form (perf review item)
        # deviates by ~1e-3 but is a shorter transcendental sequence on the serial critical path.
        h = jax.nn.gelu(h, approximate=True)
        x = x + jnp.dot(h, w2_ref[d], preferred_element_type=jnp.float32) + b2_ref[d]

    # ---------------- per-batch mean pool (segment matmul) -> ELU -> classifier ----------------
    pooled = jnp.dot(seg_bl, x, preferred_element_type=jnp.float32) * (1.0 / seq_len)   # (B, D)
    a = jnp.where(pooled > 0, pooled, jnp.exp(jnp.minimum(pooled, 0.0)) - 1.0)
    out_ref[...] = jnp.dot(a, wc_ref[...], preferred_element_type=jnp.float32) + bc_ref[...]


def _const_spec(a):
    zeros = (0,) * a.ndim
    return pl.BlockSpec(a.shape, lambda b, _z=zeros: _z)


def biot_forward_fused(kernel_args, B, seq_len, num_labels):
    kern = functools.partial(biot_fused_kernel, depth=DEPTH, batch=B, seq_len=seq_len)
    in_specs = [_const_spec(a) for a in kernel_args]
    # Single grid step: everything (weights ~250 KB + a few KB of activations) is VMEM-resident,
    # far under scoped limits on every generation; no vmem_limit_bytes / block tuning needed.
    out = pl.pallas_call(
        kern,
        out_shape=jax.ShapeDtypeStruct((B, num_labels), jnp.float32),
        grid=(1,),
        in_specs=in_specs,
        out_specs=pl.BlockSpec((B, num_labels), lambda b: (0, 0)),
        compiler_params=pltpu.CompilerParams(dimension_semantics=("arbitrary",)),
    )(*kernel_args)
    return out


# ---------------- glue: parameter init, positional encoding, framing ----------------
def make_positional_encoding(T, D):
    position = jnp.arange(T, dtype=jnp.float32)[:, None]
    div_term = jnp.exp(jnp.arange(0, D, 2, dtype=jnp.float32) * (-math.log(10000.0) / D))
    pe = jnp.zeros((T, D), dtype=jnp.float32)
    pe = pe.at[:, 0::2].set(jnp.sin(position * div_term))
    pe = pe.at[:, 1::2].set(jnp.cos(position * div_term))
    return pe


def init_params(key):
    D = CONFIG['emb_size']
    C = CONFIG['Data_shape'][1]
    NL = CONFIG['num_labels']
    Hff = FF_MULT * D
    keys = iter(jax.random.split(key, 64))

    def lin(fan_in, shape):
        return jax.random.uniform(next(keys), shape, jnp.float32, -1.0, 1.0) / math.sqrt(fan_in)

    p = {}
    # Real/imag DFT bases (rect window, onesided), zero-padded 65 -> 128 cols, concatenated so that
    # real/imag are 128-lane-aligned slices of one (128, 256) basis.
    n = jnp.arange(N_FFT, dtype=jnp.float32)[:, None]
    f = jnp.arange(N_FREQ, dtype=jnp.float32)[None, :]
    ang = 2.0 * math.pi * n * f / N_FFT
    cos_pad = jnp.zeros((N_FFT, N_FFT), jnp.float32).at[:, :N_FREQ].set(jnp.cos(ang))
    sin_pad = jnp.zeros((N_FFT, N_FFT), jnp.float32).at[:, :N_FREQ].set(jnp.sin(ang))
    p['dft_basis'] = jnp.concatenate([cos_pad, sin_pad], axis=1)               # (128, 256)
    # Patch embedding Linear(65 -> D), rows padded 65 -> 128 to match the padded magnitudes.
    wp = lin(N_FREQ, (N_FREQ, D))
    p['wp_pad'] = jnp.zeros((N_FFT, D), jnp.float32).at[:N_FREQ, :].set(wp)
    p['bp'] = lin(N_FREQ, (1, D))
    # Channel token embedding (nn.Embedding default ~ N(0,1)).
    p['tok'] = jax.random.normal(next(keys), (C, D), jnp.float32)
    # Transformer layers, stacked along a leading DEPTH axis.  q/k/v kept as separate weights
    # (three lane-aligned matmuls instead of one fused (D,3D) projection that needs lane slicing).
    p['ln1_g'] = jnp.ones((DEPTH, 1, D), jnp.float32)
    p['ln1_b'] = jnp.zeros((DEPTH, 1, D), jnp.float32)
    p['wq'] = jnp.stack([lin(D, (D, D)) for _ in range(DEPTH)])                # no bias
    p['wk'] = jnp.stack([lin(D, (D, D)) for _ in range(DEPTH)])
    p['wv'] = jnp.stack([lin(D, (D, D)) for _ in range(DEPTH)])
    p['wo'] = jnp.stack([lin(D, (D, D)) for _ in range(DEPTH)])
    p['bo'] = jnp.stack([lin(D, (1, D)) for _ in range(DEPTH)])
    p['ln2_g'] = jnp.ones((DEPTH, 1, D), jnp.float32)
    p['ln2_b'] = jnp.zeros((DEPTH, 1, D), jnp.float32)
    p['w1'] = jnp.stack([lin(D, (D, Hff)) for _ in range(DEPTH)])
    p['b1'] = jnp.stack([lin(D, (1, Hff)) for _ in range(DEPTH)])
    p['w2'] = jnp.stack([lin(Hff, (Hff, D)) for _ in range(DEPTH)])
    p['b2'] = jnp.stack([lin(Hff, (1, D)) for _ in range(DEPTH)])
    # Classifier Linear(D -> num_labels).
    p['wc'] = lin(D, (D, NL))
    p['bc'] = lin(D, (1, NL))
    return p


def biot_pretrain_forward(params, x):
    """x: (batch, channels, time_samples) float32 -> logits (batch, num_labels)."""
    B, C, TS = x.shape
    hop = CONFIG['patch_size']
    D = CONFIG['emb_size']
    NL = CONFIG['num_labels']
    T = 1 + (TS - N_FFT) // hop                       # STFT frames (center=False)
    L = C * T                                         # token sequence length per batch element
    R = B * L                                         # total token rows in the kernel
    dh = D // HEADS

    # Frame extraction (layout plumbing): (B, C, T, 128) -> (B*L, 128), batch-major, channel-major.
    idx = (jnp.arange(T) * hop)[:, None] + jnp.arange(N_FFT)[None, :]
    frames = x[:, :, idx].reshape(R, N_FFT)

    # Per-token additive bias: channel token + positional encoding + patch-embedding bias (folded),
    # tiled over batch so it matches the row-stacked token layout.
    pe = make_positional_encoding(T, D)                                        # (T, D)
    bias_ld = jnp.repeat(params['tok'], T, axis=0) + jnp.tile(pe, (C, 1)) + params['bp']
    bias = jnp.tile(bias_ld, (B, 1))                                           # (R, D)

    # Head block mask (block-of-ones over dim_head lanes); dh**-0.5 post-softmax scale folded into wo.
    hr = jnp.arange(D) // dh
    head_mask = (hr[:, None] == hr[None, :]).astype(jnp.float32)               # (D, D)
    wo_scaled = params['wo'] * (dh ** -0.5)

    # Batch-segment masks for per-batch sequence reductions / attention contexts.
    seg = jnp.arange(R) // L
    seg_bl = (seg[None, :] == jnp.arange(B)[:, None]).astype(jnp.float32)      # (B, R)
    seg_lb = seg_bl.T                                                          # (R, B)
    seg_b3 = seg_bl[:, :, None]                                                # (B, R, 1)

    # TODO(synk): dropout layers (pos-enc 0.1, attn 0.2) are identity here (eval semantics);
    # the perturb=True random time-subsampling path and the `prediction` MLP belong to
    # pretrain_forward and are not used by forward().
    args = (frames, params['dft_basis'], params['wp_pad'], bias, head_mask,
            seg_bl, seg_lb, seg_b3,
            params['ln1_g'], params['ln1_b'],
            params['wq'], params['wk'], params['wv'], wo_scaled, params['bo'],
            params['ln2_g'], params['ln2_b'],
            params['w1'], params['b1'], params['w2'], params['b2'],
            params['wc'], params['bc'])
    return biot_forward_fused(args, B, L, NL)


if __name__ == "__main__":
    B, C, TS = CONFIG['Data_shape']
    x = jax.random.normal(jax.random.PRNGKey(0), (B, C, TS), dtype=jnp.float32)
    params = init_params(jax.random.PRNGKey(1))

    out = jax.jit(biot_pretrain_forward)(params, x)
    out = jax.block_until_ready(out)

    assert out.shape == (B, CONFIG['num_labels'])
    assert bool(jnp.all(jnp.isfinite(out)))
    print("KERNEL_OK")
</pallas_src>

<mosaic_0001>
module attributes {stable_mosaic.version = 11 : i64} {
  func.func @biot_fused_kernel(%arg0: i32, %arg1: memref<30x128xf32, #tpu.memory_space<vmem>>, %arg2: memref<128x256xf32, #tpu.memory_space<vmem>>, %arg3: memref<128x32xf32, #tpu.memory_space<vmem>>, %arg4: memref<30x32xf32, #tpu.memory_space<vmem>>, %arg5: memref<32x32xf32, #tpu.memory_space<vmem>>, %arg6: memref<2x30xf32, #tpu.memory_space<vmem>>, %arg7: memref<30x2xf32, #tpu.memory_space<vmem>>, %arg8: memref<2x30x1xf32, #tpu.memory_space<vmem>>, %arg9: memref<4x1x32xf32, #tpu.memory_space<vmem>>, %arg10: memref<4x1x32xf32, #tpu.memory_space<vmem>>, %arg11: memref<4x32x32xf32, #tpu.memory_space<vmem>>, %arg12: memref<4x32x32xf32, #tpu.memory_space<vmem>>, %arg13: memref<4x32x32xf32, #tpu.memory_space<vmem>>, %arg14: memref<4x32x32xf32, #tpu.memory_space<vmem>>, %arg15: memref<4x1x32xf32, #tpu.memory_space<vmem>>, %arg16: memref<4x1x32xf32, #tpu.memory_space<vmem>>, %arg17: memref<4x1x32xf32, #tpu.memory_space<vmem>>, %arg18: memref<4x32x128xf32, #tpu.memory_space<vmem>>, %arg19: memref<4x1x128xf32, #tpu.memory_space<vmem>>, %arg20: memref<4x128x32xf32, #tpu.memory_space<vmem>>, %arg21: memref<4x1x32xf32, #tpu.memory_space<vmem>>, %arg22: memref<32x4xf32, #tpu.memory_space<vmem>>, %arg23: memref<1x4xf32, #tpu.memory_space<vmem>>, %arg24: memref<2x4xf32, #tpu.memory_space<vmem>>) attributes {dimension_semantics = [#tpu.dimension_semantics<arbitrary>], iteration_bounds = array<i64: 1>, scalar_prefetch = 0 : i64, scratch_operands = 0 : i64, tpu.core_type = #tpu.core_type<tc>, window_params = [{pipeline_mode = #tpu.pipeline_mode<synchronous>, transform_indices = @transform_0, window_bounds = array<i64: 30, 128>}, {pipeline_mode = #tpu.pipeline_mode<synchronous>, transform_indices = @transform_1, window_bounds = array<i64: 128, 256>}, {pipeline_mode = #tpu.pipeline_mode<synchronous>, transform_indices = @transform_2, window_bounds = array<i64: 128, 32>}, {pipeline_mode = #tpu.pipeline_mode<synchronous>, transform_indices = @transform_3, window_bounds = array<i64: 30, 32>}, {pipeline_mode = #tpu.pipeline_mode<synchronous>, transform_indices = @transform_4, window_bounds = array<i64: 32, 32>}, {pipeline_mode = #tpu.pipeline_mode<synchronous>, transform_indices = @transform_5, window_bounds = array<i64: 2, 30>}, {pipeline_mode = #tpu.pipeline_mode<synchronous>, transform_indices = @transform_6, window_bounds = array<i64: 30, 2>}, {pipeline_mode = #tpu.pipeline_mode<synchronous>, transform_indices = @transform_7, window_bounds = array<i64: 2, 30, 1>}, {pipeline_mode = #tpu.pipeline_mode<synchronous>, transform_indices = @transform_8, window_bounds = array<i64: 4, 1, 32>}, {pipeline_mode = #tpu.pipeline_mode<synchronous>, transform_indices = @transform_9, window_bounds = array<i64: 4, 1, 32>}, {pipeline_mode = #tpu.pipeline_mode<synchronous>, transform_indices = @transform_10, window_bounds = array<i64: 4, 32, 32>}, {pipeline_mode = #tpu.pipeline_mode<synchronous>, transform_indices = @transform_11, window_bounds = array<i64: 4, 32, 32>}, {pipeline_mode = #tpu.pipeline_mode<synchronous>, transform_indices = @transform_12, window_bounds = array<i64: 4, 32, 32>}, {pipeline_mode = #tpu.pipeline_mode<synchronous>, transform_indices = @transform_13, window_bounds = array<i64: 4, 32, 32>}, {pipeline_mode = #tpu.pipeline_mode<synchronous>, transform_indices = @transform_14, window_bounds = array<i64: 4, 1, 32>}, {pipeline_mode = #tpu.pipeline_mode<synchronous>, transform_indices = @transform_15, window_bounds = array<i64: 4, 1, 32>}, {pipeline_mode = #tpu.pipeline_mode<synchronous>, transform_indices = @transform_16, window_bounds = array<i64: 4, 1, 32>}, {pipeline_mode = #tpu.pipeline_mode<synchronous>, transform_indices = @transform_17, window_bounds = array<i64: 4, 32, 128>}, {pipeline_mode = #tpu.pipeline_mode<synchronous>, transform_indices = @transform_18, window_bounds = array<i64: 4, 1, 128>}, {pipeline_mode = #tpu.pipeline_mode<synchronous>, transform_indices = @transform_19, window_bounds = array<i64: 4, 128, 32>}, {pipeline_mode = #tpu.pipeline_mode<synchronous>, transform_indices = @transform_20, window_bounds = array<i64: 4, 1, 32>}, {pipeline_mode = #tpu.pipeline_mode<synchronous>, transform_indices = @transform_21, window_bounds = array<i64: 32, 4>}, {pipeline_mode = #tpu.pipeline_mode<synchronous>, transform_indices = @transform_22, window_bounds = array<i64: 1, 4>}, {pipeline_mode = #tpu.pipeline_mode<synchronous>, transform_indices = @transform_23, window_bounds = array<i64: 2, 4>}]} {
    %cst = arith.constant 1.000000e+00 : f32
    %0 = vector.broadcast %cst : f32 to vector<32x1xf32>
    %c0 = arith.constant 0 : index
    %c0_0 = arith.constant 0 : index
    %1 = vector.load %arg1[%c0, %c0_0] : memref<30x128xf32, #tpu.memory_space<vmem>>, vector<30x128xf32>
    %c0_1 = arith.constant 0 : index
    %c0_2 = arith.constant 0 : index
    %2 = vector.load %arg2[%c0_1, %c0_2] : memref<128x256xf32, #tpu.memory_space<vmem>>, vector<128x256xf32>
    %cst_3 = arith.constant dense<0.000000e+00> : vector<30x256xf32>
    %3 = tpu.matmul %1, %2, %cst_3 {dimension_numbers = #tpu.dot_dimension_numbers<[1], [0], [0], [1], [0, 0, 1, 1], [], []>} : vector<30x128xf32>, vector<128x256xf32>, vector<30x256xf32> -> vector<30x256xf32>
    %4 = vector.extract_strided_slice %3 {offsets = [0, 0], sizes = [30, 128], strides = [1, 1]} : vector<30x256xf32> to vector<30x128xf32>
    %5 = vector.extract_strided_slice %3 {offsets = [0, 128], sizes = [30, 128], strides = [1, 1]} : vector<30x256xf32> to vector<30x128xf32>
    %6 = arith.mulf %4, %4 : vector<30x128xf32>
    %7 = arith.mulf %5, %5 : vector<30x128xf32>
    %8 = arith.addf %6, %7 : vector<30x128xf32>
    %9 = math.sqrt %8 : vector<30x128xf32>
    %c0_4 = arith.constant 0 : index
    %c0_5 = arith.constant 0 : index
    %10 = vector.load %arg3[%c0_4, %c0_5] : memref<128x32xf32, #tpu.memory_space<vmem>>, vector<128x32xf32>
    %cst_6 = arith.constant dense<0.000000e+00> : vector<30x32xf32>
    %11 = tpu.matmul %9, %10, %cst_6 {dimension_numbers = #tpu.dot_dimension_numbers<[1], [0], [0], [1], [0, 0, 1, 1], [], []>} : vector<30x128xf32>, vector<128x32xf32>, vector<30x32xf32> -> vector<30x32xf32>
    %c0_7 = arith.constant 0 : index
    %c0_8 = arith.constant 0 : index
    %12 = vector.load %arg4[%c0_7, %c0_8] : memref<30x32xf32, #tpu.memory_space<vmem>>, vector<30x32xf32>
    %13 = arith.addf %11, %12 : vector<30x32xf32>
    %c0_9 = arith.constant 0 : index
    %c0_10 = arith.constant 0 : index
    %14 = vector.load %arg5[%c0_9, %c0_10] : memref<32x32xf32, #tpu.memory_space<vmem>>, vector<32x32xf32>
    %c0_11 = arith.constant 0 : index
    %c0_12 = arith.constant 0 : index
    %15 = vector.load %arg6[%c0_11, %c0_12] : memref<2x30xf32, #tpu.memory_space<vmem>>, vector<2x30xf32>
    %c0_13 = arith.constant 0 : index
    %c0_14 = arith.constant 0 : index
    %16 = vector.load %arg7[%c0_13, %c0_14] : memref<30x2xf32, #tpu.memory_space<vmem>>, vector<30x2xf32>
    %c0_15 = arith.constant 0 : index
    %c0_16 = arith.constant 0 : index
    %c0_17 = arith.constant 0 : index
    %17 = vector.load %arg9[%c0_15, %c0_16, %c0_17] : memref<4x1x32xf32, #tpu.memory_space<vmem>>, vector<1x1x32xf32>
    %18 = vector.shape_cast %17 : vector<1x1x32xf32> to vector<1x32xf32>
    %c0_18 = arith.constant 0 : index
    %c0_19 = arith.constant 0 : index
    %c0_20 = arith.constant 0 : index
    %19 = vector.load %arg10[%c0_18, %c0_19, %c0_20] : memref<4x1x32xf32, #tpu.memory_space<vmem>>, vector<1x1x32xf32>
    %20 = vector.shape_cast %19 : vector<1x1x32xf32> to vector<1x32xf32>
    %cst_21 = arith.constant dense<0.000000e+00> : vector<30x1xf32>
    %21 = tpu.matmul %13, %0, %cst_21 {dimension_numbers = #tpu.dot_dimension_numbers<[1], [0], [0], [1], [0, 0, 1, 1], [], []>} : vector<30x32xf32>, vector<32x1xf32>, vector<30x1xf32> -> vector<30x1xf32>
    %cst_22 = arith.constant 3.125000e-02 : f32
    %22 = vector.broadcast %cst_22 : f32 to vector<30x1xf32>
    %23 = arith.mulf %21, %22 : vector<30x1xf32>
    %24 = vector.broadcast %23 : vector<30x1xf32> to vector<30x32xf32>
    %25 = arith.subf %13, %24 : vector<30x32xf32>
    %26 = arith.mulf %25, %25 : vector<30x32xf32>
    %cst_23 = arith.constant dense<0.000000e+00> : vector<30x1xf32>
    %27 = tpu.matmul %26, %0, %cst_23 {dimension_numbers = #tpu.dot_dimension_numbers<[1], [0], [0], [1], [0, 0, 1, 1], [], []>} : vector<30x32xf32>, vector<32x1xf32>, vector<30x1xf32> -> vector<30x1xf32>
    %cst_24 = arith.constant 3.125000e-02 : f32
    %28 = vector.broadcast %cst_24 : f32 to vector<30x1xf32>
    %29 = arith.mulf %27, %28 : vector<30x1xf32>
    %cst_25 = arith.constant 9.99999974E-6 : f32
    %30 = vector.broadcast %cst_25 : f32 to vector<30x1xf32>
    %31 = arith.addf %29, %30 : vector<30x1xf32>
    %32 = math.rsqrt %31 : vector<30x1xf32>
    %33 = vector.broadcast %32 : vector<30x1xf32> to vector<30x32xf32>
    %34 = arith.mulf %25, %33 : vector<30x32xf32>
    %35 = vector.broadcast %18 : vector<1x32xf32> to vector<30x32xf32>
    %36 = arith.mulf %34, %35 : vector<30x32xf32>
    %37 = vector.broadcast %20 : vector<1x32xf32> to vector<30x32xf32>
    %38 = arith.addf %36, %37 : vector<30x32xf32>
    %c0_26 = arith.constant 0 : index
    %c0_27 = arith.constant 0 : index
    %c0_28 = arith.constant 0 : index
    %39 = vector.load %arg11[%c0_26, %c0_27, %c0_28] : memref<4x32x32xf32, #tpu.memory_space<vmem>>, vector<1x32x32xf32>
    %40 = vector.shape_cast %39 : vector<1x32x32xf32> to vector<32x32xf32>
    %cst_29 = arith.constant dense<0.000000e+00> : vector<30x32xf32>
    %41 = tpu.matmul %38, %40, %cst_29 {dimension_numbers = #tpu.dot_dimension_numbers<[1], [0], [0], [1], [0, 0, 1, 1], [], []>} : vector<30x32xf32>, vector<32x32xf32>, vector<30x32xf32> -> vector<30x32xf32>
    %c0_30 = arith.constant 0 : index
    %c0_31 = arith.constant 0 : index
    %c0_32 = arith.constant 0 : index
    %42 = vector.load %arg12[%c0_30, %c0_31, %c0_32] : memref<4x32x32xf32, #tpu.memory_space<vmem>>, vector<1x32x32xf32>
    %43 = vector.shape_cast %42 : vector<1x32x32xf32> to vector<32x32xf32>
    %cst_33 = arith.constant dense<0.000000e+00> : vector<30x32xf32>
    %44 = tpu.matmul %38, %43, %cst_33 {dimension_numbers = #tpu.dot_dimension_numbers<[1], [0], [0], [1], [0, 0, 1, 1], [], []>} : vector<30x32xf32>, vector<32x32xf32>, vector<30x32xf32> -> vector<30x32xf32>
    %c0_34 = arith.constant 0 : index
    %c0_35 = arith.constant 0 : index
    %c0_36 = arith.constant 0 : index
    %45 = vector.load %arg13[%c0_34, %c0_35, %c0_36] : memref<4x32x32xf32, #tpu.memory_space<vmem>>, vector<1x32x32xf32>
    %46 = vector.shape_cast %45 : vector<1x32x32xf32> to vector<32x32xf32>
    %cst_37 = arith.constant dense<0.000000e+00> : vector<30x32xf32>
    %47 = tpu.matmul %38, %46, %cst_37 {dimension_numbers = #tpu.dot_dimension_numbers<[1], [0], [0], [1], [0, 0, 1, 1], [], []>} : vector<30x32xf32>, vector<32x32xf32>, vector<30x32xf32> -> vector<30x32xf32>
    %cst_38 = arith.constant dense<0xFF800000> : vector<30xf32>
    %48 = vector.multi_reduction <maximumf>, %41, %cst_38 [1] : vector<30x32xf32> to vector<30xf32>
    %49 = vector.shape_cast %48 : vector<30xf32> to vector<30x1xf32>
    %50 = vector.broadcast %49 : vector<30x1xf32> to vector<30x32xf32>
    %51 = arith.subf %41, %50 : vector<30x32xf32>
    %52 = math.exp %51 : vector<30x32xf32>
    %cst_39 = arith.constant dense<0.000000e+00> : vector<30x32xf32>
    %53 = tpu.matmul %52, %14, %cst_39 {dimension_numbers = #tpu.dot_dimension_numbers<[1], [0], [0], [1], [0, 0, 1, 1], [], []>} : vector<30x32xf32>, vector<32x32xf32>, vector<30x32xf32> -> vector<30x32xf32>
    %54 = tpu.reciprocal %53 {approx = true} : vector<30x32xf32> -> vector<30x32xf32>
    %55 = arith.mulf %52, %54 : vector<30x32xf32>
    %cst_40 = arith.constant dense<0xFF800000> : vector<32xf32>
    %56 = vector.multi_reduction <maximumf>, %44, %cst_40 [0] : vector<30x32xf32> to vector<32xf32>
    %57 = vector.shape_cast %56 : vector<32xf32> to vector<1x32xf32>
    %58 = vector.broadcast %57 : vector<1x32xf32> to vector<30x32xf32>
    %59 = arith.subf %44, %58 : vector<30x32xf32>
    %60 = math.exp %59 : vector<30x32xf32>
    %cst_41 = arith.constant dense<0.000000e+00> : vector<2x32xf32>
    %61 = tpu.matmul %15, %60, %cst_41 {dimension_numbers = #tpu.dot_dimension_numbers<[1], [0], [0], [1], [0, 0, 1, 1], [], []>} : vector<2x30xf32>, vector<30x32xf32>, vector<2x32xf32> -> vector<2x32xf32>
    %62 = tpu.reciprocal %61 {approx = true} : vector<2x32xf32> -> vector<2x32xf32>
    %cst_42 = arith.constant dense<0.000000e+00> : vector<30x32xf32>
    %63 = tpu.matmul %16, %62, %cst_42 {dimension_numbers = #tpu.dot_dimension_numbers<[1], [0], [0], [1], [0, 0, 1, 1], [], []>} : vector<30x2xf32>, vector<2x32xf32>, vector<30x32xf32> -> vector<30x32xf32>
    %64 = arith.mulf %60, %63 : vector<30x32xf32>
    %cst_43 = arith.constant 0.000000e+00 : f32
    %65 = vector.broadcast %cst_43 : f32 to vector<30x32xf32>
    %c0_44 = arith.constant 0 : index
    %c0_45 = arith.constant 0 : index
    %c0_46 = arith.constant 0 : index
    %66 = vector.load %arg8[%c0_44, %c0_45, %c0_46] : memref<2x30x1xf32, #tpu.memory_space<vmem>>, vector<1x30x1xf32>
    %67 = vector.shape_cast %66 : vector<1x30x1xf32> to vector<30x1xf32>
    %68 = vector.broadcast %67 : vector<30x1xf32> to vector<30x32xf32>
    %69 = arith.mulf %64, %68 : vector<30x32xf32>
    %cst_47 = arith.constant dense<0.000000e+00> : vector<32x32xf32>
    %70 = tpu.matmul %69, %47, %cst_47 {dimension_numbers = #tpu.dot_dimension_numbers<[0], [0], [1], [1], [0, 1, 1, 1], [], []>} : vector<30x32xf32>, vector<30x32xf32>, vector<32x32xf32> -> vector<32x32xf32>
    %71 = arith.mulf %70, %14 : vector<32x32xf32>
    %cst_48 = arith.constant dense<0.000000e+00> : vector<30x32xf32>
    %72 = tpu.matmul %55, %71, %cst_48 {dimension_numbers = #tpu.dot_dimension_numbers<[1], [0], [0], [1], [0, 0, 1, 1], [], []>} : vector<30x32xf32>, vector<32x32xf32>, vector<30x32xf32> -> vector<30x32xf32>
    %73 = vector.broadcast %67 : vector<30x1xf32> to vector<30x32xf32>
    %74 = arith.mulf %73, %72 : vector<30x32xf32>
    %75 = arith.addf %65, %74 : vector<30x32xf32>
    %c1 = arith.constant 1 : index
    %c0_49 = arith.constant 0 : index
    %c0_50 = arith.constant 0 : index
    %76 = vector.load %arg8[%c1, %c0_49, %c0_50] : memref<2x30x1xf32, #tpu.memory_space<vmem>>, vector<1x30x1xf32>
    %77 = vector.shape_cast %76 : vector<1x30x1xf32> to vector<30x1xf32>
    %78 = vector.broadcast %77 : vector<30x1xf32> to vector<30x32xf32>
    %79 = arith.mulf %64, %78 : vector<30x32xf32>
    %cst_51 = arith.constant dense<0.000000e+00> : vector<32x32xf32>
    %80 = tpu.matmul %79, %47, %cst_51 {dimension_numbers = #tpu.dot_dimension_numbers<[0], [0], [1], [1], [0, 1, 1, 1], [], []>} : vector<30x32xf32>, vector<30x32xf32>, vector<32x32xf32> -> vector<32x32xf32>
    %81 = arith.mulf %80, %14 : vector<32x32xf32>
    %cst_52 = arith.constant dense<0.000000e+00> : vector<30x32xf32>
    %82 = tpu.matmul %55, %81, %cst_52 {dimension_numbers = #tpu.dot_dimension_numbers<[1], [0], [0], [1], [0, 0, 1, 1], [], []>} : vector<30x32xf32>, vector<32x32xf32>, vector<30x32xf32> -> vector<30x32xf32>
    %83 = vector.broadcast %77 : vector<30x1xf32> to vector<30x32xf32>
    %84 = arith.mulf %83, %82 : vector<30x32xf32>
    %85 = arith.addf %75, %84 : vector<30x32xf32>
    %c0_53 = arith.constant 0 : index
    %c0_54 = arith.constant 0 : index
    %c0_55 = arith.constant 0 : index
    %86 = vector.load %arg14[%c0_53, %c0_54, %c0_55] : memref<4x32x32xf32, #tpu.memory_space<vmem>>, vector<1x32x32xf32>
    %87 = vector.shape_cast %86 : vector<1x32x32xf32> to vector<32x32xf32>
    %cst_56 = arith.constant dense<0.000000e+00> : vector<30x32xf32>
    %88 = tpu.matmul %85, %87, %cst_56 {dimension_numbers = #tpu.dot_dimension_numbers<[1], [0], [0], [1], [0, 0, 1, 1], [], []>} : vector<30x32xf32>, vector<32x32xf32>, vector<30x32xf32> -> vector<30x32xf32>
    %89 = arith.addf %13, %88 : vector<30x32xf32>
    %c0_57 = arith.constant 0 : index
    %c0_58 = arith.constant 0 : index
    %c0_59 = arith.constant 0 : index
    %90 = vector.load %arg15[%c0_57, %c0_58, %c0_59] : memref<4x1x32xf32, #tpu.memory_space<vmem>>, vector<1x1x32xf32>
    %91 = vector.shape_cast %90 : vector<1x1x32xf32> to vector<1x32xf32>
    %92 = vector.broadcast %91 : vector<1x32xf32> to vector<30x32xf32>
    %93 = arith.addf %89, %92 : vector<30x32xf32>
    %c0_60 = arith.constant 0 : index
    %c0_61 = arith.constant 0 : index
    %c0_62 = arith.constant 0 : index
    %94 = vector.load %arg16[%c0_60, %c0_61, %c0_62] : memref<4x1x32xf32, #tpu.memory_space<vmem>>, vector<1x1x32xf32>
    %95 = vector.shape_cast %94 : vector<1x1x32xf32> to vector<1x32xf32>
    %c0_63 = arith.constant 0 : index
    %c0_64 = arith.constant 0 : index
    %c0_65 = arith.constant 0 : index
    %96 = vector.load %arg17[%c0_63, %c0_64, %c0_65] : memref<4x1x32xf32, #tpu.memory_space<vmem>>, vector<1x1x32xf32>
    %97 = vector.shape_cast %96 : vector<1x1x32xf32> to vector<1x32xf32>
    %cst_66 = arith.constant dense<0.000000e+00> : vector<30x1xf32>
    %98 = tpu.matmul %93, %0, %cst_66 {dimension_numbers = #tpu.dot_dimension_numbers<[1], [0], [0], [1], [0, 0, 1, 1], [], []>} : vector<30x32xf32>, vector<32x1xf32>, vector<30x1xf32> -> vector<30x1xf32>
    %cst_67 = arith.constant 3.125000e-02 : f32
    %99 = vector.broadcast %cst_67 : f32 to vector<30x1xf32>
    %100 = arith.mulf %98, %99 : vector<30x1xf32>
    %101 = vector.broadcast %100 : vector<30x1xf32> to vector<30x32xf32>
    %102 = arith.subf %93, %101 : vector<30x32xf32>
    %103 = arith.mulf %102, %102 : vector<30x32xf32>
    %cst_68 = arith.constant dense<0.000000e+00> : vector<30x1xf32>
    %104 = tpu.matmul %103, %0, %cst_68 {dimension_numbers = #tpu.dot_dimension_numbers<[1], [0], [0], [1], [0, 0, 1, 1], [], []>} : vector<30x32xf32>, vector<32x1xf32>, vector<30x1xf32> -> vector<30x1xf32>
    %cst_69 = arith.constant 3.125000e-02 : f32
    %105 = vector.broadcast %cst_69 : f32 to vector<30x1xf32>
    %106 = arith.mulf %104, %105 : vector<30x1xf32>
    %cst_70 = arith.constant 9.99999974E-6 : f32
    %107 = vector.broadcast %cst_70 : f32 to vector<30x1xf32>
    %108 = arith.addf %106, %107 : vector<30x1xf32>
    %109 = math.rsqrt %108 : vector<30x1xf32>
    %110 = vector.broadcast %109 : vector<30x1xf32> to vector<30x32xf32>
    %111 = arith.mulf %102, %110 : vector<30x32xf32>
    %112 = vector.broadcast %95 : vector<1x32xf32> to vector<30x32xf32>
    %113 = arith.mulf %111, %112 : vector<30x32xf32>
    %114 = vector.broadcast %97 : vector<1x32xf32> to vector<30x32xf32>
    %115 = arith.addf %113, %114 : vector<30x32xf32>
    %c0_71 = arith.constant 0 : index
    %c0_72 = arith.constant 0 : index
    %c0_73 = arith.constant 0 : index
    %116 = vector.load %arg18[%c0_71, %c0_72, %c0_73] : memref<4x32x128xf32, #tpu.memory_space<vmem>>, vector<1x32x128xf32>
    %117 = vector.shape_cast %116 : vector<1x32x128xf32> to vector<32x128xf32>
    %cst_74 = arith.constant dense<0.000000e+00> : vector<30x128xf32>
    %118 = tpu.matmul %115, %117, %cst_74 {dimension_numbers = #tpu.dot_dimension_numbers<[1], [0], [0], [1], [0, 0, 1, 1], [], []>} : vector<30x32xf32>, vector<32x128xf32>, vector<30x128xf32> -> vector<30x128xf32>
    %c0_75 = arith.constant 0 : index
    %c0_76 = arith.constant 0 : index
    %c0_77 = arith.constant 0 : index
    %119 = vector.load %arg19[%c0_75, %c0_76, %c0_77] : memref<4x1x128xf32, #tpu.memory_space<vmem>>, vector<1x1x128xf32>
    %120 = vector.shape_cast %119 : vector<1x1x128xf32> to vector<1x128xf32>
    %121 = vector.broadcast %120 : vector<1x128xf32> to vector<30x128xf32>
    %122 = arith.addf %118, %121 : vector<30x128xf32>
    %123 = arith.mulf %122, %122 : vector<30x128xf32>
    %124 = arith.mulf %122, %123 : vector<30x128xf32>
    %cst_78 = arith.constant 4.471500e-02 : f32
    %125 = vector.broadcast %cst_78 : f32 to vector<30x128xf32>
    %126 = arith.mulf %125, %124 : vector<30x128xf32>
    %127 = arith.addf %122, %126 : vector<30x128xf32>
    %cst_79 = arith.constant 0.797884583 : f32
    %128 = vector.broadcast %cst_79 : f32 to vector<30x128xf32>
    %129 = arith.mulf %128, %127 : vector<30x128xf32>
    %130 = math.tanh %129 : vector<30x128xf32>
    %cst_80 = arith.constant 1.000000e+00 : f32
    %131 = vector.broadcast %cst_80 : f32 to vector<30x128xf32>
    %132 = arith.addf %131, %130 : vector<30x128xf32>
    %cst_81 = arith.constant 5.000000e-01 : f32
    %133 = vector.broadcast %cst_81 : f32 to vector<30x128xf32>
    %134 = arith.mulf %133, %132 : vector<30x128xf32>
    %135 = arith.mulf %122, %134 : vector<30x128xf32>
    %c0_82 = arith.constant 0 : index
    %c0_83 = arith.constant 0 : index
    %c0_84 = arith.constant 0 : index
    %136 = vector.load %arg20[%c0_82, %c0_83, %c0_84] : memref<4x128x32xf32, #tpu.memory_space<vmem>>, vector<1x128x32xf32>
    %137 = vector.shape_cast %136 : vector<1x128x32xf32> to vector<128x32xf32>
    %cst_85 = arith.constant dense<0.000000e+00> : vector<30x32xf32>
    %138 = tpu.matmul %135, %137, %cst_85 {dimension_numbers = #tpu.dot_dimension_numbers<[1], [0], [0], [1], [0, 0, 1, 1], [], []>} : vector<30x128xf32>, vector<128x32xf32>, vector<30x32xf32> -> vector<30x32xf32>
    %139 = arith.addf %93, %138 : vector<30x32xf32>
    %c0_86 = arith.constant 0 : index
    %c0_87 = arith.constant 0 : index
    %c0_88 = arith.constant 0 : index
    %140 = vector.load %arg21[%c0_86, %c0_87, %c0_88] : memref<4x1x32xf32, #tpu.memory_space<vmem>>, vector<1x1x32xf32>
    %141 = vector.shape_cast %140 : vector<1x1x32xf32> to vector<1x32xf32>
    %142 = vector.broadcast %141 : vector<1x32xf32> to vector<30x32xf32>
    %143 = arith.addf %139, %142 : vector<30x32xf32>
    %c1_89 = arith.constant 1 : index
    %c0_90 = arith.constant 0 : index
    %c0_91 = arith.constant 0 : index
    %144 = vector.load %arg9[%c1_89, %c0_90, %c0_91] : memref<4x1x32xf32, #tpu.memory_space<vmem>>, vector<1x1x32xf32>
    %145 = vector.shape_cast %144 : vector<1x1x32xf32> to vector<1x32xf32>
    %c1_92 = arith.constant 1 : index
    %c0_93 = arith.constant 0 : index
    %c0_94 = arith.constant 0 : index
    %146 = vector.load %arg10[%c1_92, %c0_93, %c0_94] : memref<4x1x32xf32, #tpu.memory_space<vmem>>, vector<1x1x32xf32>
    %147 = vector.shape_cast %146 : vector<1x1x32xf32> to vector<1x32xf32>
    %cst_95 = arith.constant dense<0.000000e+00> : vector<30x1xf32>
    %148 = tpu.matmul %143, %0, %cst_95 {dimension_numbers = #tpu.dot_dimension_numbers<[1], [0], [0], [1], [0, 0, 1, 1], [], []>} : vector<30x32xf32>, vector<32x1xf32>, vector<30x1xf32> -> vector<30x1xf32>
    %cst_96 = arith.constant 3.125000e-02 : f32
    %149 = vector.broadcast %cst_96 : f32 to vector<30x1xf32>
    %150 = arith.mulf %148, %149 : vector<30x1xf32>
    %151 = vector.broadcast %150 : vector<30x1xf32> to vector<30x32xf32>
    %152 = arith.subf %143, %151 : vector<30x32xf32>
    %153 = arith.mulf %152, %152 : vector<30x32xf32>
    %cst_97 = arith.constant dense<0.000000e+00> : vector<30x1xf32>
    %154 = tpu.matmul %153, %0, %cst_97 {dimension_numbers = #tpu.dot_dimension_numbers<[1], [0], [0], [1], [0, 0, 1, 1], [], []>} : vector<30x32xf32>, vector<32x1xf32>, vector<30x1xf32> -> vector<30x1xf32>
    %cst_98 = arith.constant 3.125000e-02 : f32
    %155 = vector.broadcast %cst_98 : f32 to vector<30x1xf32>
    %156 = arith.mulf %154, %155 : vector<30x1xf32>
    %cst_99 = arith.constant 9.99999974E-6 : f32
    %157 = vector.broadcast %cst_99 : f32 to vector<30x1xf32>
    %158 = arith.addf %156, %157 : vector<30x1xf32>
    %159 = math.rsqrt %158 : vector<30x1xf32>
    %160 = vector.broadcast %159 : vector<30x1xf32> to vector<30x32xf32>
    %161 = arith.mulf %152, %160 : vector<30x32xf32>
    %162 = vector.broadcast %145 : vector<1x32xf32> to vector<30x32xf32>
    %163 = arith.mulf %161, %162 : vector<30x32xf32>
    %164 = vector.broadcast %147 : vector<1x32xf32> to vector<30x32xf32>
    %165 = arith.addf %163, %164 : vector<30x32xf32>
    %c1_100 = arith.constant 1 : index
    %c0_101 = arith.constant 0 : index
    %c0_102 = arith.constant 0 : index
    %166 = vector.load %arg11[%c1_100, %c0_101, %c0_102] : memref<4x32x32xf32, #tpu.memory_space<vmem>>, vector<1x32x32xf32>
    %167 = vector.shape_cast %166 : vector<1x32x32xf32> to vector<32x32xf32>
    %cst_103 = arith.constant dense<0.000000e+00> : vector<30x32xf32>
    %168 = tpu.matmul %165, %167, %cst_103 {dimension_numbers = #tpu.dot_dimension_numbers<[1], [0], [0], [1], [0, 0, 1, 1], [], []>} : vector<30x32xf32>, vector<32x32xf32>, vector<30x32xf32> -> vector<30x32xf32>
    %c1_104 = arith.constant 1 : index
    %c0_105 = arith.constant 0 : index
    %c0_106 = arith.constant 0 : index
    %169 = vector.load %arg12[%c1_104, %c0_105, %c0_106] : memref<4x32x32xf32, #tpu.memory_space<vmem>>, vector<1x32x32xf32>
    %170 = vector.shape_cast %169 : vector<1x32x32xf32> to vector<32x32xf32>
    %cst_107 = arith.constant dense<0.000000e+00> : vector<30x32xf32>
    %171 = tpu.matmul %165, %170, %cst_107 {dimension_numbers = #tpu.dot_dimension_numbers<[1], [0], [0], [1], [0, 0, 1, 1], [], []>} : vector<30x32xf32>, vector<32x32xf32>, vector<30x32xf32> -> vector<30x32xf32>
    %c1_108 = arith.constant 1 : index
    %c0_109 = arith.constant 0 : index
    %c0_110 = arith.constant 0 : index
    %172 = vector.load %arg13[%c1_108, %c0_109, %c0_110] : memref<4x32x32xf32, #tpu.memory_space<vmem>>, vector<1x32x32xf32>
    %173 = vector.shape_cast %172 : vector<1x32x32xf32> to vector<32x32xf32>
    %cst_111 = arith.constant dense<0.000000e+00> : vector<30x32xf32>
    %174 = tpu.matmul %165, %173, %cst_111 {dimension_numbers = #tpu.dot_dimension_numbers<[1], [0], [0], [1], [0, 0, 1, 1], [], []>} : vector<30x32xf32>, vector<32x32xf32>, vector<30x32xf32> -> vector<30x32xf32>
    %cst_112 = arith.constant dense<0xFF800000> : vector<30xf32>
    %175 = vector.multi_reduction <maximumf>, %168, %cst_112 [1] : vector<30x32xf32> to vector<30xf32>
    %176 = vector.shape_cast %175 : vector<30xf32> to vector<30x1xf32>
    %177 = vector.broadcast %176 : vector<30x1xf32> to vector<30x32xf32>
    %178 = arith.subf %168, %177 : vector<30x32xf32>
    %179 = math.exp %178 : vector<30x32xf32>
    %cst_113 = arith.constant dense<0.000000e+00> : vector<30x32xf32>
    %180 = tpu.matmul %179, %14, %cst_113 {dimension_numbers = #tpu.dot_dimension_numbers<[1], [0], [0], [1], [0, 0, 1, 1], [], []>} : vector<30x32xf32>, vector<32x32xf32>, vector<30x32xf32> -> vector<30x32xf32>
    %181 = tpu.reciprocal %180 {approx = true} : vector<30x32xf32> -> vector<30x32xf32>
    %182 = arith.mulf %179, %181 : vector<30x32xf32>
    %cst_114 = arith.constant dense<0xFF800000> : vector<32xf32>
    %183 = vector.multi_reduction <maximumf>, %171, %cst_114 [0] : vector<30x32xf32> to vector<32xf32>
    %184 = vector.shape_cast %183 : vector<32xf32> to vector<1x32xf32>
    %185 = vector.broadcast %184 : vector<1x32xf32> to vector<30x32xf32>
    %186 = arith.subf %171, %185 : vector<30x32xf32>
    %187 = math.exp %186 : vector<30x32xf32>
    %cst_115 = arith.constant dense<0.000000e+00> : vector<2x32xf32>
    %188 = tpu.matmul %15, %187, %cst_115 {dimension_numbers = #tpu.dot_dimension_numbers<[1], [0], [0], [1], [0, 0, 1, 1], [], []>} : vector<2x30xf32>, vector<30x32xf32>, vector<2x32xf32> -> vector<2x32xf32>
    %189 = tpu.reciprocal %188 {approx = true} : vector<2x32xf32> -> vector<2x32xf32>
    %cst_116 = arith.constant dense<0.000000e+00> : vector<30x32xf32>
    %190 = tpu.matmul %16, %189, %cst_116 {dimension_numbers = #tpu.dot_dimension_numbers<[1], [0], [0], [1], [0, 0, 1, 1], [], []>} : vector<30x2xf32>, vector<2x32xf32>, vector<30x32xf32> -> vector<30x32xf32>
    %191 = arith.mulf %187, %190 : vector<30x32xf32>
    %cst_117 = arith.constant 0.000000e+00 : f32
    %192 = vector.broadcast %cst_117 : f32 to vector<30x32xf32>
    %c0_118 = arith.constant 0 : index
    %c0_119 = arith.constant 0 : index
    %c0_120 = arith.constant 0 : index
    %193 = vector.load %arg8[%c0_118, %c0_119, %c0_120] : memref<2x30x1xf32, #tpu.memory_space<vmem>>, vector<1x30x1xf32>
    %194 = vector.shape_cast %193 : vector<1x30x1xf32> to vector<30x1xf32>
    %195 = vector.broadcast %194 : vector<30x1xf32> to vector<30x32xf32>
    %196 = arith.mulf %191, %195 : vector<30x32xf32>
    %cst_121 = arith.constant dense<0.000000e+00> : vector<32x32xf32>
    %197 = tpu.matmul %196, %174, %cst_121 {dimension_numbers = #tpu.dot_dimension_numbers<[0], [0], [1], [1], [0, 1, 1, 1], [], []>} : vector<30x32xf32>, vector<30x32xf32>, vector<32x32xf32> -> vector<32x32xf32>
    %198 = arith.mulf %197, %14 : vector<32x32xf32>
    %cst_122 = arith.constant dense<0.000000e+00> : vector<30x32xf32>
    %199 = tpu.matmul %182, %198, %cst_122 {dimension_numbers = #tpu.dot_dimension_numbers<[1], [0], [0], [1], [0, 0, 1, 1], [], []>} : vector<30x32xf32>, vector<32x32xf32>, vector<30x32xf32> -> vector<30x32xf32>
    %200 = vector.broadcast %194 : vector<30x1xf32> to vector<30x32xf32>
    %201 = arith.mulf %200, %199 : vector<30x32xf32>
    %202 = arith.addf %192, %201 : vector<30x32xf32>
    %c1_123 = arith.constant 1 : index
    %c0_124 = arith.constant 0 : index
    %c0_125 = arith.constant 0 : index
    %203 = vector.load %arg8[%c1_123, %c0_124, %c0_125] : memref<2x30x1xf32, #tpu.memory_space<vmem>>, vector<1x30x1xf32>
    %204 = vector.shape_cast %203 : vector<1x30x1xf32> to vector<30x1xf32>
    %205 = vector.broadcast %204 : vector<30x1xf32> to vector<30x32xf32>
    %206 = arith.mulf %191, %205 : vector<30x32xf32>
    %cst_126 = arith.constant dense<0.000000e+00> : vector<32x32xf32>
    %207 = tpu.matmul %206, %174, %cst_126 {dimension_numbers = #tpu.dot_dimension_numbers<[0], [0], [1], [1], [0, 1, 1, 1], [], []>} : vector<30x32xf32>, vector<30x32xf32>, vector<32x32xf32> -> vector<32x32xf32>
    %208 = arith.mulf %207, %14 : vector<32x32xf32>
    %cst_127 = arith.constant dense<0.000000e+00> : vector<30x32xf32>
    %209 = tpu.matmul %182, %208, %cst_127 {dimension_numbers = #tpu.dot_dimension_numbers<[1], [0], [0], [1], [0, 0, 1, 1], [], []>} : vector<30x32xf32>, vector<32x32xf32>, vector<30x32xf32> -> vector<30x32xf32>
    %210 = vector.broadcast %204 : vector<30x1xf32> to vector<30x32xf32>
    %211 = arith.mulf %210, %209 : vector<30x32xf32>
    %212 = arith.addf %202, %211 : vector<30x32xf32>
    %c1_128 = arith.constant 1 : index
    %c0_129 = arith.constant 0 : index
    %c0_130 = arith.constant 0 : index
    %213 = vector.load %arg14[%c1_128, %c0_129, %c0_130] : memref<4x32x32xf32, #tpu.memory_space<vmem>>, vector<1x32x32xf32>
    %214 = vector.shape_cast %213 : vector<1x32x32xf32> to vector<32x32xf32>
    %cst_131 = arith.constant dense<0.000000e+00> : vector<30x32xf32>
    %215 = tpu.matmul %212, %214, %cst_131 {dimension_numbers = #tpu.dot_dimension_numbers<[1], [0], [0], [1], [0, 0, 1, 1], [], []>} : vector<30x32xf32>, vector<32x32xf32>, vector<30x32xf32> -> vector<30x32xf32>
    %216 = arith.addf %143, %215 : vector<30x32xf32>
    %c1_132 = arith.constant 1 : index
    %c0_133 = arith.constant 0 : index
    %c0_134 = arith.constant 0 : index
    %217 = vector.load %arg15[%c1_132, %c0_133, %c0_134] : memref<4x1x32xf32, #tpu.memory_space<vmem>>, vector<1x1x32xf32>
    %218 = vector.shape_cast %217 : vector<1x1x32xf32> to vector<1x32xf32>
    %219 = vector.broadcast %218 : vector<1x32xf32> to vector<30x32xf32>
    %220 = arith.addf %216, %219 : vector<30x32xf32>
    %c1_135 = arith.constant 1 : index
    %c0_136 = arith.constant 0 : index
    %c0_137 = arith.constant 0 : index
    %221 = vector.load %arg16[%c1_135, %c0_136, %c0_137] : memref<4x1x32xf32, #tpu.memory_space<vmem>>, vector<1x1x32xf32>
    %222 = vector.shape_cast %221 : vector<1x1x32xf32> to vector<1x32xf32>
    %c1_138 = arith.constant 1 : index
    %c0_139 = arith.constant 0 : index
    %c0_140 = arith.constant 0 : index
    %223 = vector.load %arg17[%c1_138, %c0_139, %c0_140] : memref<4x1x32xf32, #tpu.memory_space<vmem>>, vector<1x1x32xf32>
    %224 = vector.shape_cast %223 : vector<1x1x32xf32> to vector<1x32xf32>
    %cst_141 = arith.constant dense<0.000000e+00> : vector<30x1xf32>
    %225 = tpu.matmul %220, %0, %cst_141 {dimension_numbers = #tpu.dot_dimension_numbers<[1], [0], [0], [1], [0, 0, 1, 1], [], []>} : vector<30x32xf32>, vector<32x1xf32>, vector<30x1xf32> -> vector<30x1xf32>
    %cst_142 = arith.constant 3.125000e-02 : f32
    %226 = vector.broadcast %cst_142 : f32 to vector<30x1xf32>
    %227 = arith.mulf %225, %226 : vector<30x1xf32>
    %228 = vector.broadcast %227 : vector<30x1xf32> to vector<30x32xf32>
    %229 = arith.subf %220, %228 : vector<30x32xf32>
    %230 = arith.mulf %229, %229 : vector<30x32xf32>
    %cst_143 = arith.constant dense<0.000000e+00> : vector<30x1xf32>
    %231 = tpu.matmul %230, %0, %cst_143 {dimension_numbers = #tpu.dot_dimension_numbers<[1], [0], [0], [1], [0, 0, 1, 1], [], []>} : vector<30x32xf32>, vector<32x1xf32>, vector<30x1xf32> -> vector<30x1xf32>
    %cst_144 = arith.constant 3.125000e-02 : f32
    %232 = vector.broadcast %cst_144 : f32 to vector<30x1xf32>
    %233 = arith.mulf %231, %232 : vector<30x1xf32>
    %cst_145 = arith.constant 9.99999974E-6 : f32
    %234 = vector.broadcast %cst_145 : f32 to vector<30x1xf32>
    %235 = arith.addf %233, %234 : vector<30x1xf32>
    %236 = math.rsqrt %235 : vector<30x1xf32>
    %237 = vector.broadcast %236 : vector<30x1xf32> to vector<30x32xf32>
    %238 = arith.mulf %229, %237 : vector<30x32xf32>
    %239 = vector.broadcast %222 : vector<1x32xf32> to vector<30x32xf32>
    %240 = arith.mulf %238, %239 : vector<30x32xf32>
    %241 = vector.broadcast %224 : vector<1x32xf32> to vector<30x32xf32>
    %242 = arith.addf %240, %241 : vector<30x32xf32>
    %c1_146 = arith.constant 1 : index
    %c0_147 = arith.constant 0 : index
    %c0_148 = arith.constant 0 : index
    %243 = vector.load %arg18[%c1_146, %c0_147, %c0_148] : memref<4x32x128xf32, #tpu.memory_space<vmem>>, vector<1x32x128xf32>
    %244 = vector.shape_cast %243 : vector<1x32x128xf32> to vector<32x128xf32>
    %cst_149 = arith.constant dense<0.000000e+00> : vector<30x128xf32>
    %245 = tpu.matmul %242, %244, %cst_149 {dimension_numbers = #tpu.dot_dimension_numbers<[1], [0], [0], [1], [0, 0, 1, 1], [], []>} : vector<30x32xf32>, vector<32x128xf32>, vector<30x128xf32> -> vector<30x128xf32>
    %c1_150 = arith.constant 1 : index
    %c0_151 = arith.constant 0 : index
    %c0_152 = arith.constant 0 : index
    %246 = vector.load %arg19[%c1_150, %c0_151, %c0_152] : memref<4x1x128xf32, #tpu.memory_space<vmem>>, vector<1x1x128xf32>
    %247 = vector.shape_cast %246 : vector<1x1x128xf32> to vector<1x128xf32>
    %248 = vector.broadcast %247 : vector<1x128xf32> to vector<30x128xf32>
    %249 = arith.addf %245, %248 : vector<30x128xf32>
    %250 = arith.mulf %249, %249 : vector<30x128xf32>
    %251 = arith.mulf %249, %250 : vector<30x128xf32>
    %cst_153 = arith.constant 4.471500e-02 : f32
    %252 = vector.broadcast %cst_153 : f32 to vector<30x128xf32>
    %253 = arith.mulf %252, %251 : vector<30x128xf32>
    %254 = arith.addf %249, %253 : vector<30x128xf32>
    %cst_154 = arith.constant 0.797884583 : f32
    %255 = vector.broadcast %cst_154 : f32 to vector<30x128xf32>
    %256 = arith.mulf %255, %254 : vector<30x128xf32>
    %257 = math.tanh %256 : vector<30x128xf32>
    %cst_155 = arith.constant 1.000000e+00 : f32
    %258 = vector.broadcast %cst_155 : f32 to vector<30x128xf32>
    %259 = arith.addf %258, %257 : vector<30x128xf32>
    %cst_156 = arith.constant 5.000000e-01 : f32
    %260 = vector.broadcast %cst_156 : f32 to vector<30x128xf32>
    %261 = arith.mulf %260, %259 : vector<30x128xf32>
    %262 = arith.mulf %249, %261 : vector<30x128xf32>
    %c1_157 = arith.constant 1 : index
    %c0_158 = arith.constant 0 : index
    %c0_159 = arith.constant 0 : index
    %263 = vector.load %arg20[%c1_157, %c0_158, %c0_159] : memref<4x128x32xf32, #tpu.memory_space<vmem>>, vector<1x128x32xf32>
    %264 = vector.shape_cast %263 : vector<1x128x32xf32> to vector<128x32xf32>
    %cst_160 = arith.constant dense<0.000000e+00> : vector<30x32xf32>
    %265 = tpu.matmul %262, %264, %cst_160 {dimension_numbers = #tpu.dot_dimension_numbers<[1], [0], [0], [1], [0, 0, 1, 1], [], []>} : vector<30x128xf32>, vector<128x32xf32>, vector<30x32xf32> -> vector<30x32xf32>
    %266 = arith.addf %220, %265 : vector<30x32xf32>
    %c1_161 = arith.constant 1 : index
    %c0_162 = arith.constant 0 : index
    %c0_163 = arith.constant 0 : index
    %267 = vector.load %arg21[%c1_161, %c0_162, %c0_163] : memref<4x1x32xf32, #tpu.memory_space<vmem>>, vector<1x1x32xf32>
    %268 = vector.shape_cast %267 : vector<1x1x32xf32> to vector<1x32xf32>
    %269 = vector.broadcast %268 : vector<1x32xf32> to vector<30x32xf32>
    %270 = arith.addf %266, %269 : vector<30x32xf32>
    %c2 = arith.constant 2 : index
    %c0_164 = arith.constant 0 : index
    %c0_165 = arith.constant 0 : index
    %271 = vector.load %arg9[%c2, %c0_164, %c0_165] : memref<4x1x32xf32, #tpu.memory_space<vmem>>, vector<1x1x32xf32>
    %272 = vector.shape_cast %271 : vector<1x1x32xf32> to vector<1x32xf32>
    %c2_166 = arith.constant 2 : index
    %c0_167 = arith.constant 0 : index
    %c0_168 = arith.constant 0 : index
    %273 = vector.load %arg10[%c2_166, %c0_167, %c0_168] : memref<4x1x32xf32, #tpu.memory_space<vmem>>, vector<1x1x32xf32>
    %274 = vector.shape_cast %273 : vector<1x1x32xf32> to vector<1x32xf32>
    %cst_169 = arith.constant dense<0.000000e+00> : vector<30x1xf32>
    %275 = tpu.matmul %270, %0, %cst_169 {dimension_numbers = #tpu.dot_dimension_numbers<[1], [0], [0], [1], [0, 0, 1, 1], [], []>} : vector<30x32xf32>, vector<32x1xf32>, vector<30x1xf32> -> vector<30x1xf32>
    %cst_170 = arith.constant 3.125000e-02 : f32
    %276 = vector.broadcast %cst_170 : f32 to vector<30x1xf32>
    %277 = arith.mulf %275, %276 : vector<30x1xf32>
    %278 = vector.broadcast %277 : vector<30x1xf32> to vector<30x32xf32>
    %279 = arith.subf %270, %278 : vector<30x32xf32>
    %280 = arith.mulf %279, %279 : vector<30x32xf32>
    %cst_171 = arith.constant dense<0.000000e+00> : vector<30x1xf32>
    %281 = tpu.matmul %280, %0, %cst_171 {dimension_numbers = #tpu.dot_dimension_numbers<[1], [0], [0], [1], [0, 0, 1, 1], [], []>} : vector<30x32xf32>, vector<32x1xf32>, vector<30x1xf32> -> vector<30x1xf32>
    %cst_172 = arith.constant 3.125000e-02 : f32
    %282 = vector.broadcast %cst_172 : f32 to vector<30x1xf32>
    %283 = arith.mulf %281, %282 : vector<30x1xf32>
    %cst_173 = arith.constant 9.99999974E-6 : f32
    %284 = vector.broadcast %cst_173 : f32 to vector<30x1xf32>
    %285 = arith.addf %283, %284 : vector<30x1xf32>
    %286 = math.rsqrt %285 : vector<30x1xf32>
    %287 = vector.broadcast %286 : vector<30x1xf32> to vector<30x32xf32>
    %288 = arith.mulf %279, %287 : vector<30x32xf32>
    %289 = vector.broadcast %272 : vector<1x32xf32> to vector<30x32xf32>
    %290 = arith.mulf %288, %289 : vector<30x32xf32>
    %291 = vector.broadcast %274 : vector<1x32xf32> to vector<30x32xf32>
    %292 = arith.addf %290, %291 : vector<30x32xf32>
    %c2_174 = arith.constant 2 : index
    %c0_175 = arith.constant 0 : index
    %c0_176 = arith.constant 0 : index
    %293 = vector.load %arg11[%c2_174, %c0_175, %c0_176] : memref<4x32x32xf32, #tpu.memory_space<vmem>>, vector<1x32x32xf32>
    %294 = vector.shape_cast %293 : vector<1x32x32xf32> to vector<32x32xf32>
    %cst_177 = arith.constant dense<0.000000e+00> : vector<30x32xf32>
    %295 = tpu.matmul %292, %294, %cst_177 {dimension_numbers = #tpu.dot_dimension_numbers<[1], [0], [0], [1], [0, 0, 1, 1], [], []>} : vector<30x32xf32>, vector<32x32xf32>, vector<30x32xf32> -> vector<30x32xf32>
    %c2_178 = arith.constant 2 : index
    %c0_179 = arith.constant 0 : index
    %c0_180 = arith.constant 0 : index
    %296 = vector.load %arg12[%c2_178, %c0_179, %c0_180] : memref<4x32x32xf32, #tpu.memory_space<vmem>>, vector<1x32x32xf32>
    %297 = vector.shape_cast %296 : vector<1x32x32xf32> to vector<32x32xf32>
    %cst_181 = arith.constant dense<0.000000e+00> : vector<30x32xf32>
    %298 = tpu.matmul %292, %297, %cst_181 {dimension_numbers = #tpu.dot_dimension_numbers<[1], [0], [0], [1], [0, 0, 1, 1], [], []>} : vector<30x32xf32>, vector<32x32xf32>, vector<30x32xf32> -> vector<30x32xf32>
    %c2_182 = arith.constant 2 : index
    %c0_183 = arith.constant 0 : index
    %c0_184 = arith.constant 0 : index
    %299 = vector.load %arg13[%c2_182, %c0_183, %c0_184] : memref<4x32x32xf32, #tpu.memory_space<vmem>>, vector<1x32x32xf32>
    %300 = vector.shape_cast %299 : vector<1x32x32xf32> to vector<32x32xf32>
    %cst_185 = arith.constant dense<0.000000e+00> : vector<30x32xf32>
    %301 = tpu.matmul %292, %300, %cst_185 {dimension_numbers = #tpu.dot_dimension_numbers<[1], [0], [0], [1], [0, 0, 1, 1], [], []>} : vector<30x32xf32>, vector<32x32xf32>, vector<30x32xf32> -> vector<30x32xf32>
    %cst_186 = arith.constant dense<0xFF800000> : vector<30xf32>
    %302 = vector.multi_reduction <maximumf>, %295, %cst_186 [1] : vector<30x32xf32> to vector<30xf32>
    %303 = vector.shape_cast %302 : vector<30xf32> to vector<30x1xf32>
    %304 = vector.broadcast %303 : vector<30x1xf32> to vector<30x32xf32>
    %305 = arith.subf %295, %304 : vector<30x32xf32>
    %306 = math.exp %305 : vector<30x32xf32>
    %cst_187 = arith.constant dense<0.000000e+00> : vector<30x32xf32>
    %307 = tpu.matmul %306, %14, %cst_187 {dimension_numbers = #tpu.dot_dimension_numbers<[1], [0], [0], [1], [0, 0, 1, 1], [], []>} : vector<30x32xf32>, vector<32x32xf32>, vector<30x32xf32> -> vector<30x32xf32>
    %308 = tpu.reciprocal %307 {approx = true} : vector<30x32xf32> -> vector<30x32xf32>
    %309 = arith.mulf %306, %308 : vector<30x32xf32>
    %cst_188 = arith.constant dense<0xFF800000> : vector<32xf32>
    %310 = vector.multi_reduction <maximumf>, %298, %cst_188 [0] : vector<30x32xf32> to vector<32xf32>
    %311 = vector.shape_cast %310 : vector<32xf32> to vector<1x32xf32>
    %312 = vector.broadcast %311 : vector<1x32xf32> to vector<30x32xf32>
    %313 = arith.subf %298, %312 : vector<30x32xf32>
    %314 = math.exp %313 : vector<30x32xf32>
    %cst_189 = arith.constant dense<0.000000e+00> : vector<2x32xf32>
    %315 = tpu.matmul %15, %314, %cst_189 {dimension_numbers = #tpu.dot_dimension_numbers<[1], [0], [0], [1], [0, 0, 1, 1], [], []>} : vector<2x30xf32>, vector<30x32xf32>, vector<2x32xf32> -> vector<2x32xf32>
    %316 = tpu.reciprocal %315 {approx = true} : vector<2x32xf32> -> vector<2x32xf32>
    %cst_190 = arith.constant dense<0.000000e+00> : vector<30x32xf32>
    %317 = tpu.matmul %16, %316, %cst_190 {dimension_numbers = #tpu.dot_dimension_numbers<[1], [0], [0], [1], [0, 0, 1, 1], [], []>} : vector<30x2xf32>, vector<2x32xf32>, vector<30x32xf32> -> vector<30x32xf32>
    %318 = arith.mulf %314, %317 : vector<30x32xf32>
    %cst_191 = arith.constant 0.000000e+00 : f32
    %319 = vector.broadcast %cst_191 : f32 to vector<30x32xf32>
    %c0_192 = arith.constant 0 : index
    %c0_193 = arith.constant 0 : index
    %c0_194 = arith.constant 0 : index
    %320 = vector.load %arg8[%c0_192, %c0_193, %c0_194] : memref<2x30x1xf32, #tpu.memory_space<vmem>>, vector<1x30x1xf32>
    %321 = vector.shape_cast %320 : vector<1x30x1xf32> to vector<30x1xf32>
    %322 = vector.broadcast %321 : vector<30x1xf32> to vector<30x32xf32>
    %323 = arith.mulf %318, %322 : vector<30x32xf32>
    %cst_195 = arith.constant dense<0.000000e+00> : vector<32x32xf32>
    %324 = tpu.matmul %323, %301, %cst_195 {dimension_numbers = #tpu.dot_dimension_numbers<[0], [0], [1], [1], [0, 1, 1, 1], [], []>} : vector<30x32xf32>, vector<30x32xf32>, vector<32x32xf32> -> vector<32x32xf32>
    %325 = arith.mulf %324, %14 : vector<32x32xf32>
    %cst_196 = arith.constant dense<0.000000e+00> : vector<30x32xf32>
    %326 = tpu.matmul %309, %325, %cst_196 {dimension_numbers = #tpu.dot_dimension_numbers<[1], [0], [0], [1], [0, 0, 1, 1], [], []>} : vector<30x32xf32>, vector<32x32xf32>, vector<30x32xf32> -> vector<30x32xf32>
    %327 = vector.broadcast %321 : vector<30x1xf32> to vector<30x32xf32>
    %328 = arith.mulf %327, %326 : vector<30x32xf32>
    %329 = arith.addf %319, %328 : vector<30x32xf32>
    %c1_197 = arith.constant 1 : index
    %c0_198 = arith.constant 0 : index
    %c0_199 = arith.constant 0 : index
    %330 = vector.load %arg8[%c1_197, %c0_198, %c0_199] : memref<2x30x1xf32, #tpu.memory_space<vmem>>, vector<1x30x1xf32>
    %331 = vector.shape_cast %330 : vector<1x30x1xf32> to vector<30x1xf32>
    %332 = vector.broadcast %331 : vector<30x1xf32> to vector<30x32xf32>
    %333 = arith.mulf %318, %332 : vector<30x32xf32>
    %cst_200 = arith.constant dense<0.000000e+00> : vector<32x32xf32>
    %334 = tpu.matmul %333, %301, %cst_200 {dimension_numbers = #tpu.dot_dimension_numbers<[0], [0], [1], [1], [0, 1, 1, 1], [], []>} : vector<30x32xf32>, vector<30x32xf32>, vector<32x32xf32> -> vector<32x32xf32>
    %335 = arith.mulf %334, %14 : vector<32x32xf32>
    %cst_201 = arith.constant dense<0.000000e+00> : vector<30x32xf32>
    %336 = tpu.matmul %309, %335, %cst_201 {dimension_numbers = #tpu.dot_dimension_numbers<[1], [0], [0], [1], [0, 0, 1, 1], [], []>} : vector<30x32xf32>, vector<32x32xf32>, vector<30x32xf32> -> vector<30x32xf32>
    %337 = vector.broadcast %331 : vector<30x1xf32> to vector<30x32xf32>
    %338 = arith.mulf %337, %336 : vector<30x32xf32>
    %339 = arith.addf %329, %338 : vector<30x32xf32>
    %c2_202 = arith.constant 2 : index
    %c0_203 = arith.constant 0 : index
    %c0_204 = arith.constant 0 : index
    %340 = vector.load %arg14[%c2_202, %c0_203, %c0_204] : memref<4x32x32xf32, #tpu.memory_space<vmem>>, vector<1x32x32xf32>
    %341 = vector.shape_cast %340 : vector<1x32x32xf32> to vector<32x32xf32>
    %cst_205 = arith.constant dense<0.000000e+00> : vector<30x32xf32>
    %342 = tpu.matmul %339, %341, %cst_205 {dimension_numbers = #tpu.dot_dimension_numbers<[1], [0], [0], [1], [0, 0, 1, 1], [], []>} : vector<30x32xf32>, vector<32x32xf32>, vector<30x32xf32> -> vector<30x32xf32>
    %343 = arith.addf %270, %342 : vector<30x32xf32>
    %c2_206 = arith.constant 2 : index
    %c0_207 = arith.constant 0 : index
    %c0_208 = arith.constant 0 : index
    %344 = vector.load %arg15[%c2_206, %c0_207, %c0_208] : memref<4x1x32xf32, #tpu.memory_space<vmem>>, vector<1x1x32xf32>
    %345 = vector.shape_cast %344 : vector<1x1x32xf32> to vector<1x32xf32>
    %346 = vector.broadcast %345 : vector<1x32xf32> to vector<30x32xf32>
    %347 = arith.addf %343, %346 : vector<30x32xf32>
    %c2_209 = arith.constant 2 : index
    %c0_210 = arith.constant 0 : index
    %c0_211 = arith.constant 0 : index
    %348 = vector.load %arg16[%c2_209, %c0_210, %c0_211] : memref<4x1x32xf32, #tpu.memory_space<vmem>>, vector<1x1x32xf32>
    %349 = vector.shape_cast %348 : vector<1x1x32xf32> to vector<1x32xf32>
    %c2_212 = arith.constant 2 : index
    %c0_213 = arith.constant 0 : index
    %c0_214 = arith.constant 0 : index
    %350 = vector.load %arg17[%c2_212, %c0_213, %c0_214] : memref<4x1x32xf32, #tpu.memory_space<vmem>>, vector<1x1x32xf32>
    %351 = vector.shape_cast %350 : vector<1x1x32xf32> to vector<1x32xf32>
    %cst_215 = arith.constant dense<0.000000e+00> : vector<30x1xf32>
    %352 = tpu.matmul %347, %0, %cst_215 {dimension_numbers = #tpu.dot_dimension_numbers<[1], [0], [0], [1], [0, 0, 1, 1], [], []>} : vector<30x32xf32>, vector<32x1xf32>, vector<30x1xf32> -> vector<30x1xf32>
    %cst_216 = arith.constant 3.125000e-02 : f32
    %353 = vector.broadcast %cst_216 : f32 to vector<30x1xf32>
    %354 = arith.mulf %352, %353 : vector<30x1xf32>
    %355 = vector.broadcast %354 : vector<30x1xf32> to vector<30x32xf32>
    %356 = arith.subf %347, %355 : vector<30x32xf32>
    %357 = arith.mulf %356, %356 : vector<30x32xf32>
    %cst_217 = arith.constant dense<0.000000e+00> : vector<30x1xf32>
    %358 = tpu.matmul %357, %0, %cst_217 {dimension_numbers = #tpu.dot_dimension_numbers<[1], [0], [0], [1], [0, 0, 1, 1], [], []>} : vector<30x32xf32>, vector<32x1xf32>, vector<30x1xf32> -> vector<30x1xf32>
    %cst_218 = arith.constant 3.125000e-02 : f32
    %359 = vector.broadcast %cst_218 : f32 to vector<30x1xf32>
    %360 = arith.mulf %358, %359 : vector<30x1xf32>
    %cst_219 = arith.constant 9.99999974E-6 : f32
    %361 = vector.broadcast %cst_219 : f32 to vector<30x1xf32>
    %362 = arith.addf %360, %361 : vector<30x1xf32>
    %363 = math.rsqrt %362 : vector<30x1xf32>
    %364 = vector.broadcast %363 : vector<30x1xf32> to vector<30x32xf32>
    %365 = arith.mulf %356, %364 : vector<30x32xf32>
    %366 = vector.broadcast %349 : vector<1x32xf32> to vector<30x32xf32>
    %367 = arith.mulf %365, %366 : vector<30x32xf32>
    %368 = vector.broadcast %351 : vector<1x32xf32> to vector<30x32xf32>
    %369 = arith.addf %367, %368 : vector<30x32xf32>
    %c2_220 = arith.constant 2 : index
    %c0_221 = arith.constant 0 : index
    %c0_222 = arith.constant 0 : index
    %370 = vector.load %arg18[%c2_220, %c0_221, %c0_222] : memref<4x32x128xf32, #tpu.memory_space<vmem>>, vector<1x32x128xf32>
    %371 = vector.shape_cast %370 : vector<1x32x128xf32> to vector<32x128xf32>
    %cst_223 = arith.constant dense<0.000000e+00> : vector<30x128xf32>
    %372 = tpu.matmul %369, %371, %cst_223 {dimension_numbers = #tpu.dot_dimension_numbers<[1], [0], [0], [1], [0, 0, 1, 1], [], []>} : vector<30x32xf32>, vector<32x128xf32>, vector<30x128xf32> -> vector<30x128xf32>
    %c2_224 = arith.constant 2 : index
    %c0_225 = arith.constant 0 : index
    %c0_226 = arith.constant 0 : index
    %373 = vector.load %arg19[%c2_224, %c0_225, %c0_226] : memref<4x1x128xf32, #tpu.memory_space<vmem>>, vector<1x1x128xf32>
    %374 = vector.shape_cast %373 : vector<1x1x128xf32> to vector<1x128xf32>
    %375 = vector.broadcast %374 : vector<1x128xf32> to vector<30x128xf32>
    %376 = arith.addf %372, %375 : vector<30x128xf32>
    %377 = arith.mulf %376, %376 : vector<30x128xf32>
    %378 = arith.mulf %376, %377 : vector<30x128xf32>
    %cst_227 = arith.constant 4.471500e-02 : f32
    %379 = vector.broadcast %cst_227 : f32 to vector<30x128xf32>
    %380 = arith.mulf %379, %378 : vector<30x128xf32>
    %381 = arith.addf %376, %380 : vector<30x128xf32>
    %cst_228 = arith.constant 0.797884583 : f32
    %382 = vector.broadcast %cst_228 : f32 to vector<30x128xf32>
    %383 = arith.mulf %382, %381 : vector<30x128xf32>
    %384 = math.tanh %383 : vector<30x128xf32>
    %cst_229 = arith.constant 1.000000e+00 : f32
    %385 = vector.broadcast %cst_229 : f32 to vector<30x128xf32>
    %386 = arith.addf %385, %384 : vector<30x128xf32>
    %cst_230 = arith.constant 5.000000e-01 : f32
    %387 = vector.broadcast %cst_230 : f32 to vector<30x128xf32>
    %388 = arith.mulf %387, %386 : vector<30x128xf32>
    %389 = arith.mulf %376, %388 : vector<30x128xf32>
    %c2_231 = arith.constant 2 : index
    %c0_232 = arith.constant 0 : index
    %c0_233 = arith.constant 0 : index
    %390 = vector.load %arg20[%c2_231, %c0_232, %c0_233] : memref<4x128x32xf32, #tpu.memory_space<vmem>>, vector<1x128x32xf32>
    %391 = vector.shape_cast %390 : vector<1x128x32xf32> to vector<128x32xf32>
    %cst_234 = arith.constant dense<0.000000e+00> : vector<30x32xf32>
    %392 = tpu.matmul %389, %391, %cst_234 {dimension_numbers = #tpu.dot_dimension_numbers<[1], [0], [0], [1], [0, 0, 1, 1], [], []>} : vector<30x128xf32>, vector<128x32xf32>, vector<30x32xf32> -> vector<30x32xf32>
    %393 = arith.addf %347, %392 : vector<30x32xf32>
    %c2_235 = arith.constant 2 : index
    %c0_236 = arith.constant 0 : index
    %c0_237 = arith.constant 0 : index
    %394 = vector.load %arg21[%c2_235, %c0_236, %c0_237] : memref<4x1x32xf32, #tpu.memory_space<vmem>>, vector<1x1x32xf32>
    %395 = vector.shape_cast %394 : vector<1x1x32xf32> to vector<1x32xf32>
    %396 = vector.broadcast %395 : vector<1x32xf32> to vector<30x32xf32>
    %397 = arith.addf %393, %396 : vector<30x32xf32>
    %c3 = arith.constant 3 : index
    %c0_238 = arith.constant 0 : index
    %c0_239 = arith.constant 0 : index
    %398 = vector.load %arg9[%c3, %c0_238, %c0_239] : memref<4x1x32xf32, #tpu.memory_space<vmem>>, vector<1x1x32xf32>
    %399 = vector.shape_cast %398 : vector<1x1x32xf32> to vector<1x32xf32>
    %c3_240 = arith.constant 3 : index
    %c0_241 = arith.constant 0 : index
    %c0_242 = arith.constant 0 : index
    %400 = vector.load %arg10[%c3_240, %c0_241, %c0_242] : memref<4x1x32xf32, #tpu.memory_space<vmem>>, vector<1x1x32xf32>
    %401 = vector.shape_cast %400 : vector<1x1x32xf32> to vector<1x32xf32>
    %cst_243 = arith.constant dense<0.000000e+00> : vector<30x1xf32>
    %402 = tpu.matmul %397, %0, %cst_243 {dimension_numbers = #tpu.dot_dimension_numbers<[1], [0], [0], [1], [0, 0, 1, 1], [], []>} : vector<30x32xf32>, vector<32x1xf32>, vector<30x1xf32> -> vector<30x1xf32>
    %cst_244 = arith.constant 3.125000e-02 : f32
    %403 = vector.broadcast %cst_244 : f32 to vector<30x1xf32>
    %404 = arith.mulf %402, %403 : vector<30x1xf32>
    %405 = vector.broadcast %404 : vector<30x1xf32> to vector<30x32xf32>
    %406 = arith.subf %397, %405 : vector<30x32xf32>
    %407 = arith.mulf %406, %406 : vector<30x32xf32>
    %cst_245 = arith.constant dense<0.000000e+00> : vector<30x1xf32>
    %408 = tpu.matmul %407, %0, %cst_245 {dimension_numbers = #tpu.dot_dimension_numbers<[1], [0], [0], [1], [0, 0, 1, 1], [], []>} : vector<30x32xf32>, vector<32x1xf32>, vector<30x1xf32> -> vector<30x1xf32>
    %cst_246 = arith.constant 3.125000e-02 : f32
    %409 = vector.broadcast %cst_246 : f32 to vector<30x1xf32>
    %410 = arith.mulf %408, %409 : vector<30x1xf32>
    %cst_247 = arith.constant 9.99999974E-6 : f32
    %411 = vector.broadcast %cst_247 : f32 to vector<30x1xf32>
    %412 = arith.addf %410, %411 : vector<30x1xf32>
    %413 = math.rsqrt %412 : vector<30x1xf32>
    %414 = vector.broadcast %413 : vector<30x1xf32> to vector<30x32xf32>
    %415 = arith.mulf %406, %414 : vector<30x32xf32>
    %416 = vector.broadcast %399 : vector<1x32xf32> to vector<30x32xf32>
    %417 = arith.mulf %415, %416 : vector<30x32xf32>
    %418 = vector.broadcast %401 : vector<1x32xf32> to vector<30x32xf32>
    %419 = arith.addf %417, %418 : vector<30x32xf32>
    %c3_248 = arith.constant 3 : index
    %c0_249 = arith.constant 0 : index
    %c0_250 = arith.constant 0 : index
    %420 = vector.load %arg11[%c3_248, %c0_249, %c0_250] : memref<4x32x32xf32, #tpu.memory_space<vmem>>, vector<1x32x32xf32>
    %421 = vector.shape_cast %420 : vector<1x32x32xf32> to vector<32x32xf32>
    %cst_251 = arith.constant dense<0.000000e+00> : vector<30x32xf32>
    %422 = tpu.matmul %419, %421, %cst_251 {dimension_numbers = #tpu.dot_dimension_numbers<[1], [0], [0], [1], [0, 0, 1, 1], [], []>} : vector<30x32xf32>, vector<32x32xf32>, vector<30x32xf32> -> vector<30x32xf32>
    %c3_252 = arith.constant 3 : index
    %c0_253 = arith.constant 0 : index
    %c0_254 = arith.constant 0 : index
    %423 = vector.load %arg12[%c3_252, %c0_253, %c0_254] : memref<4x32x32xf32, #tpu.memory_space<vmem>>, vector<1x32x32xf32>
    %424 = vector.shape_cast %423 : vector<1x32x32xf32> to vector<32x32xf32>
    %cst_255 = arith.constant dense<0.000000e+00> : vector<30x32xf32>
    %425 = tpu.matmul %419, %424, %cst_255 {dimension_numbers = #tpu.dot_dimension_numbers<[1], [0], [0], [1], [0, 0, 1, 1], [], []>} : vector<30x32xf32>, vector<32x32xf32>, vector<30x32xf32> -> vector<30x32xf32>
    %c3_256 = arith.constant 3 : index
    %c0_257 = arith.constant 0 : index
    %c0_258 = arith.constant 0 : index
    %426 = vector.load %arg13[%c3_256, %c0_257, %c0_258] : memref<4x32x32xf32, #tpu.memory_space<vmem>>, vector<1x32x32xf32>
    %427 = vector.shape_cast %426 : vector<1x32x32xf32> to vector<32x32xf32>
    %cst_259 = arith.constant dense<0.000000e+00> : vector<30x32xf32>
    %428 = tpu.matmul %419, %427, %cst_259 {dimension_numbers = #tpu.dot_dimension_numbers<[1], [0], [0], [1], [0, 0, 1, 1], [], []>} : vector<30x32xf32>, vector<32x32xf32>, vector<30x32xf32> -> vector<30x32xf32>
    %cst_260 = arith.constant dense<0xFF800000> : vector<30xf32>
    %429 = vector.multi_reduction <maximumf>, %422, %cst_260 [1] : vector<30x32xf32> to vector<30xf32>
    %430 = vector.shape_cast %429 : vector<30xf32> to vector<30x1xf32>
    %431 = vector.broadcast %430 : vector<30x1xf32> to vector<30x32xf32>
    %432 = arith.subf %422, %431 : vector<30x32xf32>
    %433 = math.exp %432 : vector<30x32xf32>
    %cst_261 = arith.constant dense<0.000000e+00> : vector<30x32xf32>
    %434 = tpu.matmul %433, %14, %cst_261 {dimension_numbers = #tpu.dot_dimension_numbers<[1], [0], [0], [1], [0, 0, 1, 1], [], []>} : vector<30x32xf32>, vector<32x32xf32>, vector<30x32xf32> -> vector<30x32xf32>
    %435 = tpu.reciprocal %434 {approx = true} : vector<30x32xf32> -> vector<30x32xf32>
    %436 = arith.mulf %433, %435 : vector<30x32xf32>
    %cst_262 = arith.constant dense<0xFF800000> : vector<32xf32>
    %437 = vector.multi_reduction <maximumf>, %425, %cst_262 [0] : vector<30x32xf32> to vector<32xf32>
    %438 = vector.shape_cast %437 : vector<32xf32> to vector<1x32xf32>
    %439 = vector.broadcast %438 : vector<1x32xf32> to vector<30x32xf32>
    %440 = arith.subf %425, %439 : vector<30x32xf32>
    %441 = math.exp %440 : vector<30x32xf32>
    %cst_263 = arith.constant dense<0.000000e+00> : vector<2x32xf32>
    %442 = tpu.matmul %15, %441, %cst_263 {dimension_numbers = #tpu.dot_dimension_numbers<[1], [0], [0], [1], [0, 0, 1, 1], [], []>} : vector<2x30xf32>, vector<30x32xf32>, vector<2x32xf32> -> vector<2x32xf32>
    %443 = tpu.reciprocal %442 {approx = true} : vector<2x32xf32> -> vector<2x32xf32>
    %cst_264 = arith.constant dense<0.000000e+00> : vector<30x32xf32>
    %444 = tpu.matmul %16, %443, %cst_264 {dimension_numbers = #tpu.dot_dimension_numbers<[1], [0], [0], [1], [0, 0, 1, 1], [], []>} : vector<30x2xf32>, vector<2x32xf32>, vector<30x32xf32> -> vector<30x32xf32>
    %445 = arith.mulf %441, %444 : vector<30x32xf32>
    %cst_265 = arith.constant 0.000000e+00 : f32
    %446 = vector.broadcast %cst_265 : f32 to vector<30x32xf32>
    %c0_266 = arith.constant 0 : index
    %c0_267 = arith.constant 0 : index
    %c0_268 = arith.constant 0 : index
    %447 = vector.load %arg8[%c0_266, %c0_267, %c0_268] : memref<2x30x1xf32, #tpu.memory_space<vmem>>, vector<1x30x1xf32>
    %448 = vector.shape_cast %447 : vector<1x30x1xf32> to vector<30x1xf32>
    %449 = vector.broadcast %448 : vector<30x1xf32> to vector<30x32xf32>
    %450 = arith.mulf %445, %449 : vector<30x32xf32>
    %cst_269 = arith.constant dense<0.000000e+00> : vector<32x32xf32>
    %451 = tpu.matmul %450, %428, %cst_269 {dimension_numbers = #tpu.dot_dimension_numbers<[0], [0], [1], [1], [0, 1, 1, 1], [], []>} : vector<30x32xf32>, vector<30x32xf32>, vector<32x32xf32> -> vector<32x32xf32>
    %452 = arith.mulf %451, %14 : vector<32x32xf32>
    %cst_270 = arith.constant dense<0.000000e+00> : vector<30x32xf32>
    %453 = tpu.matmul %436, %452, %cst_270 {dimension_numbers = #tpu.dot_dimension_numbers<[1], [0], [0], [1], [0, 0, 1, 1], [], []>} : vector<30x32xf32>, vector<32x32xf32>, vector<30x32xf32> -> vector<30x32xf32>
    %454 = vector.broadcast %448 : vector<30x1xf32> to vector<30x32xf32>
    %455 = arith.mulf %454, %453 : vector<30x32xf32>
    %456 = arith.addf %446, %455 : vector<30x32xf32>
    %c1_271 = arith.constant 1 : index
    %c0_272 = arith.constant 0 : index
    %c0_273 = arith.constant 0 : index
    %457 = vector.load %arg8[%c1_271, %c0_272, %c0_273] : memref<2x30x1xf32, #tpu.memory_space<vmem>>, vector<1x30x1xf32>
    %458 = vector.shape_cast %457 : vector<1x30x1xf32> to vector<30x1xf32>
    %459 = vector.broadcast %458 : vector<30x1xf32> to vector<30x32xf32>
    %460 = arith.mulf %445, %459 : vector<30x32xf32>
    %cst_274 = arith.constant dense<0.000000e+00> : vector<32x32xf32>
    %461 = tpu.matmul %460, %428, %cst_274 {dimension_numbers = #tpu.dot_dimension_numbers<[0], [0], [1], [1], [0, 1, 1, 1], [], []>} : vector<30x32xf32>, vector<30x32xf32>, vector<32x32xf32> -> vector<32x32xf32>
    %462 = arith.mulf %461, %14 : vector<32x32xf32>
    %cst_275 = arith.constant dense<0.000000e+00> : vector<30x32xf32>
    %463 = tpu.matmul %436, %462, %cst_275 {dimension_numbers = #tpu.dot_dimension_numbers<[1], [0], [0], [1], [0, 0, 1, 1], [], []>} : vector<30x32xf32>, vector<32x32xf32>, vector<30x32xf32> -> vector<30x32xf32>
    %464 = vector.broadcast %458 : vector<30x1xf32> to vector<30x32xf32>
    %465 = arith.mulf %464, %463 : vector<30x32xf32>
    %466 = arith.addf %456, %465 : vector<30x32xf32>
    %c3_276 = arith.constant 3 : index
    %c0_277 = arith.constant 0 : index
    %c0_278 = arith.constant 0 : index
    %467 = vector.load %arg14[%c3_276, %c0_277, %c0_278] : memref<4x32x32xf32, #tpu.memory_space<vmem>>, vector<1x32x32xf32>
    %468 = vector.shape_cast %467 : vector<1x32x32xf32> to vector<32x32xf32>
    %cst_279 = arith.constant dense<0.000000e+00> : vector<30x32xf32>
    %469 = tpu.matmul %466, %468, %cst_279 {dimension_numbers = #tpu.dot_dimension_numbers<[1], [0], [0], [1], [0, 0, 1, 1], [], []>} : vector<30x32xf32>, vector<32x32xf32>, vector<30x32xf32> -> vector<30x32xf32>
    %470 = arith.addf %397, %469 : vector<30x32xf32>
    %c3_280 = arith.constant 3 : index
    %c0_281 = arith.constant 0 : index
    %c0_282 = arith.constant 0 : index
    %471 = vector.load %arg15[%c3_280, %c0_281, %c0_282] : memref<4x1x32xf32, #tpu.memory_space<vmem>>, vector<1x1x32xf32>
    %472 = vector.shape_cast %471 : vector<1x1x32xf32> to vector<1x32xf32>
    %473 = vector.broadcast %472 : vector<1x32xf32> to vector<30x32xf32>
    %474 = arith.addf %470, %473 : vector<30x32xf32>
    %c3_283 = arith.constant 3 : index
    %c0_284 = arith.constant 0 : index
    %c0_285 = arith.constant 0 : index
    %475 = vector.load %arg16[%c3_283, %c0_284, %c0_285] : memref<4x1x32xf32, #tpu.memory_space<vmem>>, vector<1x1x32xf32>
    %476 = vector.shape_cast %475 : vector<1x1x32xf32> to vector<1x32xf32>
    %c3_286 = arith.constant 3 : index
    %c0_287 = arith.constant 0 : index
    %c0_288 = arith.constant 0 : index
    %477 = vector.load %arg17[%c3_286, %c0_287, %c0_288] : memref<4x1x32xf32, #tpu.memory_space<vmem>>, vector<1x1x32xf32>
    %478 = vector.shape_cast %477 : vector<1x1x32xf32> to vector<1x32xf32>
    %cst_289 = arith.constant dense<0.000000e+00> : vector<30x1xf32>
    %479 = tpu.matmul %474, %0, %cst_289 {dimension_numbers = #tpu.dot_dimension_numbers<[1], [0], [0], [1], [0, 0, 1, 1], [], []>} : vector<30x32xf32>, vector<32x1xf32>, vector<30x1xf32> -> vector<30x1xf32>
    %cst_290 = arith.constant 3.125000e-02 : f32
    %480 = vector.broadcast %cst_290 : f32 to vector<30x1xf32>
    %481 = arith.mulf %479, %480 : vector<30x1xf32>
    %482 = vector.broadcast %481 : vector<30x1xf32> to vector<30x32xf32>
    %483 = arith.subf %474, %482 : vector<30x32xf32>
    %484 = arith.mulf %483, %483 : vector<30x32xf32>
    %cst_291 = arith.constant dense<0.000000e+00> : vector<30x1xf32>
    %485 = tpu.matmul %484, %0, %cst_291 {dimension_numbers = #tpu.dot_dimension_numbers<[1], [0], [0], [1], [0, 0, 1, 1], [], []>} : vector<30x32xf32>, vector<32x1xf32>, vector<30x1xf32> -> vector<30x1xf32>
    %cst_292 = arith.constant 3.125000e-02 : f32
    %486 = vector.broadcast %cst_292 : f32 to vector<30x1xf32>
    %487 = arith.mulf %485, %486 : vector<30x1xf32>
    %cst_293 = arith.constant 9.99999974E-6 : f32
    %488 = vector.broadcast %cst_293 : f32 to vector<30x1xf32>
    %489 = arith.addf %487, %488 : vector<30x1xf32>
    %490 = math.rsqrt %489 : vector<30x1xf32>
    %491 = vector.broadcast %490 : vector<30x1xf32> to vector<30x32xf32>
    %492 = arith.mulf %483, %491 : vector<30x32xf32>
    %493 = vector.broadcast %476 : vector<1x32xf32> to vector<30x32xf32>
    %494 = arith.mulf %492, %493 : vector<30x32xf32>
    %495 = vector.broadcast %478 : vector<1x32xf32> to vector<30x32xf32>
    %496 = arith.addf %494, %495 : vector<30x32xf32>
    %c3_294 = arith.constant 3 : index
    %c0_295 = arith.constant 0 : index
    %c0_296 = arith.constant 0 : index
    %497 = vector.load %arg18[%c3_294, %c0_295, %c0_296] : memref<4x32x128xf32, #tpu.memory_space<vmem>>, vector<1x32x128xf32>
    %498 = vector.shape_cast %497 : vector<1x32x128xf32> to vector<32x128xf32>
    %cst_297 = arith.constant dense<0.000000e+00> : vector<30x128xf32>
    %499 = tpu.matmul %496, %498, %cst_297 {dimension_numbers = #tpu.dot_dimension_numbers<[1], [0], [0], [1], [0, 0, 1, 1], [], []>} : vector<30x32xf32>, vector<32x128xf32>, vector<30x128xf32> -> vector<30x128xf32>
    %c3_298 = arith.constant 3 : index
    %c0_299 = arith.constant 0 : index
    %c0_300 = arith.constant 0 : index
    %500 = vector.load %arg19[%c3_298, %c0_299, %c0_300] : memref<4x1x128xf32, #tpu.memory_space<vmem>>, vector<1x1x128xf32>
    %501 = vector.shape_cast %500 : vector<1x1x128xf32> to vector<1x128xf32>
    %502 = vector.broadcast %501 : vector<1x128xf32> to vector<30x128xf32>
    %503 = arith.addf %499, %502 : vector<30x128xf32>
    %504 = arith.mulf %503, %503 : vector<30x128xf32>
    %505 = arith.mulf %503, %504 : vector<30x128xf32>
    %cst_301 = arith.constant 4.471500e-02 : f32
    %506 = vector.broadcast %cst_301 : f32 to vector<30x128xf32>
    %507 = arith.mulf %506, %505 : vector<30x128xf32>
    %508 = arith.addf %503, %507 : vector<30x128xf32>
    %cst_302 = arith.constant 0.797884583 : f32
    %509 = vector.broadcast %cst_302 : f32 to vector<30x128xf32>
    %510 = arith.mulf %509, %508 : vector<30x128xf32>
    %511 = math.tanh %510 : vector<30x128xf32>
    %cst_303 = arith.constant 1.000000e+00 : f32
    %512 = vector.broadcast %cst_303 : f32 to vector<30x128xf32>
    %513 = arith.addf %512, %511 : vector<30x128xf32>
    %cst_304 = arith.constant 5.000000e-01 : f32
    %514 = vector.broadcast %cst_304 : f32 to vector<30x128xf32>
    %515 = arith.mulf %514, %513 : vector<30x128xf32>
    %516 = arith.mulf %503, %515 : vector<30x128xf32>
    %c3_305 = arith.constant 3 : index
    %c0_306 = arith.constant 0 : index
    %c0_307 = arith.constant 0 : index
    %517 = vector.load %arg20[%c3_305, %c0_306, %c0_307] : memref<4x128x32xf32, #tpu.memory_space<vmem>>, vector<1x128x32xf32>
    %518 = vector.shape_cast %517 : vector<1x128x32xf32> to vector<128x32xf32>
    %cst_308 = arith.constant dense<0.000000e+00> : vector<30x32xf32>
    %519 = tpu.matmul %516, %518, %cst_308 {dimension_numbers = #tpu.dot_dimension_numbers<[1], [0], [0], [1], [0, 0, 1, 1], [], []>} : vector<30x128xf32>, vector<128x32xf32>, vector<30x32xf32> -> vector<30x32xf32>
    %520 = arith.addf %474, %519 : vector<30x32xf32>
    %c3_309 = arith.constant 3 : index
    %c0_310 = arith.constant 0 : index
    %c0_311 = arith.constant 0 : index
    %521 = vector.load %arg21[%c3_309, %c0_310, %c0_311] : memref<4x1x32xf32, #tpu.memory_space<vmem>>, vector<1x1x32xf32>
    %522 = vector.shape_cast %521 : vector<1x1x32xf32> to vector<1x32xf32>
    %523 = vector.broadcast %522 : vector<1x32xf32> to vector<30x32xf32>
    %524 = arith.addf %520, %523 : vector<30x32xf32>
    %cst_312 = arith.constant dense<0.000000e+00> : vector<2x32xf32>
    %525 = tpu.matmul %15, %524, %cst_312 {dimension_numbers = #tpu.dot_dimension_numbers<[1], [0], [0], [1], [0, 0, 1, 1], [], []>} : vector<2x30xf32>, vector<30x32xf32>, vector<2x32xf32> -> vector<2x32xf32>
    %cst_313 = arith.constant 0.0666666701 : f32
    %526 = vector.broadcast %cst_313 : f32 to vector<2x32xf32>
    %527 = arith.mulf %525, %526 : vector<2x32xf32>
    %cst_314 = arith.constant 0.000000e+00 : f32
    %528 = vector.broadcast %cst_314 : f32 to vector<2x32xf32>
    %529 = arith.cmpf ogt, %527, %528 : vector<2x32xf32>
    %cst_315 = arith.constant 0.000000e+00 : f32
    %530 = vector.broadcast %cst_315 : f32 to vector<2x32xf32>
    %531 = arith.minimumf %527, %530 : vector<2x32xf32>
    %532 = math.exp %531 : vector<2x32xf32>
    %cst_316 = arith.constant 1.000000e+00 : f32
    %533 = vector.broadcast %cst_316 : f32 to vector<2x32xf32>
    %534 = arith.subf %532, %533 : vector<2x32xf32>
    %535 = arith.select %529, %527, %534 : vector<2x32xi1>, vector<2x32xf32>
    %c0_317 = arith.constant 0 : index
    %c0_318 = arith.constant 0 : index
    %536 = vector.load %arg22[%c0_317, %c0_318] : memref<32x4xf32, #tpu.memory_space<vmem>>, vector<32x4xf32>
    %cst_319 = arith.constant dense<0.000000e+00> : vector<2x4xf32>
    %537 = tpu.matmul %535, %536, %cst_319 {dimension_numbers = #tpu.dot_dimension_numbers<[1], [0], [0], [1], [0, 0, 1, 1], [], []>} : vector<2x32xf32>, vector<32x4xf32>, vector<2x4xf32> -> vector<2x4xf32>
    %c0_320 = arith.constant 0 : index
    %c0_321 = arith.constant 0 : index
    %538 = vector.load %arg23[%c0_320, %c0_321] : memref<1x4xf32, #tpu.memory_space<vmem>>, vector<1x4xf32>
    %539 = vector.broadcast %538 : vector<1x4xf32> to vector<2x4xf32>
    %540 = arith.addf %537, %539 : vector<2x4xf32>
    %c0_322 = arith.constant 0 : index
    %c0_323 = arith.constant 0 : index
    %541 = vector.load %arg24[%c0_322, %c0_323] : memref<2x4xf32, #tpu.memory_space<vmem>>, vector<2x4xf32>
    tpu.vector_store %arg24[%c0_322, %c0_323], %540 {strides = array<i32>} : memref<2x4xf32, #tpu.memory_space<vmem>>, vector<2x4xf32>,
    return
  }
  func.func @transform_0(%arg0: i32) -> (i32, i32) {
    %c0_i32 = arith.constant 0 : i32
    %c0_i32_0 = arith.constant 0 : i32
    %c0_i32_1 = arith.constant 0 : i32
    return %c0_i32, %c0_i32_0 : i32, i32
  }
  func.func @transform_1(%arg0: i32) -> (i32, i32) {
    %c0_i32 = arith.constant 0 : i32
    %c0_i32_0 = arith.constant 0 : i32
    %c0_i32_1 = arith.constant 0 : i32
    return %c0_i32, %c0_i32_0 : i32, i32
  }
  func.func @transform_2(%arg0: i32) -> (i32, i32) {
    %c0_i32 = arith.constant 0 : i32
    %c0_i32_0 = arith.constant 0 : i32
    %c0_i32_1 = arith.constant 0 : i32
    return %c0_i32, %c0_i32_0 : i32, i32
  }
  func.func @transform_3(%arg0: i32) -> (i32, i32) {
    %c0_i32 = arith.constant 0 : i32
    %c0_i32_0 = arith.constant 0 : i32
    %c0_i32_1 = arith.constant 0 : i32
    return %c0_i32, %c0_i32_0 : i32, i32
  }
  func.func @transform_4(%arg0: i32) -> (i32, i32) {
    %c0_i32 = arith.constant 0 : i32
    %c0_i32_0 = arith.constant 0 : i32
    %c0_i32_1 = arith.constant 0 : i32
    return %c0_i32, %c0_i32_0 : i32, i32
  }
  func.func @transform_5(%arg0: i32) -> (i32, i32) {
    %c0_i32 = arith.constant 0 : i32
    %c0_i32_0 = arith.constant 0 : i32
    %c0_i32_1 = arith.constant 0 : i32
    return %c0_i32, %c0_i32_0 : i32, i32
  }
  func.func @transform_6(%arg0: i32) -> (i32, i32) {
    %c0_i32 = arith.constant 0 : i32
    %c0_i32_0 = arith.constant 0 : i32
    %c0_i32_1 = arith.constant 0 : i32
    return %c0_i32, %c0_i32_0 : i32, i32
  }
  func.func @transform_7(%arg0: i32) -> (i32, i32, i32) {
    %c0_i32 = arith.constant 0 : i32
    %c0_i32_0 = arith.constant 0 : i32
    %c0_i32_1 = arith.constant 0 : i32
    %c0_i32_2 = arith.constant 0 : i32
    return %c0_i32, %c0_i32_0, %c0_i32_1 : i32, i32, i32
  }
  func.func @transform_8(%arg0: i32) -> (i32, i32, i32) {
    %c0_i32 = arith.constant 0 : i32
    %c0_i32_0 = arith.constant 0 : i32
    %c0_i32_1 = arith.constant 0 : i32
    %c0_i32_2 = arith.constant 0 : i32
    return %c0_i32, %c0_i32_0, %c0_i32_1 : i32, i32, i32
  }
  func.func @transform_9(%arg0: i32) -> (i32, i32, i32) {
    %c0_i32 = arith.constant 0 : i32
    %c0_i32_0 = arith.constant 0 : i32
    %c0_i32_1 = arith.constant 0 : i32
    %c0_i32_2 = arith.constant 0 : i32
    return %c0_i32, %c0_i32_0, %c0_i32_1 : i32, i32, i32
  }
  func.func @transform_10(%arg0: i32) -> (i32, i32, i32) {
    %c0_i32 = arith.constant 0 : i32
    %c0_i32_0 = arith.constant 0 : i32
    %c0_i32_1 = arith.constant 0 : i32
    %c0_i32_2 = arith.constant 0 : i32
    return %c0_i32, %c0_i32_0, %c0_i32_1 : i32, i32, i32
  }
  func.func @transform_11(%arg0: i32) -> (i32, i32, i32) {
    %c0_i32 = arith.constant 0 : i32
    %c0_i32_0 = arith.constant 0 : i32
    %c0_i32_1 = arith.constant 0 : i32
    %c0_i32_2 = arith.constant 0 : i32
    return %c0_i32, %c0_i32_0, %c0_i32_1 : i32, i32, i32
  }
  func.func @transform_12(%arg0: i32) -> (i32, i32, i32) {
    %c0_i32 = arith.constant 0 : i32
    %c0_i32_0 = arith.constant 0 : i32
    %c0_i32_1 = arith.constant 0 : i32
    %c0_i32_2 = arith.constant 0 : i32
    return %c0_i32, %c0_i32_0, %c0_i32_1 : i32, i32, i32
  }
  func.func @transform_13(%arg0: i32) -> (i32, i32, i32) {
    %c0_i32 = arith.constant 0 : i32
    %c0_i32_0 = arith.constant 0 : i32
    %c0_i32_1 = arith.constant 0 : i32
    %c0_i32_2 = arith.constant 0 : i32
    return %c0_i32, %c0_i32_0, %c0_i32_1 : i32, i32, i32
  }
  func.func @transform_14(%arg0: i32) -> (i32, i32, i32) {
    %c0_i32 = arith.constant 0 : i32
    %c0_i32_0 = arith.constant 0 : i32
    %c0_i32_1 = arith.constant 0 : i32
    %c0_i32_2 = arith.constant 0 : i32
    return %c0_i32, %c0_i32_0, %c0_i32_1 : i32, i32, i32
  }
  func.func @transform_15(%arg0: i32) -> (i32, i32, i32) {
    %c0_i32 = arith.constant 0 : i32
    %c0_i32_0 = arith.constant 0 : i32
    %c0_i32_1 = arith.constant 0 : i32
    %c0_i32_2 = arith.constant 0 : i32
    return %c0_i32, %c0_i32_0, %c0_i32_1 : i32, i32, i32
  }
  func.func @transform_16(%arg0: i32) -> (i32, i32, i32) {
    %c0_i32 = arith.constant 0 : i32
    %c0_i32_0 = arith.constant 0 : i32
    %c0_i32_1 = arith.constant 0 : i32
    %c0_i32_2 = arith.constant 0 : i32
    return %c0_i32, %c0_i32_0, %c0_i32_1 : i32, i32, i32
  }
  func.func @transform_17(%arg0: i32) -> (i32, i32, i32) {
    %c0_i32 = arith.constant 0 : i32
    %c0_i32_0 = arith.constant 0 : i32
    %c0_i32_1 = arith.constant 0 : i32
    %c0_i32_2 = arith.constant 0 : i32
    return %c0_i32, %c0_i32_0, %c0_i32_1 : i32, i32, i32
  }
  func.func @transform_18(%arg0: i32) -> (i32, i32, i32) {
    %c0_i32 = arith.constant 0 : i32
    %c0_i32_0 = arith.constant 0 : i32
    %c0_i32_1 = arith.constant 0 : i32
    %c0_i32_2 = arith.constant 0 : i32
    return %c0_i32, %c0_i32_0, %c0_i32_1 : i32, i32, i32
  }
  func.func @transform_19(%arg0: i32) -> (i32, i32, i32) {
    %c0_i32 = arith.constant 0 : i32
    %c0_i32_0 = arith.constant 0 : i32
    %c0_i32_1 = arith.constant 0 : i32
    %c0_i32_2 = arith.constant 0 : i32
    return %c0_i32, %c0_i32_0, %c0_i32_1 : i32, i32, i32
  }
  func.func @transform_20(%arg0: i32) -> (i32, i32, i32) {
    %c0_i32 = arith.constant 0 : i32
    %c0_i32_0 = arith.constant 0 : i32
    %c0_i32_1 = arith.constant 0 : i32
    %c0_i32_2 = arith.constant 0 : i32
    return %c0_i32, %c0_i32_0, %c0_i32_1 : i32, i32, i32
  }
  func.func @transform_21(%arg0: i32) -> (i32, i32) {
    %c0_i32 = arith.constant 0 : i32
    %c0_i32_0 = arith.constant 0 : i32
    %c0_i32_1 = arith.constant 0 : i32
    return %c0_i32, %c0_i32_0 : i32, i32
  }
  func.func @transform_22(%arg0: i32) -> (i32, i32) {
    %c0_i32 = arith.constant 0 : i32
    %c0_i32_0 = arith.constant 0 : i32
    %c0_i32_1 = arith.constant 0 : i32
    return %c0_i32, %c0_i32_0 : i32, i32
  }
  func.func @transform_23(%arg0: i32) -> (i32, i32) {
    %c0_i32 = arith.constant 0 : i32
    %c0_i32_0 = arith.constant 0 : i32
    %c0_i32_1 = arith.constant 0 : i32
    return %c0_i32, %c0_i32_0 : i32, i32
  }
}

</mosaic_0001>

<bundles_post_ra>
// kernel: tile.19
= control target key start
LH: loop header
LB: loop body
LE: loop exit
PB: predicated region body
PF: predicated region fallthrough
CT: control target
= control target key end

     0   :  { %vm3_vm0 = vcmask 261120   ;;  %s60_s0 = inlined_call_operand.vmem [shape: f32[2,15,32], index: 0, kind: input, shape index: {}]   ;;  %s61_s1 = inlined_call_operand.vmem [shape: f32[30,32], index: 1, kind: output, shape index: {}]  }
   0x1   :  { %v2_v0 = vld [vmem:[%s60_s0] sm:$0xff]   ;;  %v20_v1 = vld [vmem:[%s60_s0 + $0x8] sm:$0x7f]   ;;  %v22_v2 = vld [vmem:[%s60_s0 + $0x10] sm:$0xff]  }
   0x2   :  { %4 = vst.msk [vmem:[%s61_s1] sm:$0xff] %vm3_vm0, %v2_v0   ;;  %21 = vst.msk [vmem:[%s61_s1 + $0x8] sm:$0x7f] %vm3_vm0, %v20_v1   ;;  %v24_v3 = vld [vmem:[%s60_s0 + $0x18] sm:$0x7f]  }
   0x3   :  { %23 = vst.msk [vmem:[%s61_s1 + $0xf] sm:$0xff] %vm3_vm0, %v22_v2   ;;  %25 = vst.msk [vmem:[%s61_s1 + $0x17] sm:$0x7f] %vm3_vm0, %v24_v3  }

// kernel: biot_pretrain_forward.1
= control target key start
LH: loop header
LB: loop body
LE: loop exit
PB: predicated region body
PF: predicated region fallthrough
CT: control target
= control target key end

     0   :  { %s13700_s0 = inlined_call_operand.vmem [shape: f32[30,128], index: 0, kind: input, shape index: {}]   ;;  %s13701_s1 = inlined_call_operand.vmem [shape: f32[128,256], index: 1, kind: input, shape index: {}]   ;;  %s13702_s2 = inlined_call_operand.vmem [shape: f32[128,32], index: 2, kind: input, shape index: {}]   ;;  %s13703_s3 = inlined_call_operand.vmem [shape: f32[30,32], index: 3, kind: input, shape index: {}]   ;;  %s13704_s4 = inlined_call_operand.vmem [shape: f32[32,32], index: 4, kind: input, shape index: {}]   ;;  %s13705_s5 = inlined_call_operand.vmem [shape: f32[2,30], index: 5, kind: input, shape index: {}]   ;;  %s13706_s6 = inlined_call_operand.vmem [shape: f32[30,2], index: 6, kind: input, shape index: {}]   ;;  %s13707_s7 = inlined_call_operand.vmem [shape: f32[2,30,1], index: 7, kind: input, shape index: {}]   ;;  %s13708_s8 = inlined_call_operand.vmem [shape: f32[4,1,32], index: 8, kind: input, shape index: {}]   ;;  %s13709_s9 = inlined_call_operand.vmem [shape: f32[4,1,32], index: 9, kind: input, shape index: {}]   ;;  %s13710_s10 = inlined_call_operand.vmem [shape: f32[4,32,32], index: 10, kind: input, shape index: {}]   ;;  %s13711_s11 = inlined_call_operand.vmem [shape: f32[4,32,32], index: 11, kind: input, shape index: {}]   ;;  %s13712_s12 = inlined_call_operand.vmem [shape: f32[4,32,32], index: 12, kind: input, shape index: {}]   ;;  %s13713_s13 = inlined_call_operand.vmem [shape: f32[4,32,32], index: 13, kind: input, shape index: {}]   ;;  %s13714_s14 = inlined_call_operand.vmem [shape: f32[4,1,32], index: 14, kind: input, shape index: {}]   ;;  %s13715_s15 = inlined_call_operand.vmem [shape: f32[4,1,32], index: 15, kind: input, shape index: {}]   ;;  %s13716_s16 = inlined_call_operand.vmem [shape: f32[4,1,32], index: 16, kind: input, shape index: {}]   ;;  %s13717_s17 = inlined_call_operand.vmem [shape: f32[4,32,128], index: 17, kind: input, shape index: {}]   ;;  %s13718_s18 = inlined_call_operand.vmem [shape: f32[4,1,128], index: 18, kind: input, shape index: {}]   ;;  %s13719_s19 = inlined_call_operand.vmem [shape: f32[4,128,32], index: 19, kind: input, shape index: {}]   ;;  %s13720_s20 = inlined_call_operand.vmem [shape: f32[4,1,32], index: 20, kind: input, shape index: {}]   ;;  %s13721_s21 = inlined_call_operand.vmem [shape: f32[32,4], index: 21, kind: input, shape index: {}]   ;;  %s13722_s22 = inlined_call_operand.vmem [shape: f32[1,4], index: 22, kind: input, shape index: {}]   ;;  %s13723_s23 = inlined_call_operand.hbm [shape: f32[2,4], index: 23, kind: output, shape index: {}]  }
   0x1   :  { %13732 = sst [smem:[#allocation5_spill]] %s13700_s0 }
   0x2   :  { %13733 = sst [smem:[#allocation6_spill]] %s13701_s1 }
   0x3   :  { %13734 = sst [smem:[#allocation7_spill]] %s13702_s2 }
   0x4   :  { %13735 = sst [smem:[#allocation8_spill]] %s13703_s3 }
   0x5   :  { %13736 = sst [smem:[#allocation9_spill]] %s13704_s4 }
   0x6   :  { %13737 = sst [smem:[#allocation10_spill]] %s13705_s5 }
   0x7   :  { %13738 = sst [smem:[#allocation11_spill]] %s13706_s6 }
   0x8   :  { %13739 = sst [smem:[#allocation12_spill]] %s13707_s7 }
   0x9   :  { %s13740_s24 = sld [smem:[#allocation6_spill]]  ;;  %v11714_v7 = vmov 0.0   ;;  %s13741_s3 = sld [smem:[#allocation7_spill]] }
   0xa   :  { %175 = vmatprep.mubr.f32.mxu0 %v11714_v7 }
   0xf   :  { %v80_v0 = vld [vmem:[%s13740_s24 + $0x8] sm:$0xff]  ;;  %v82_v1 = vld [vmem:[%s13740_s24 + $0x18] sm:$0xff]  ;;  %v79_v2 = vld [vmem:[%s13740_s24] sm:$0xff] }
  0x10   :  { %v10811_v3 = vpack.c.bf16 %v82_v1, %v80_v0  ;;  %v81_v4 = vld [vmem:[%s13740_s24 + $0x10] sm:$0xff]  ;;  %v84_v5 = vld [vmem:[%s13740_s24 + $0x28] sm:$0xff]  ;;  %v86_v6 = vld [vmem:[%s13740_s24 + $0x38] sm:$0xff] }
  0x11   :  { %v10813_v8 = vpack.c.bf16 %v81_v4, %v79_v2  ;;  %v10815_v9 = vpack.c.bf16 %v86_v6, %v84_v5  ;;  %v83_v10 = vld [vmem:[%s13740_s24 + $0x20] sm:$0xff]  ;;  %v85_v11 = vld [vmem:[%s13740_s24 + $0x30] sm:$0xff]  ;;  %v88_v12 = vld [vmem:[%s13740_s24 + $0x48] sm:$0xff] }
  0x12   :  { %10812 = vmatprep.subr.bf16.mxu0 %v10811_v3  ;;  %v90_v13 = vld [vmem:[%s13740_s24 + $0x58] sm:$0xff]  ;;  %v10817_v14 = vpack.c.bf16 %v85_v11, %v83_v10  ;;  %v87_v16 = vld [vmem:[%s13740_s24 + $0x40] sm:$0xff]  ;;  %v89_v17 = vld [vmem:[%s13740_s24 + $0x50] sm:$0xff] }
  0x13   :  { %10814 = vmatpush1.bf16.msra.mxu0 %v10813_v8  ;;  %v10819_v15 = vpack.c.bf16 %v90_v13, %v88_v12  ;;  %v92_v18 = vld [vmem:[%s13740_s24 + $0x68] sm:$0xff]  ;;  %v94_v19 = vld [vmem:[%s13740_s24 + $0x78] sm:$0xff]  ;;  %v10821_v20 = vpack.c.bf16 %v89_v17, %v87_v16  ;;  %v91_v22 = vld [vmem:[%s13740_s24 + $0x60] sm:$0xff] }
  0x14   :  { %10816 = vmatprep.subr.bf16.mxu0 %v10815_v9  ;;  %v10823_v21 = vpack.c.bf16 %v94_v19, %v92_v18  ;;  %v93_v23 = vld [vmem:[%s13740_s24 + $0x70] sm:$0xff]  ;;  %v96_v24 = vld [vmem:[%s13740_s24 + $0x88] sm:$0xff]  ;;  %v98_v25 = vld [vmem:[%s13740_s24 + $0x98] sm:$0xff] }
  0x15   :  { %v95_v26 = vld [vmem:[%s13740_s24 + $0x80] sm:$0xff]  ;;  %v10825_v27 = vpack.c.bf16 %v93_v23, %v91_v22  ;;  %v241_v29 = vld [vmem:[%s13741_s3 + $0x8] sm:$0xff]  ;;  %v242_v30 = vld [vmem:[%s13741_s3 + $0x10] sm:$0xff]  ;;  %v10827_v31 = vpack.c.bf16 %v98_v25, %v96_v24 }
  0x16   :  { %v240_v28 = vld [vmem:[%s13741_s3] sm:$0xff]  ;;  %v97_v32 = vld [vmem:[%s13740_s24 + $0x90] sm:$0xff]  ;;  %v243_v34 = vld [vmem:[%s13741_s3 + $0x18] sm:$0xff] }
  0x17   :  { %10818 = vmatpush1.bf16.msra.mxu0 %v10817_v14  ;;  %v10843_v33 = vpack.c.bf16 %v241_v29, %v240_v28 }
  0x18   :  { %10820 = vmatprep.subr.bf16.mxu0 %v10819_v15 }
  0x1b   :  { %10822 = vmatpush1.bf16.msra.mxu0 %v10821_v20 }
  0x1c   :  { %10824 = vmatprep.subr.bf16.mxu0 %v10823_v21 }
  0x1d   :  { %28 = vsyncpa [#allocation3], 0  ;;  %v100_v35 = vld [vmem:[%s13740_s24 + $0xa8] sm:$0xff]  ;;  %v102_v36 = vld [vmem:[%s13740_s24 + $0xb8] sm:$0xff]  ;;  %v10847_v37 = vpack.c.bf16 %v243_v34, %v242_v30  ;;  %10844 = vmatprep.subr.bf16.mxu1 %v10843_v33  ;;  %v10829_v38 = vpack.c.bf16 %v97_v32, %v95_v26  ;;  %s13742_s6 = sld [smem:[#allocation5_spill]]  ;;  %vm356_vm8 = vcmask 261120  }
  0x1e   :  { %10846 = vmatpush3.bf16.msra.mxu1 %v10843_v33  ;;  %v10831_v39 = vpack.c.bf16 %v102_v36, %v100_v35  ;;  %v99_v40 = vld [vmem:[%s13740_s24 + $0xa0] sm:$0xff]  ;;  %v101_v41 = vld [vmem:[%s13740_s24 + $0xb0] sm:$0xff]  ;;  %v104_v42 = vld [vmem:[%s13740_s24 + $0xc8] sm:$0xff]  ;;  %v11715_v14 = vmov 1.0|1.0   ;;  %s13744_s27 = sld [smem:[#allocation12_spill]] }
  0x1f   :  { %10826 = vmatpush1.bf16.msra.mxu0 %v10825_v27  ;;  %10848 = vmatprep.subr.bf16.mxu1 %v10847_v37  ;;  %v106_v43 = vld [vmem:[%s13740_s24 + $0xd8] sm:$0xff]  ;;  %v10833_v44 = vpack.c.bf16 %v101_v41, %v99_v40  ;;  %v103_v46 = vld [vmem:[%s13740_s24 + $0xc0] sm:$0xff]  ;;  %v105_v47 = vld [vmem:[%s13740_s24 + $0xd0] sm:$0xff]  ;;  %s13745_s2 = sld [smem:[#allocation9_spill]]  ;;  %vm11718_vm9 = vmmov 0   ;;  %vm927_vm10 = vcmask 259072  }
  0x20   :  { %10828 = vmatprep.subr.bf16.mxu0 %v10827_v31  ;;  %v10835_v45 = vpack.c.bf16 %v106_v43, %v104_v42  ;;  %v108_v48 = vld [vmem:[%s13740_s24 + $0xe8] sm:$0xff]  ;;  %v110_v49 = vld [vmem:[%s13740_s24 + $0xf8] sm:$0xff]  ;;  %v10837_v50 = vpack.c.bf16 %v105_v47, %v103_v46  ;;  %v107_v52 = vld [vmem:[%s13740_s24 + $0xe0] sm:$0xff]  ;;  %vm1077_vm11 = vcmask 1045504   ;;  %vm11719_vm12 = vmmov 1   ;;  %s13748_s30 = sld [smem:[#allocation10_spill]] }
  0x21   :  { %v10839_v51 = vpack.c.bf16 %v110_v49, %v108_v48  ;;  %v109_v53 = vld [vmem:[%s13740_s24 + $0xf0] sm:$0xff]  ;;  %v244_v59 = vld [vmem:[%s13741_s3 + $0x20] sm:$0xff]  ;;  %v245_v60 = vld [vmem:[%s13741_s3 + $0x28] sm:$0xff]  ;;  %s13743_s24 = sld [smem:[#allocation8_spill]]  ;;  %vm1073_vm14 = vcmask 244736   ;;  %s13749_s5 = sld [smem:[#allocation11_spill]] }
  0x22   :  { %10850 = vmatpush3.bf16.msra.mxu1 %v10847_v37  ;;  %v10841_v54 = vpack.c.bf16 %v109_v53, %v107_v52  ;;  %v10851_v61 = vpack.c.bf16 %v245_v60, %v244_v59  ;;  %v246_v62 = vld [vmem:[%s13741_s3 + $0x30] sm:$0xff]  ;;  %v247_v63 = vld [vmem:[%s13741_s3 + $0x38] sm:$0xff]  ;;  %v248_v1 = vld [vmem:[%s13741_s3 + $0x40] sm:$0xff]  ;;  %vm1152_vm15 = vcmask 15360  }
  0x23   :  { %10830 = vmatpush1.bf16.msra.mxu0 %v10829_v38  ;;  %v75_v55 = vld [vmem:[%s13742_s6] sm:$0xff]  ;;  %v76_v56 = vld [vmem:[%s13742_s6 + $0x8] sm:$0xff]  ;;  %v77_v57 = vld [vmem:[%s13742_s6 + $0x10] sm:$0xff]  ;;  %v10855_v0 = vpack.c.bf16 %v247_v63, %v246_v62 }
  0x24   :  { %10832 = vmatprep.subr.bf16.mxu0 %v10831_v39  ;;  %v78_v58 = vld [vmem:[%s13742_s6 + $0x18] sm:$0x3f]  ;;  %10852 = vmatprep.subr.bf16.mxu1 %v10851_v61  ;;  %v249_v2 = vld [vmem:[%s13741_s3 + $0x48] sm:$0xff]  ;;  %v250_v4 = vld [vmem:[%s13741_s3 + $0x50] sm:$0xff] }
  0x25   :  { %v10859_v3 = vpack.c.bf16 %v249_v2, %v248_v1  ;;  %v251_v5 = vld [vmem:[%s13741_s3 + $0x58] sm:$0xff]  ;;  %v252_v8 = vld [vmem:[%s13741_s3 + $0x60] sm:$0xff]  ;;  %v253_v9 = vld [vmem:[%s13741_s3 + $0x68] sm:$0xff] }
  0x26   :  { %10854 = vmatpush3.bf16.msra.mxu1 %v10851_v61  ;;  %v10863_v6 = vpack.c.bf16 %v251_v5, %v250_v4  ;;  %v10867_v10 = vpack.c.bf16 %v253_v9, %v252_v8  ;;  %v254_v11 = vld [vmem:[%s13741_s3 + $0x70] sm:$0xff]  ;;  %v255_v12 = vld [vmem:[%s13741_s3 + $0x78] sm:$0xff]  ;;  %vm12214_vm13 = vmpackc.low %vm1077_vm11, %vm11719_vm12 }
  0x27   :  { %10834 = vmatpush1.bf16.msra.mxu0 %v10833_v44  ;;  %10856 = vmatprep.subr.bf16.mxu1 %v10855_v0  ;;  %v10871_v13 = vpack.c.bf16 %v255_v12, %v254_v11  ;;  %v258_v61 = vld [vmem:[%s13743_s24 + $0x10] sm:$0xff]  ;;  %v259_v62 = vld [vmem:[%s13743_s24 + $0x18] sm:$0x3f] }
  0x28   :  { %10836 = vmatprep.subr.bf16.mxu0 %v10835_v45 }
  0x2a   :  { %10858 = vmatpush3.bf16.msra.mxu1 %v10855_v0 }
  0x2b   :  { %10838 = vmatpush1.bf16.msra.mxu0 %v10837_v50  ;;  %10860 = vmatprep.subr.bf16.mxu1 %v10859_v3 }
  0x2c   :  { %10840 = vmatprep.subr.bf16.mxu0 %v10839_v51 }
  0x2e   :  { %10862 = vmatpush3.bf16.msra.mxu1 %v10859_v3  ;;  %v11716_v3 = vmov 0  }
  0x2f   :  { %10842 = vmatpush1.bf16.msra.mxu0 %v10841_v54  ;;  %10864 = vmatprep.subr.bf16.mxu1 %v10863_v6 }
  0x30   :  { %10875 = vmatprep.subr.bf16.mxu0 %v11715_v14  ;;  %11451 = vset.pattern.permute.xlu0 %v11716_v3 }
  0x31   :  { %11452 = vset.pattern.permute.xlu1 %v11716_v3  ;;  %v8759_v3 = vld [vmem:[%s13744_s27 + $0x30] sm:$0xff] }
  0x32   :  { %176 = vmatmul.mubr.f32.vlgmr.msra.gmra.mrb[0].mxu0 %v75_v55  ;;  %10866 = vmatpush3.bf16.msra.mxu1 %v10863_v6  ;;  %v256_v55 = vld [vmem:[%s13743_s24] sm:$0xff] }
  0x33   :  { %181 = vmatprep.mubr.f32.mxu0 %v11714_v7  ;;  %10868 = vmatprep.subr.bf16.mxu1 %v10867_v10 }
  0x34   :  { %10876 = vmatpush3.bf16.msra.mxu0 %v11715_v14 }
  0x35   :  { %10877 = vmatprep.subr.bf16.mxu0 %v11715_v14 }
  0x36   :  { %182 = vmatmul.mubr.f32.gmra.mrb[2].mxu0 %v76_v56  ;;  %10870 = vmatpush3.bf16.msra.mxu1 %v10867_v10  ;;  %v257_v56 = vld [vmem:[%s13743_s24 + $0x8] sm:$0xff] }
  0x37   :  { %187 = vmatprep.mubr.f32.mxu0 %v11714_v7  ;;  %10872 = vmatprep.subr.bf16.mxu1 %v10871_v13 }
  0x38   :  { %10878 = vmatpush3.bf16.msra.mxu0 %v11715_v14 }
  0x39   :  { %10879 = vmatprep.subr.bf16.mxu0 %v11715_v14 }
  0x3a   :  { %188 = vmatmul.mubr.f32.gmra.mrb[4].mxu0 %v77_v57  ;;  %10874 = vmatpush3.bf16.msra.mxu1 %v10871_v13 }
  0x3b   :  { %193 = vmatprep.mubr.f32.mxu0 %v11714_v7 }
  0x3e   :  { %194 = vmatmul.mubr.f32.gmra.mrb[6].mxu0 %v78_v58 }
 0x105   :  { %v177_v15 = vpop.f32.mrb[0].mxu0 }
 0x106   :  { %v200_v16 = vmul.f32 %v177_v15, %v177_v15  ;;  %v179_v17 = vpop.f32.mrb[1].mxu0 }
 0x107   :  { %v204_v18 = vmul.f32 %v179_v17, %v179_v17 }
 0x109   :  { %v208_v19 = vadd.f32 %v204_v18, %v200_v16  ;;  %v183_v20 = vpop.f32.mrb[2].mxu0 }
 0x10a   :  { %v201_v21 = vmul.f32 %v183_v20, %v183_v20  ;;  %v185_v22 = vpop.f32.mrb[3].mxu0 }
 0x10b   :  { %v205_v23 = vmul.f32 %v185_v22, %v185_v22  ;;  %11453 = vrsqrt.f32 %v208_v19  ;;  %vm214_vm0 = vcmp.eq.f32.partialorder %v208_v19, inf  ;;  %v217_v37 = vand.u32 2147483648, %v208_v19 }
 0x10c   :  { %vm216_vm1 = vcmp.eq.f32.partialorder %v208_v19, 0.0 }
 0x10d   :  { %v209_v24 = vadd.f32 %v205_v23, %v201_v21  ;;  %v189_v25 = vpop.f32.mrb[4].mxu0 }
 0x10e   :  { %v202_v26 = vmul.f32 %v189_v25, %v189_v25  ;;  %v191_v27 = vpop.f32.mrb[5].mxu0 }
 0x10f   :  { %v206_v28 = vmul.f32 %v191_v27, %v191_v27  ;;  %11455 = vrsqrt.f32 %v209_v24  ;;  %vm221_vm2 = vcmp.eq.f32.partialorder %v209_v24, inf  ;;  %v224_v42 = vand.u32 2147483648, %v209_v24 }
 0x110   :  { %vm223_vm3 = vcmp.eq.f32.partialorder %v209_v24, 0.0 }
 0x111   :  { %v210_v29 = vadd.f32 %v206_v28, %v202_v26  ;;  %v195_v30 = vpop.f32.mrb[6].mxu0 }
 0x112   :  { %v203_v31 = vmul.f32 %v195_v30, %v195_v30  ;;  %v197_v32 = vpop.f32.mrb[7].mxu0 }
 0x113   :  { %v207_v33 = vmul.f32 %v197_v32, %v197_v32  ;;  %11457 = vrsqrt.f32 %v210_v29  ;;  %vm228_vm4 = vcmp.eq.f32.partialorder %v210_v29, inf  ;;  %v231_v47 = vand.u32 2147483648, %v210_v29 }
 0x114   :  { %vm230_vm5 = vcmp.eq.f32.partialorder %v210_v29, 0.0 }
 0x115   :  { %v11454_v34 = vpop.eup %11453  ;;  %v211_v35 = vadd.f32 %v207_v33, %v203_v31 }
 0x116   :  { %v213_v36 = vmul.f32 %v11454_v34, %v208_v19 }
 0x117   :  { %11459 = vrsqrt.f32 %v211_v35  ;;  %vm235_vm6 = vcmp.eq.f32.partialorder %v211_v35, inf  ;;  %v238_v52 = vand.u32 2147483648, %v211_v35  ;;  %vm237_vm7 = vcmp.eq.f32.partialorder %v211_v35, 0.0 }
 0x118   :  { %v215_v38 = vsel %vm214_vm0, %v208_v19, %v213_v36  ;;  %vm1165_vm0 = vcmask 1041408  }
 0x119   :  { %v11456_v39 = vpop.eup %11455  ;;  %v218_v40 = vsel %vm216_vm1, %v217_v37, %v215_v38  ;;  %v639_v38 = vld [vmem:[%s13710_s10] sm:$0xff] }
 0x11a   :  { %9771 = vmatprep.mubr.f32.mxu1 %v218_v40  ;;  %v220_v41 = vmul.f32 %v11456_v39, %v209_v24  ;;  %v640_v39 = vld [vmem:[%s13710_s10 + $0x8] sm:$0xff]  ;;  %v740_v40 = vld [vmem:[%s13711_s11] sm:$0xff] }
 0x11c   :  { %v222_v43 = vsel %vm221_vm2, %v209_v24, %v220_v41  ;;  %vm8699_vm2 = vcmask 25600  }
 0x11d   :  { %v11458_v44 = vpop.eup %11457  ;;  %v225_v45 = vsel %vm223_vm3, %v224_v42, %v222_v43  ;;  %v10883_v42 = vpack.c.bf16 %v640_v39, %v639_v38  ;;  %v741_v43 = vld [vmem:[%s13711_s11 + $0x8] sm:$0xff] }
 0x11e   :  { %9772 = vmatmul.mubr.f32.vlgmr.msra.gmra.mrb[0].mxu1 %v225_v45  ;;  %v227_v46 = vmul.f32 %v11458_v44, %v210_v29  ;;  %v10891_v45 = vpack.c.bf16 %v741_v43, %v740_v40 }
 0x11f   :  { %10884 = vmatprep.subr.bf16.mxu1 %v10883_v42 }
 0x120   :  { %v229_v48 = vsel %vm228_vm4, %v210_v29, %v227_v46  ;;  %10886 = vmatpush3.bf16.msra.mxu1 %v10883_v42  ;;  %v641_v46 = vld [vmem:[%s13710_s10 + $0x10] sm:$0xff] }
 0x121   :  { %v11460_v49 = vpop.eup %11459  ;;  %v232_v50 = vsel %vm230_vm5, %v231_v47, %v229_v48  ;;  %v642_v47 = vld [vmem:[%s13710_s10 + $0x18] sm:$0xff]  ;;  %v742_v48 = vld [vmem:[%s13711_s11 + $0x10] sm:$0xff] }
 0x122   :  { %9774 = vmatprep.mubr.f32.mxu1 %v232_v50  ;;  %v234_v51 = vmul.f32 %v11460_v49, %v211_v35  ;;  %v10887_v49 = vpack.c.bf16 %v642_v47, %v641_v46  ;;  %v743_v50 = vld [vmem:[%s13711_s11 + $0x18] sm:$0xff] }
 0x124   :  { %v236_v53 = vsel %vm235_vm6, %v211_v35, %v234_v51  ;;  %v10895_v51 = vpack.c.bf16 %v743_v50, %v742_v48  ;;  %10888 = vmatprep.subr.bf16.mxu1 %v10887_v49 }
 0x125   :  { %v239_v54 = vsel %vm237_vm7, %v238_v52, %v236_v53  ;;  %10890 = vmatpush3.bf16.msra.mxu1 %v10887_v49 }
 0x126   :  { %9775 = vmatmul.mubr.f32.gmra.mrb[2].mxu1 %v239_v54  ;;  %v1259_v54 = vld [vmem:[%s13744_s27 + $0x8] sm:$0xff] }
 0x1f1   :  { %v9773_v57 = vpop.f32.mrb[0].mxu1 }
 0x1f2   :  { %v326_v58 = vpop.f32.mrb[1].mxu1  ;;  %v12014_v60 = vadd.f32 %v9773_v57, %v257_v56  ;;  %v829_v56 = vld [vmem:[%s13712_s12] sm:$0xff]  ;;  %v830_v57 = vld [vmem:[%s13712_s12 + $0x8] sm:$0xff] }
 0x1f3   :  { %v12012_v59 = vadd.f32 %v326_v58, %v256_v55  ;;  %v1258_v55 = vld [vmem:[%s13744_s27] sm:$0xff]  ;;  %v10899_v58 = vpack.c.bf16 %v830_v57, %v829_v56 }
 0x1f5   :  { %9785 = vmatprep.mubr.msk.f32.mxu0 %vm356_vm8, %v12012_v59  ;;  %10900 = vmatprep.subr.bf16.mxu1 %v10899_v58 }
 0x1f6   :  { %9786 = vmatmul.mubr.msk.f32.vlgmr.msra.gmra.mrb[8].mxu0 %vm356_vm8, %v12014_v60 }
 0x1f7   :  { %10880 = vmatpush3.bf16.msra.mxu0 %v11715_v14 }
 0x1f8   :  { %10881 = vmatprep.subr.bf16.mxu0 %v11715_v14 }
 0x1f9   :  { %v9776_v63 = vpop.f32.mrb[2].mxu1 }
 0x1fa   :  { %v336_v0 = vpop.f32.mrb[3].mxu1  ;;  %v12031_v2 = vadd.f32 %v9776_v63, %v259_v62  ;;  %v1260_v62 = vld [vmem:[%s13744_s27 + $0x10] sm:$0xff]  ;;  %v8758_v63 = vld [vmem:[%s13744_s27 + $0x28] sm:$0xff] }
 0x1fb   :  { %v12028_v1 = vadd.f32 %v336_v0, %v258_v61  ;;  %10882 = vmatpush3.bf16.msra.mxu0 %v11715_v14  ;;  %v1261_v61 = vld [vmem:[%s13744_s27 + $0x18] sm:$0x3f]  ;;  %v8757_v0 = vld [vmem:[%s13744_s27 + $0x20] sm:$0xff] }
 0x1fc   :  { %10892 = vmatprep.subr.bf16.mxu0 %v10891_v45 }
 0x1fd   :  { %9788 = vmatprep.mubr.msk.f32.mxu0 %vm356_vm8, %v12028_v1 }
 0x1fe   :  { %9789 = vmatmul.mubr.msk.f32.gmra.mrb[10].mxu0 %vm356_vm8, %v12031_v2 }
 0x2c9   :  { %v9787_v4 = vpop.f32.mrb[8].mxu0 }
 0x2ca   :  { %v435_v5 = vpop.f32.mrb[9].mxu0  ;;  %v455_v8 = vmul.f32 0.03125, %v9787_v4  ;;  %v8760_v4 = vld [vmem:[%s13744_s27 + $0x38] sm:$0x3f] }
 0x2cb   :  { %v454_v6 = vmul.f32 0.03125, %v435_v5  ;;  %v8723_v5 = vld [vmem:[%s13708_s8] ss:$0 sm:$0xff] }
 0x2cd   :  { %460 = vperm.xlu0 %11451, %v454_v6  }
 0x2d1   :  { %465 = vperm.xlu0 %11451, %v455_v8   ;;  %v9790_v9 = vpop.f32.mrb[10].mxu0 }
 0x2d2   :  { %v445_v10 = vpop.f32.mrb[11].mxu0  ;;  %v457_v12 = vmul.f32 0.03125, %v9790_v9 }
 0x2d3   :  { %v456_v11 = vmul.f32 0.03125, %v445_v10 }
 0x2d5   :  { %470 = vperm.xlu1 %11452, %v456_v11   ;;  %v8724_v11 = vld [vmem:[%s13709_s9] ss:$0 sm:$0xff] }
 0x2d9   :  { %475 = vperm.xlu1 %11452, %v457_v12  }
 0x34c   :  { %v461_v13 = vpop.permute.xlu0 %460 }
 0x34d   :  { %v12038_v15 = vsub.f32 %v12012_v59, %v461_v13 }
 0x34f   :  { %v482_v16 = vmul.f32 %v12038_v15, %v12038_v15 }
 0x350   :  { %v466_v17 = vpop.permute.xlu0 %465 }
 0x351   :  { %v12043_v18 = vsub.f32 %v12014_v60, %v466_v17  ;;  %9799 = vmatprep.mubr.msk.f32.mxu0 %vm356_vm8, %v482_v16  ;;  %v831_v16 = vld [vmem:[%s13712_s12 + $0x10] sm:$0xff]  ;;  %v832_v17 = vld [vmem:[%s13712_s12 + $0x18] sm:$0xff] }
 0x353   :  { %v483_v19 = vmul.f32 %v12043_v18, %v12043_v18 }
 0x354   :  { %v471_v20 = vpop.permute.xlu1 %470 }
 0x355   :  { %v12049_v21 = vsub.f32 %v12028_v1, %v471_v20  ;;  %9800 = vmatmul.mubr.msk.f32.vlgmr.msra.gmra.mrb[12].mxu0 %vm356_vm8, %v483_v19 }
 0x356   :  { %10894 = vmatpush3.bf16.msra.mxu0 %v10891_v45 }
 0x357   :  { %v484_v22 = vmul.f32 %v12049_v21, %v12049_v21  ;;  %10896 = vmatprep.subr.bf16.mxu0 %v10895_v51 }
 0x358   :  { %v476_v23 = vpop.permute.xlu1 %475 }
 0x359   :  { %v12055_v24 = vsub.f32 %v12031_v2, %v476_v23  ;;  %9802 = vmatprep.mubr.msk.f32.mxu0 %vm356_vm8, %v484_v22 }
 0x35a   :  { %10898 = vmatpush3.bf16.msra.mxu0 %v10895_v51 }
 0x35b   :  { %v485_v25 = vmul.f32 %v12055_v24, %v12055_v24 }
 0x35d   :  { %9803 = vmatmul.mubr.msk.f32.gmra.mrb[14].mxu0 %vm356_vm8, %v485_v25 }
 0x428   :  { %v9801_v26 = vpop.f32.mrb[12].mxu0 }
 0x429   :  { %v584_v27 = vmul.f32 0.03125, %v9801_v26  ;;  %v564_v28 = vpop.f32.mrb[13].mxu0 }
 0x42a   :  { %v583_v29 = vmul.f32 0.03125, %v564_v28 }
 0x42b   :  { %v588_v30 = vadd.f32 1e-05, %v584_v27 }
 0x42c   :  { %v587_v31 = vadd.f32 1e-05, %v583_v29 }
 0x42d   :  { %11461 = vrsqrt.f32 %v588_v30 }
 0x42e   :  { %11463 = vrsqrt.f32 %v587_v31  ;;  %v12162_v31 = vld [vmem:[%s13745_s2 + $0x10] sm:$0xff] }
 0x430   :  { %v9804_v32 = vpop.f32.mrb[14].mxu0 }
 0x431   :  { %v586_v33 = vmul.f32 0.03125, %v9804_v32  ;;  %v574_v34 = vpop.f32.mrb[15].mxu0  ;;  %v12167_v32 = vld [vmem:[%s13745_s2 + $0x18] sm:$0xff] }
 0x432   :  { %v585_v35 = vmul.f32 0.03125, %v574_v34  ;;  %v11717_v34 = vmov 0.0|0.0  }
 0x433   :  { %v590_v36 = vadd.f32 1e-05, %v586_v33  ;;  %v12171_v33 = vpack.c.bf16 %v12167_v32, %v12162_v31 }
 0x434   :  { %v589_v37 = vadd.f32 1e-05, %v585_v35 }
 0x435   :  { %11465 = vrsqrt.f32 %v590_v36 }
 0x436   :  { %11467 = vrsqrt.f32 %v589_v37 }
 0x437   :  { %v11462_v41 = vpop.eup %11461 }
 0x438   :  { %v11464_v44 = vpop.eup %11463  ;;  %602 = vperm.xlu1 %11452, %v11462_v41  }
 0x439   :  { %597 = vperm.xlu0 %11451, %v11464_v44  }
 0x43f   :  { %v11466_v52 = vpop.eup %11465 }
 0x440   :  { %v11468_v53 = vpop.eup %11467  ;;  %612 = vperm.xlu1 %11452, %v11466_v52  }
 0x441   :  { %607 = vperm.xlu0 %11451, %v11468_v53  }
 0x444   :  { %1269 = vperm.xlu1 %11452, %v1259_v54  }
 0x445   :  { %1264 = vperm.xlu0 %11451, %v1258_v55  }
 0x448   :  { %1279 = vperm.xlu1 %11452, %v1261_v61  }
 0x449   :  { %1274 = vperm.xlu0 %11451, %v1260_v62  }
 0x44c   :  { %1539 = vperm.xlu1 %11452, %v8758_v63  }
 0x44d   :  { %1534 = vperm.xlu0 %11451, %v8757_v0  }
 0x451   :  { %1544 = vperm.xlu0 %11451, %v8759_v3  }
 0x455   :  { %1549 = vperm.xlu0 %11451, %v8760_v4  }
 0x4b7   :  { %v603_v6 = vpop.permute.xlu1 %602 }
 0x4b8   :  { %v616_v8 = vmul.f32 %v603_v6, %v12043_v18  ;;  %v598_v9 = vpop.permute.xlu0 %597  ;;  %v10903_v18 = vpack.c.bf16 %v832_v17, %v831_v16 }
 0x4b9   :  { %v615_v10 = vmul.f32 %v598_v9, %v12038_v15 }
 0x4ba   :  { %v626_v12 = vmul.f32 %v8723_v5, %v616_v8 }
 0x4bb   :  { %v625_v13 = vmul.f32 %v8723_v5, %v615_v10 }
 0x4bc   :  { %v636_v20 = vadd.f32 %v8724_v11, %v626_v12 }
 0x4bd   :  { %v635_v19 = vadd.f32 %v8724_v11, %v625_v13 }
 0x4bf   :  { %9813 = vmatprep.mubr.msk.f32.mxu1 %vm356_vm8, %v635_v19  ;;  %9827 = vmatprep.mubr.msk.f32.mxu0 %vm356_vm8, %v635_v19  ;;  %v613_v15 = vpop.permute.xlu1 %612 }
 0x4c0   :  { %v618_v22 = vmul.f32 %v613_v15, %v12055_v24  ;;  %v608_v23 = vpop.permute.xlu0 %607  ;;  %9814 = vmatmul.mubr.msk.f32.vlgmr.msra.gmra.mrb[4].mxu1 %vm356_vm8, %v636_v20  ;;  %9828 = vmatmul.mubr.msk.f32.vlgmr.msra.gmra.mrb[16].mxu0 %vm356_vm8, %v636_v20  ;;  %v12151_v24 = vld [vmem:[%s13745_s2 + $0x8] sm:$0xff] }
 0x4c1   :  { %v617_v25 = vmul.f32 %v608_v23, %v12049_v21  ;;  %10902 = vmatpush3.bf16.msra.mxu1 %v10899_v58  ;;  %v12146_v21 = vld [vmem:[%s13745_s2] sm:$0xff] }
 0x4c2   :  { %v628_v26 = vmul.f32 %v8723_v5, %v618_v22  ;;  %10904 = vmatprep.subr.bf16.mxu1 %v10903_v18  ;;  %v12155_v30 = vpack.c.bf16 %v12151_v24, %v12146_v21  ;;  %v8617_v22 = vld [vmem:[%s13721_s21 + $0x10] sm:$0xff] }
 0x4c3   :  { %v627_v27 = vmul.f32 %v8723_v5, %v617_v25  ;;  %v349_v25 = vld [vmem:[%s13748_s30] sm:$0x3] }
 0x4c4   :  { %v638_v29 = vadd.f32 %v8724_v11, %v628_v26  ;;  %10908 = vmatprep.subr.bf16.mxu0 %v12155_v30  ;;  %v12226_v26 = vpop.permute.xlu0 %1264 }
 0x4c5   :  { %v637_v28 = vadd.f32 %v8724_v11, %v627_v27  ;;  %10906 = vmatpush3.bf16.msra.mxu1 %v10903_v18  ;;  %10910 = vmatpush3.bf16.msra.mxu0 %v12155_v30 }
 0x4c6   :  { %10912 = vmatprep.subr.bf16.mxu0 %v12171_v33  ;;  %10915 = vmatprep.subr.bf16.mxu1 %v11717_v34 }
 0x4c7   :  { %9816 = vmatprep.mubr.msk.f32.mxu1 %vm356_vm8, %v637_v28  ;;  %9830 = vmatprep.mubr.msk.f32.mxu0 %vm356_vm8, %v637_v28 }
 0x4c8   :  { %9817 = vmatmul.mubr.msk.f32.gmra.mrb[6].mxu1 %vm356_vm8, %v638_v29  ;;  %9831 = vmatmul.mubr.msk.f32.gmra.mrb[18].mxu0 %vm356_vm8, %v638_v29  ;;  %v12228_v27 = vpop.permute.xlu0 %1274 }
 0x4c9   :  { %9841 = vmatprep.mubr.msk.f32.mxu1 %vm356_vm8, %v635_v19  ;;  %10914 = vmatpush3.bf16.msra.mxu0 %v12171_v33 }
 0x4cc   :  { %9842 = vmatmul.mubr.msk.f32.vlgmr.msra.gmra.mrb[8].mxu1 %vm356_vm8, %v636_v20 }
 0x4cd   :  { %9844 = vmatprep.mubr.msk.f32.mxu1 %vm356_vm8, %v637_v28  ;;  %v12230_v28 = vpop.permute.xlu0 %1534 }
 0x4d0   :  { %9845 = vmatmul.mubr.msk.f32.gmra.mrb[10].mxu1 %vm356_vm8, %v638_v29  ;;  %v12232_v29 = vpop.permute.xlu1 %1269 }
 0x4d1   :  { %9869 = vmatprep.mubr.msk.f32.mxu1 %vm11718_vm9, %v11714_v7 }
 0x593   :  { %v12178_v35 = vpop.f32.mrb[4].mxu1  ;;  %v9829_v36 = vpop.f32.mrb[16].mxu0 }
 0x594   :  { %v1049_v37 = vsel %vm356_vm8, %v9829_v36, -inf  ;;  %v12181_v38 = vpop.f32.mrb[5].mxu1  ;;  %v810_v39 = vpop.f32.mrb[17].mxu0  ;;  %v921_v40 = vsel %vm356_vm8, %v12178_v35, -inf }
 0x595   :  { %v1048_v41 = vsel %vm356_vm8, %v810_v39, -inf  ;;  %922 = vmax.xlane.f32.xlu0 %v921_v40  ;;  %v918_v42 = vsel %vm356_vm8, %v12181_v38, -inf }
 0x596   :  { %v1052_v43 = vmax.f32 %v1048_v41, %v1049_v37  ;;  %919 = vmax.xlane.f32.xlu1 %v918_v42  ;;  %v12236_v37 = vpop.permute.xlu1 %1279 }
 0x59a   :  { %v12240_v40 = vpop.permute.xlu1 %1539 }
 0x59b   :  { %v12188_v44 = vpop.f32.mrb[6].mxu1  ;;  %v9832_v45 = vpop.f32.mrb[18].mxu0 }
 0x59c   :  { %v1051_v46 = vsel %vm927_vm10, %v9832_v45, -inf  ;;  %v12191_v47 = vpop.f32.mrb[7].mxu1  ;;  %v820_v48 = vpop.f32.mrb[19].mxu0  ;;  %v928_v49 = vsel %vm927_vm10, %v12188_v44, -inf }
 0x59d   :  { %v1050_v50 = vsel %vm356_vm8, %v820_v48, -inf  ;;  %929 = vmax.xlane.f32.xlu0 %v928_v49  ;;  %v924_v51 = vsel %vm356_vm8, %v12191_v47, -inf  ;;  %v350_v49 = vld [vmem:[%s13749_s5] sm:$0xff] }
 0x59e   :  { %v1053_v52 = vmax.f32 %v1050_v50, %v1051_v46  ;;  %925 = vmax.xlane.f32.xlu1 %v924_v51 }
 0x59f   :  { %v9843_v53 = vpop.f32.mrb[8].mxu1 }
 0x5a0   :  { %v1054_v54 = vmax.f32 %v1052_v43, %v1053_v52  ;;  %v899_v55 = vpop.f32.mrb[9].mxu1 }
 0x5a1   :  { %v12198_v56 = vpack.c.bf16 %v9843_v53, %v899_v55 }
 0x5a2   :  { %v1055_v57 = vrot.slane %v1054_v54, 4 }
 0x5a3   :  { %v9846_v58 = vpop.f32.mrb[10].mxu1  ;;  %10923 = vmatprep.subr.bf16.mxu0 %v12198_v56 }
 0x5a4   :  { %v1056_v61 = vmax.f32 %v1054_v54, %v1055_v57  ;;  %v909_v62 = vpop.f32.mrb[11].mxu1 }
 0x5a5   :  { %v12201_v63 = vpack.c.bf16 %v9846_v58, %v909_v62  ;;  %v351_v62 = vld [vmem:[%s13749_s5 + $0x8] sm:$0xff] }
 0x5a6   :  { %v1057_v0 = vrot.slane %v1056_v61, 2 }
 0x5a8   :  { %v1058_v3 = vmax.f32 %v1056_v61, %v1057_v0  ;;  %v352_v0 = vld [vmem:[%s13749_s5 + $0x10] sm:$0xff] }
 0x5aa   :  { %v1059_v4 = vrot.slane %v1058_v3, 1 }
 0x5ac   :  { %v1060_v5 = vmax.f32 %v1058_v3, %v1059_v4  ;;  %v353_v3 = vld [vmem:[%s13749_s5 + $0x18] sm:$0x3f] }
 0x5ae   :  { %v1061_v6 = vsub.f32 %v810_v39, %v1060_v5  ;;  %v1062_v8 = vsub.f32 %v9829_v36, %v1060_v5  ;;  %v1063_v9 = vsub.f32 %v820_v48, %v1060_v5  ;;  %v1064_v10 = vsub.f32 %v9832_v45, %v1060_v5  ;;  %v12234_v36 = vpop.permute.xlu0 %1544 }
 0x5b0   :  { %v1065_v11 = vmul.f32 1.442695, %v1061_v6  ;;  %v1067_v12 = vmul.f32 1.442695, %v1062_v8  ;;  %v1069_v13 = vmul.f32 1.442695, %v1063_v9 }
 0x5b1   :  { %v1071_v16 = vmul.f32 1.442695, %v1064_v10 }
 0x5b2   :  { %11469 = vpow2.f32 %v1065_v11  ;;  %v12238_v39 = vpop.permute.xlu0 %1549 }
 0x5b3   :  { %11471 = vpow2.f32 %v1067_v12 }
 0x5b4   :  { %11473 = vpow2.f32 %v1069_v13 }
 0x5b5   :  { %11475 = vpow2.f32 %v1071_v16 }
 0x5bc   :  { %v12203_v17 = vpop.eup %11469 }
 0x5bd   :  { %v12205_v19 = vpop.eup %11471 }
 0x5be   :  { %v12207_v20 = vpop.eup %11473  ;;  %v10916_v18 = vpack.c.bf16 %v12205_v19, %v12203_v17 }
 0x5bf   :  { %v12211_v15 = vpop.eup %11475 }
 0x5c0   :  { %10917 = vmatpush3.bf16.msra.mxu1 %v10916_v18  ;;  %v10919_v23 = vpack.c.bf16 %v12211_v15, %v12207_v20 }
 0x5c1   :  { %10918 = vmatprep.subr.bf16.mxu1 %v11717_v34 }
 0x5c4   :  { %10921 = vmatpush3.bf16.msk.msra.mxu1 %vm12214_vm13, %v10919_v23 }
 0x5c7   :  { %9870 = vmatmul.mubr.msk.f32.vlgmr.msra.gmra.mrb[12].mxu1 %vm1073_vm14, %v349_v25 }
 0x5c8   :  { %9874 = vmatprep.mubr.msk.f32.mxu1 %vm1152_vm15, %v350_v49 }
 0x622   :  { %v923_v41 = vpop.xlane.xlu0 %922 }
 0x623   :  { %v932_v42 = vsub.f32 %v12178_v35, %v923_v41  ;;  %v920_v43 = vpop.xlane.xlu1 %919 }
 0x624   :  { %v931_v45 = vsub.f32 %v12181_v38, %v920_v43 }
 0x625   :  { %v937_v46 = vmul.f32 1.442695, %v932_v42 }
 0x626   :  { %v935_v48 = vmul.f32 1.442695, %v931_v45 }
 0x628   :  { %11477 = vpow2.f32 %v935_v48 }
 0x629   :  { %11479 = vpow2.f32 %v937_v46 }
 0x62a   :  { %v930_v50 = vpop.xlane.xlu0 %929 }
 0x62b   :  { %v934_v51 = vsub.f32 %v12188_v44, %v930_v50  ;;  %v926_v52 = vpop.xlane.xlu1 %925 }
 0x62c   :  { %v933_v35 = vsub.f32 %v12191_v47, %v926_v52 }
 0x62d   :  { %v941_v53 = vmul.f32 1.442695, %v934_v51 }
 0x62e   :  { %v939_v54 = vmul.f32 1.442695, %v933_v35 }
 0x630   :  { %11481 = vpow2.f32 %v939_v54 }
 0x631   :  { %11483 = vpow2.f32 %v941_v53 }
 0x632   :  { %v11478_v38 = vpop.eup %11477 }
 0x633   :  { %v12250_v55 = vpop.eup %11479  ;;  %9855 = vmatprep.mubr.msk.f32.mxu0 %vm356_vm8, %v11478_v38 }
 0x634   :  { %9856 = vmatmul.mubr.msk.f32.vlgmr.msra.gmra.mrb[20].mxu0 %vm356_vm8, %v12250_v55 }
 0x635   :  { %10925 = vmatpush3.bf16.msra.mxu0 %v12198_v56 }
 0x636   :  { %10928 = vmatprep.subr.msk.bf16.mxu0 %vm12214_vm13, %v12201_v63 }
 0x639   :  { %10931 = vmatpush3.bf16.msk.msra.mxu0 %vm12214_vm13, %v12201_v63 }
 0x63a   :  { %v12262_v44 = vpop.eup %11481  ;;  %10941 = vmatprep.subr.bf16.mxu0 %v12198_v56 }
 0x63b   :  { %v12265_v47 = vpop.eup %11483  ;;  %9858 = vmatprep.mubr.msk.f32.mxu0 %vm356_vm8, %v12262_v44 }
 0x63c   :  { %9859 = vmatmul.mubr.msk.f32.gmra.mrb[22].mxu0 %vm356_vm8, %v12265_v47 }
 0x69a   :  { %v1147_v57 = vpop.f32.mrb[12].mxu1 }
 0x69b   :  { %11485 = vrcp.f32 %v1147_v57  ;;  %v9871_v58 = vpop.f32.mrb[13].mxu1 }
 0x6a5   :  { %v11486_v61 = vpop.eup %11485 }
 0x6a6   :  { %9872 = vmatprep.subr.msk.mxu1 %vm1165_vm0, %v11486_v61 }
 0x6a7   :  { %9873 = vmatpush3.msk.msra.mxu1 %vm1165_vm0, %v11486_v61 }
 0x6a8   :  { %9875 = vmatmul.mubr.msk.f32.vlgmr.msra.gmra.mrb[14].mxu1 %vm1152_vm15, %v351_v62 }
 0x6a9   :  { %9877 = vmatprep.mubr.msk.f32.mxu1 %vm1152_vm15, %v352_v0 }
 0x6ac   :  { %9878 = vmatmul.mubr.msk.f32.gmra.mrb[16].mxu1 %vm1152_vm15, %v353_v3 }
 0x707   :  { %v9857_v4 = vpop.f32.mrb[20].mxu0 }
 0x708   :  { %v1021_v5 = vpop.f32.mrb[21].mxu0 }
 0x709   :  { %11487 = vrcp.f32 %v1021_v5 }
 0x70a   :  { %11489 = vrcp.f32 %v9857_v4 }
 0x70f   :  { %v9860_v6 = vpop.f32.mrb[22].mxu0 }
 0x710   :  { %v1031_v8 = vpop.f32.mrb[23].mxu0 }
 0x711   :  { %11491 = vrcp.f32 %v1031_v8 }
 0x712   :  { %11493 = vrcp.f32 %v9860_v6 }
 0x713   :  { %v11488_v9 = vpop.eup %11487 }
 0x714   :  { %v12285_v10 = vmul.f32 %v11488_v9, %v11478_v38 }
 0x716   :  { %9902 = vmatprep.mubr.msk.f32.mxu1 %vm356_vm8, %v12285_v10 }
 0x77b   :  { %v9876_v11 = vpop.f32.mrb[14].mxu1 }
 0x77c   :  { %v1235_v12 = vpop.f32.mrb[15].mxu1  ;;  %v1255_v16 = vmul.f32 %v12205_v19, %v9876_v11  ;;  %v11490_v11 = vpop.eup %11489 }
 0x77d   :  { %v1254_v13 = vmul.f32 %v12203_v17, %v1235_v12  ;;  %v1045_v6 = vmul.f32 %v11490_v11, %v12250_v55 }
 0x77e   :  { %v1283_v42 = vmul.f32 %v12232_v29, %v1255_v16  ;;  %v1553_v43 = vmul.f32 %v12240_v40, %v1255_v16  ;;  %v11492_v16 = vpop.eup %11491 }
 0x77f   :  { %v1282_v18 = vmul.f32 %v12226_v26, %v1254_v13  ;;  %v1552_v23 = vmul.f32 %v12230_v28, %v1254_v13  ;;  %v9879_v25 = vpop.f32.mrb[16].mxu1 }
 0x780   :  { %v1245_v41 = vpop.f32.mrb[17].mxu1  ;;  %v1257_v17 = vmul.f32 %v12211_v15, %v9879_v25 }
 0x781   :  { %1556 = vxpose.xlu0.b32.start [1/4] (short) (narrow) %v1552_v23, 32  ;;  %1286 = vxpose.xlu1.b32.start [1/4] (short) (narrow) %v1282_v18, 32  ;;  %v1256_v45 = vmul.f32 %v12207_v20, %v1245_v41  ;;  %v11494_v23 = vpop.eup %11493 }
 0x782   :  { %v1285_v48 = vmul.f32 %v12236_v37, %v1257_v17  ;;  %v1555_v49 = vmul.f32 %v12238_v39, %v1257_v17 }
 0x783   :  { %v1284_v19 = vmul.f32 %v12228_v27, %v1256_v45  ;;  %v1554_v46 = vmul.f32 %v12234_v36, %v1256_v45 }
 0x785   :  { %1287 = vxpose.xlu1.b32.cont [2/4] (short) (narrow) %v1283_v42, 32  ;;  %1557 = vxpose.xlu0.b32.cont [2/4] (short) (narrow) %v1553_v43, 32  ;;  %v1046_v42 = vmul.f32 %v11492_v16, %v12262_v44  ;;  %v1784_v44 = vld [vmem:[%s13713_s13 + $0x10] sm:$0xff] }
 0x789   :  { %1288 = vxpose.xlu1.b32.cont [3/4] (short) (narrow) %v1284_v19, 32  ;;  %1558 = vxpose.xlu0.b32.cont [3/4] (short) (narrow) %v1554_v46, 32 }
 0x78d   :  { %1289 = vxpose.xlu1.b32.end [4/4] (short) (narrow) %v1285_v48, 32  ;;  %1559 = vxpose.xlu0.b32.end [4/4] (short) (narrow) %v1555_v49, 32 }
 0x801   :  { %v1302_v50 = vpop.trf.xlu1  ;;  %v1572_v51 = vpop.trf.xlu0 }
 0x802   :  { %9888 = vmatprep.mubr.msk.f32.mxu0 %vm1073_vm14, %v1302_v50 }
 0x805   :  { %v1303_v20 = vpop.trf.xlu1  ;;  %v1573_v15 = vpop.trf.xlu0 }
 0x806   :  { %9889 = vmatmul.mubr.msk.f32.vlgmr.msra.gmra.mrb[24].mxu0 %vm1073_vm14, %v1303_v20 }
 0x807   :  { %10943 = vmatpush3.bf16.msra.mxu0 %v12198_v56 }
 0x808   :  { %10946 = vmatprep.subr.msk.bf16.mxu0 %vm12214_vm13, %v12201_v63 }
 0x809   :  { %v1304_v52 = vpop.trf.xlu1  ;;  %v1574_v53 = vpop.trf.xlu0 }
 0x80a   :  { %9891 = vmatprep.mubr.msk.f32.mxu0 %vm1073_vm14, %v1304_v52 }
 0x80b   :  { %10949 = vmatpush3.bf16.msk.msra.mxu0 %vm12214_vm13, %v12201_v63 }
 0x80d   :  { %v1305_v35 = vpop.trf.xlu1  ;;  %v1575_v56 = vpop.trf.xlu0 }
 0x80e   :  { %9892 = vmatmul.mubr.msk.f32.gmra.mrb[26].mxu0 %vm1073_vm14, %v1305_v35 }
 0x80f   :  { %9916 = vmatprep.mubr.msk.f32.mxu0 %vm1073_vm14, %v1572_v51 }
 0x812   :  { %9917 = vmatmul.mubr.msk.f32.vlgmr.msra.gmra.mrb[28].mxu0 %vm1073_vm14, %v1573_v15 }
 0x813   :  { %9919 = vmatprep.mubr.msk.f32.mxu0 %vm1073_vm14, %v1574_v53 }
 0x816   :  { %9920 = vmatmul.mubr.msk.f32.gmra.mrb[30].mxu0 %vm1073_vm14, %v1575_v56 }
 0x8d9   :  { %v9890_v54 = vpop.f32.mrb[24].mxu0 }
 0x8da   :  { %v1419_v38 = vmul.f32 %v9890_v54, %v12151_v24  ;;  %v1399_v57 = vpop.f32.mrb[25].mxu0 }
 0x8db   :  { %v1418_v58 = vmul.f32 %v1399_v57, %v12146_v21 }
 0x8dd   :  { %v10932_v63 = vpack.c.bf16 %v1419_v38, %v1418_v58 }
 0x8df   :  { %10933 = vmatprep.subr.bf16.mxu1 %v10932_v63 }
 0x8e0   :  { %10935 = vmatpush3.bf16.msra.mxu1 %v10932_v63 }
 0x8e1   :  { %v9893_v61 = vpop.f32.mrb[26].mxu0 }
 0x8e2   :  { %v1421_v62 = vmul.f32 %v9893_v61, %v12167_v32  ;;  %v1409_v0 = vpop.f32.mrb[27].mxu0 }
 0x8e3   :  { %v1420_v3 = vmul.f32 %v1409_v0, %v12162_v31 }
 0x8e5   :  { %v10936_v5 = vpack.c.bf16 %v1421_v62, %v1420_v3  ;;  %v9918_v9 = vpop.f32.mrb[28].mxu0  ;;  %v8774_v3 = vld [vmem:[%s13714_s14] ss:$0 sm:$0xff] }
 0x8e6   :  { %v1686_v12 = vmul.f32 %v9918_v9, %v12151_v24  ;;  %v1666_v13 = vpop.f32.mrb[29].mxu0  ;;  %v1047_v24 = vmul.f32 %v11494_v23, %v12265_v47  ;;  %v1785_v47 = vld [vmem:[%s13713_s13 + $0x18] sm:$0xff] }
 0x8e7   :  { %v1685_v4 = vmul.f32 %v1666_v13, %v12146_v21  ;;  %10937 = vmatprep.subr.bf16.mxu1 %v10936_v5 }
 0x8e8   :  { %10939 = vmatpush3.bf16.msra.mxu1 %v10936_v5 }
 0x8e9   :  { %v10950_v8 = vpack.c.bf16 %v1686_v12, %v1685_v4  ;;  %v9921_v18 = vpop.f32.mrb[30].mxu0 }
 0x8ea   :  { %v1688_v25 = vmul.f32 %v9921_v18, %v12167_v32  ;;  %v1676_v41 = vpop.f32.mrb[31].mxu0  ;;  %v1783_v32 = vld [vmem:[%s13713_s13 + $0x8] sm:$0xff] }
 0x8eb   :  { %v1687_v43 = vmul.f32 %v1676_v41, %v12162_v31  ;;  %9903 = vmatmul.mubr.msk.f32.vlgmr.msra.gmra.mrb[18].mxu1 %vm356_vm8, %v1045_v6  ;;  %10951 = vmatprep.subr.bf16.mxu1 %v10950_v8  ;;  %v1782_v31 = vld [vmem:[%s13713_s13] sm:$0xff] }
 0x8ec   :  { %9905 = vmatprep.mubr.msk.f32.mxu1 %vm356_vm8, %v1046_v42  ;;  %10953 = vmatpush3.bf16.msra.mxu1 %v10950_v8  ;;  %v10958_v55 = vpack.c.bf16 %v1783_v32, %v1782_v31 }
 0x8ed   :  { %v10954_v21 = vpack.c.bf16 %v1688_v25, %v1687_v43 }
 0x8ee   :  { %10959 = vmatprep.subr.bf16.mxu0 %v10958_v55 }
 0x8ef   :  { %9906 = vmatmul.mubr.msk.f32.gmra.mrb[20].mxu1 %vm356_vm8, %v1047_v24  ;;  %10955 = vmatprep.subr.bf16.mxu1 %v10954_v21 }
 0x8f0   :  { %10957 = vmatpush3.bf16.msra.mxu1 %v10954_v21  ;;  %9930 = vmatprep.mubr.msk.f32.mxu1 %vm356_vm8, %v12285_v10  ;;  %v10962_v10 = vpack.c.bf16 %v1785_v47, %v1784_v44 }
 0x8f1   :  { %10966 = vmatprep.subr.bf16.mxu1 %v11715_v14  ;;  %10961 = vmatpush3.bf16.msra.mxu0 %v10958_v55 }
 0x8f2   :  { %10963 = vmatprep.subr.bf16.mxu0 %v10962_v10 }
 0x8f3   :  { %9931 = vmatmul.mubr.msk.f32.vlgmr.msra.gmra.mrb[22].mxu1 %vm356_vm8, %v1045_v6 }
 0x8f4   :  { %9933 = vmatprep.mubr.msk.f32.mxu1 %vm356_vm8, %v1046_v42  ;;  %10967 = vmatpush3.bf16.msra.mxu1 %v11715_v14 }
 0x8f5   :  { %10968 = vmatprep.subr.bf16.mxu1 %v11715_v14  ;;  %10965 = vmatpush3.bf16.msra.mxu0 %v10962_v10 }
 0x8f6   :  { %10970 = vmatprep.subr.bf16.mxu0 %v11715_v14 }
 0x8f7   :  { %9934 = vmatmul.mubr.msk.f32.gmra.mrb[24].mxu1 %vm356_vm8, %v1047_v24 }
 0x8f8   :  { %10969 = vmatpush3.bf16.msra.mxu1 %v11715_v14 }
 0x9be   :  { %v9904_v45 = vpop.f32.mrb[18].mxu1 }
 0x9bf   :  { %v1500_v17 = vpop.f32.mrb[19].mxu1  ;;  %v1520_v49 = vmul.f32 %v9904_v45, %v12232_v29 }
 0x9c0   :  { %v1519_v20 = vmul.f32 %v1500_v17, %v12226_v26 }
 0x9c2   :  { %v9907_v19 = vpop.f32.mrb[20].mxu1 }
 0x9c3   :  { %v1510_v46 = vpop.f32.mrb[21].mxu1  ;;  %v1522_v56 = vmul.f32 %v9907_v19, %v12236_v37 }
 0x9c4   :  { %v1521_v57 = vmul.f32 %v1510_v46, %v12228_v27 }
 0x9c6   :  { %v9932_v48 = vpop.f32.mrb[22].mxu1 }
 0x9c7   :  { %v1775_v50 = vmul.f32 %v9932_v48, %v12240_v40  ;;  %v1755_v51 = vpop.f32.mrb[23].mxu1 }
 0x9c8   :  { %v1774_v15 = vmul.f32 %v1755_v51, %v12230_v28 }
 0x9c9   :  { %v1779_v52 = vadd.f32 %v1775_v50, %v1520_v49 }
 0x9ca   :  { %v1778_v35 = vadd.f32 %v1774_v15, %v1519_v20  ;;  %v9935_v53 = vpop.f32.mrb[24].mxu1 }
 0x9cb   :  { %v1777_v54 = vmul.f32 %v9935_v53, %v12238_v39  ;;  %v1765_v38 = vpop.f32.mrb[25].mxu1 }
 0x9cc   :  { %v1776_v58 = vmul.f32 %v1765_v38, %v12234_v36  ;;  %9944 = vmatprep.mubr.msk.f32.mxu0 %vm356_vm8, %v1778_v35  ;;  %v2182_v38 = vld [vmem:[%s13717_s17] sm:$0xff] }
 0x9cd   :  { %v1781_v63 = vadd.f32 %v1777_v54, %v1522_v56  ;;  %9945 = vmatmul.mubr.msk.f32.vlgmr.msra.gmra.mrb[32].mxu0 %vm356_vm8, %v1779_v52 }
 0x9ce   :  { %v1780_v61 = vadd.f32 %v1776_v58, %v1521_v57  ;;  %10971 = vmatpush3.bf16.msra.mxu0 %v11715_v14  ;;  %v2183_v57 = vld [vmem:[%s13717_s17 + $0x8] sm:$0xff] }
 0x9cf   :  { %10972 = vmatprep.subr.bf16.mxu0 %v11715_v14 }
 0x9d0   :  { %9947 = vmatprep.mubr.msk.f32.mxu0 %vm356_vm8, %v1780_v61 }
 0x9d1   :  { %9948 = vmatmul.mubr.msk.f32.gmra.mrb[34].mxu0 %vm356_vm8, %v1781_v63  ;;  %v10974_v63 = vpack.c.bf16 %v2183_v57, %v2182_v38  ;;  %v2338_v38 = vld [vmem:[%s13719_s19 + $0x60] sm:$0xff]  ;;  %v2339_v57 = vld [vmem:[%s13719_s19 + $0x68] sm:$0xff] }
 0x9d2   :  { %10973 = vmatpush3.bf16.msra.mxu0 %v11715_v14 }
 0x9d3   :  { %10975 = vmatprep.subr.bf16.mxu1 %v10974_v63 }
 0xaa0   :  { %v9946_v62 = vpop.f32.mrb[32].mxu0 }
 0xaa1   :  { %v1884_v0 = vadd.f32 %v9946_v62, %v12014_v60  ;;  %v1864_v5 = vpop.f32.mrb[33].mxu0  ;;  %v2184_v62 = vld [vmem:[%s13717_s17 + $0x10] sm:$0xff] }
 0xaa2   :  { %v1883_v9 = vadd.f32 %v1864_v5, %v12012_v59 }
 0xaa3   :  { %v12374_v13 = vadd.f32 %v8774_v3, %v1884_v0  ;;  %v2185_v0 = vld [vmem:[%s13717_s17 + $0x18] sm:$0xff] }
 0xaa4   :  { %v12372_v11 = vadd.f32 %v8774_v3, %v1883_v9  ;;  %v9949_v12 = vpop.f32.mrb[34].mxu0 }
 0xaa5   :  { %v1886_v16 = vadd.f32 %v9949_v12, %v12031_v2  ;;  %v1874_v4 = vpop.f32.mrb[35].mxu0  ;;  %v8783_v12 = vld [vmem:[%s13715_s15] ss:$0 sm:$0xff] }
 0xaa6   :  { %v1885_v6 = vadd.f32 %v1874_v4, %v12028_v1  ;;  %9958 = vmatprep.mubr.msk.f32.mxu1 %vm356_vm8, %v12372_v11 }
 0xaa7   :  { %9959 = vmatmul.mubr.msk.f32.vlgmr.msra.gmra.mrb[26].mxu1 %vm356_vm8, %v12374_v13  ;;  %v12384_v8 = vadd.f32 %v8774_v3, %v1886_v16 }
 0xaa8   :  { %v12382_v60 = vadd.f32 %v8774_v3, %v1885_v6  ;;  %10977 = vmatpush3.bf16.msra.mxu1 %v10974_v63  ;;  %v10978_v3 = vpack.c.bf16 %v2185_v0, %v2184_v62  ;;  %v2340_v63 = vld [vmem:[%s13719_s19 + $0x70] sm:$0xff]  ;;  %v8785_v0 = vld [vmem:[%s13718_s18] ss:$0 sm:$0xff] }
 0xaaa   :  { %9961 = vmatprep.mubr.msk.f32.mxu1 %vm356_vm8, %v12382_v60  ;;  %10979 = vmatprep.subr.bf16.mxu1 %v10978_v3 }
 0xaab   :  { %9962 = vmatmul.mubr.msk.f32.gmra.mrb[28].mxu1 %vm356_vm8, %v12384_v8 }
 0xaac   :  { %10981 = vmatpush3.bf16.msra.mxu1 %v10978_v3 }
 0xaad   :  { %11014 = vmatprep.subr.bf16.mxu1 %v11715_v14 }
 0xb7a   :  { %v9960_v59 = vpop.f32.mrb[26].mxu1 }
 0xb7b   :  { %v1998_v2 = vmul.f32 0.03125, %v9960_v59  ;;  %v1978_v18 = vpop.f32.mrb[27].mxu1 }
 0xb7c   :  { %v1997_v1 = vmul.f32 0.03125, %v1978_v18 }
 0xb7d   :  { %2008 = vperm.xlu1 %11452, %v1998_v2   ;;  %v8784_v2 = vld [vmem:[%s13716_s16] ss:$0 sm:$0xff] }
 0xb7e   :  { %2003 = vperm.xlu0 %11451, %v1997_v1   ;;  %v9963_v23 = vpop.f32.mrb[28].mxu1 }
 0xb7f   :  { %v1988_v25 = vpop.f32.mrb[29].mxu1  ;;  %v2000_v42 = vmul.f32 0.03125, %v9963_v23 }
 0xb80   :  { %v1999_v41 = vmul.f32 0.03125, %v1988_v25 }
 0xb82   :  { %2013 = vperm.xlu1 %11452, %v1999_v41  }
 0xb86   :  { %2018 = vperm.xlu1 %11452, %v2000_v42  }
 0xbfc   :  { %v2009_v43 = vpop.permute.xlu1 %2008 }
 0xbfd   :  { %v2022_v21 = vsub.f32 %v12374_v13, %v2009_v43  ;;  %v2004_v24 = vpop.permute.xlu0 %2003 }
 0xbfe   :  { %v2021_v31 = vsub.f32 %v12372_v11, %v2004_v24 }
 0xbff   :  { %v2026_v55 = vmul.f32 %v2022_v21, %v2022_v21 }
 0xc00   :  { %v2025_v32 = vmul.f32 %v2021_v31, %v2021_v31 }
 0xc01   :  { %v2014_v44 = vpop.permute.xlu1 %2013 }
 0xc02   :  { %v2023_v47 = vsub.f32 %v12382_v60, %v2014_v44  ;;  %9972 = vmatprep.mubr.msk.f32.mxu0 %vm356_vm8, %v2025_v32  ;;  %v2326_v44 = vld [vmem:[%s13719_s19] sm:$0xff] }
 0xc03   :  { %9973 = vmatmul.mubr.msk.f32.vlgmr.msra.gmra.mrb[36].mxu0 %vm356_vm8, %v2026_v55 }
 0xc04   :  { %v2027_v10 = vmul.f32 %v2023_v47, %v2023_v47 }
 0xc05   :  { %v2019_v45 = vpop.permute.xlu1 %2018 }
 0xc06   :  { %v2024_v17 = vsub.f32 %v12384_v8, %v2019_v45  ;;  %9975 = vmatprep.mubr.msk.f32.mxu0 %vm356_vm8, %v2027_v10  ;;  %v2328_v45 = vld [vmem:[%s13719_s19 + $0x10] sm:$0xff] }
 0xc08   :  { %v2028_v19 = vmul.f32 %v2024_v17, %v2024_v17 }
 0xc0a   :  { %9976 = vmatmul.mubr.msk.f32.gmra.mrb[38].mxu0 %vm356_vm8, %v2028_v19 }
 0xcd6   :  { %v9974_v46 = vpop.f32.mrb[36].mxu0 }
 0xcd7   :  { %v2127_v48 = vmul.f32 0.03125, %v9974_v46  ;;  %v2107_v49 = vpop.f32.mrb[37].mxu0  ;;  %v2330_v46 = vld [vmem:[%s13719_s19 + $0x20] sm:$0xff] }
 0xcd8   :  { %v2126_v50 = vmul.f32 0.03125, %v2107_v49 }
 0xcd9   :  { %v2131_v51 = vadd.f32 1e-05, %v2127_v48  ;;  %v2331_v48 = vld [vmem:[%s13719_s19 + $0x28] sm:$0xff] }
 0xcda   :  { %v2130_v20 = vadd.f32 1e-05, %v2126_v50  ;;  %v10990_v49 = vpack.c.bf16 %v2331_v48, %v2330_v46  ;;  %v2332_v50 = vld [vmem:[%s13719_s19 + $0x30] sm:$0xff] }
 0xcdb   :  { %11495 = vrsqrt.f32 %v2131_v51  ;;  %v2333_v51 = vld [vmem:[%s13719_s19 + $0x38] sm:$0xff] }
 0xcdc   :  { %11497 = vrsqrt.f32 %v2130_v20  ;;  %v10994_v20 = vpack.c.bf16 %v2333_v51, %v2332_v50 }
 0xcdd   :  { %v9977_v15 = vpop.f32.mrb[38].mxu0 }
 0xcde   :  { %v2129_v52 = vmul.f32 0.03125, %v9977_v15  ;;  %v2117_v35 = vpop.f32.mrb[39].mxu0  ;;  %v2334_v15 = vld [vmem:[%s13719_s19 + $0x40] sm:$0xff] }
 0xcdf   :  { %v2128_v53 = vmul.f32 0.03125, %v2117_v35 }
 0xce0   :  { %v2133_v56 = vadd.f32 1e-05, %v2129_v52  ;;  %v2335_v52 = vld [vmem:[%s13719_s19 + $0x48] sm:$0xff] }
 0xce1   :  { %v2132_v54 = vadd.f32 1e-05, %v2128_v53  ;;  %v10998_v35 = vpack.c.bf16 %v2335_v52, %v2334_v15  ;;  %v2336_v53 = vld [vmem:[%s13719_s19 + $0x50] sm:$0xff] }
 0xce2   :  { %11499 = vrsqrt.f32 %v2133_v56  ;;  %v2337_v56 = vld [vmem:[%s13719_s19 + $0x58] sm:$0xff] }
 0xce3   :  { %11501 = vrsqrt.f32 %v2132_v54  ;;  %v11002_v54 = vpack.c.bf16 %v2337_v56, %v2336_v53 }
 0xce5   :  { %v11496_v58 = vpop.eup %11495 }
 0xce6   :  { %v11498_v61 = vpop.eup %11497  ;;  %2145 = vperm.xlu1 %11452, %v11496_v58   ;;  %v11006_v58 = vpack.c.bf16 %v2339_v57, %v2338_v38 }
 0xce7   :  { %2140 = vperm.xlu0 %11451, %v11498_v61   ;;  %v2341_v61 = vld [vmem:[%s13719_s19 + $0x78] sm:$0xff] }
 0xce8   :  { %v11010_v62 = vpack.c.bf16 %v2341_v61, %v2340_v63 }
 0xcec   :  { %v11500_v5 = vpop.eup %11499 }
 0xced   :  { %v11502_v9 = vpop.eup %11501  ;;  %2155 = vperm.xlu1 %11452, %v11500_v5  }
 0xcee   :  { %2150 = vperm.xlu0 %11451, %v11502_v9  }
 0xd65   :  { %v2146_v16 = vpop.permute.xlu1 %2145 }
 0xd66   :  { %v2159_v4 = vmul.f32 %v2146_v16, %v2022_v21  ;;  %v2141_v6 = vpop.permute.xlu0 %2140 }
 0xd67   :  { %v2158_v59 = vmul.f32 %v2141_v6, %v2021_v31 }
 0xd68   :  { %v2169_v18 = vmul.f32 %v8783_v12, %v2159_v4 }
 0xd69   :  { %v2168_v1 = vmul.f32 %v8783_v12, %v2158_v59 }
 0xd6a   :  { %v2179_v25 = vadd.f32 %v8784_v2, %v2169_v18 }
 0xd6b   :  { %v2178_v23 = vadd.f32 %v8784_v2, %v2168_v1 }
 0xd6c   :  { %v2156_v41 = vpop.permute.xlu1 %2155 }
 0xd6d   :  { %v2161_v42 = vmul.f32 %v2156_v41, %v2024_v17  ;;  %9986 = vmatprep.mubr.msk.f32.mxu1 %vm356_vm8, %v2178_v23  ;;  %v2151_v43 = vpop.permute.xlu0 %2150  ;;  %v2329_v17 = vld [vmem:[%s13719_s19 + $0x18] sm:$0xff] }
 0xd6e   :  { %v2160_v24 = vmul.f32 %v2151_v43, %v2023_v47  ;;  %9987 = vmatmul.mubr.msk.f32.vlgmr.msra.gmra.mrb[30].mxu1 %vm356_vm8, %v2179_v25  ;;  %v2327_v47 = vld [vmem:[%s13719_s19 + $0x8] sm:$0xff]  ;;  %v10986_v19 = vpack.c.bf16 %v2329_v17, %v2328_v45 }
 0xd6f   :  { %v2171_v32 = vmul.f32 %v8783_v12, %v2161_v42  ;;  %11015 = vmatpush3.bf16.msra.mxu1 %v11715_v14  ;;  %v10982_v10 = vpack.c.bf16 %v2327_v47, %v2326_v44 }
 0xd70   :  { %v2170_v21 = vmul.f32 %v8783_v12, %v2160_v24  ;;  %11016 = vmatprep.subr.bf16.mxu1 %v11715_v14 }
 0xd71   :  { %v2181_v55 = vadd.f32 %v8784_v2, %v2171_v32  ;;  %10983 = vmatprep.subr.bf16.mxu0 %v10982_v10 }
 0xd72   :  { %v2180_v31 = vadd.f32 %v8784_v2, %v2170_v21  ;;  %10985 = vmatpush3.bf16.msra.mxu0 %v10982_v10 }
 0xd73   :  { %11017 = vmatpush3.bf16.msra.mxu1 %v11715_v14  ;;  %10987 = vmatprep.subr.bf16.mxu0 %v10986_v19 }
 0xd74   :  { %9989 = vmatprep.mubr.msk.f32.mxu1 %vm356_vm8, %v2180_v31  ;;  %11018 = vmatprep.subr.bf16.mxu1 %v11715_v14 }
 0xd75   :  { %9990 = vmatmul.mubr.msk.f32.gmra.mrb[32].mxu1 %vm356_vm8, %v2181_v55 }
 0xd76   :  { %10989 = vmatpush3.bf16.msra.mxu0 %v10986_v19 }
 0xd77   :  { %10991 = vmatprep.subr.bf16.mxu0 %v10990_v49 }
 0xd7a   :  { %10993 = vmatpush3.bf16.msra.mxu0 %v10990_v49 }
 0xd7b   :  { %10995 = vmatprep.subr.bf16.mxu0 %v10994_v20 }
 0xd7e   :  { %10997 = vmatpush3.bf16.msra.mxu0 %v10994_v20 }
 0xd7f   :  { %10999 = vmatprep.subr.bf16.mxu0 %v10998_v35 }
 0xd82   :  { %11001 = vmatpush3.bf16.msra.mxu0 %v10998_v35 }
 0xd83   :  { %11003 = vmatprep.subr.bf16.mxu0 %v11002_v54 }
 0xd86   :  { %11005 = vmatpush3.bf16.msra.mxu0 %v11002_v54 }
 0xd87   :  { %11007 = vmatprep.subr.bf16.mxu0 %v11006_v58 }
 0xd8a   :  { %11009 = vmatpush3.bf16.msra.mxu0 %v11006_v58 }
 0xd8b   :  { %11011 = vmatprep.subr.bf16.mxu0 %v11010_v62 }
 0xd8e   :  { %11013 = vmatpush3.bf16.msra.mxu0 %v11010_v62 }
 0xe41   :  { %v9988_v3 = vpop.f32.mrb[30].mxu1 }
 0xe42   :  { %v2277_v5 = vadd.f32 %v9988_v3, %v8785_v0  ;;  %v2271_v9 = vpop.f32.mrb[31].mxu1  ;;  %v8790_v3 = vld [vmem:[%s13720_s20] ss:$0 sm:$0xff] }
 0xe43   :  { %v2272_v12 = vadd.f32 %v8785_v0, %v2271_v9 }
 0xe44   :  { %v2291_v16 = vmul.f32 %v2277_v5, %v2277_v5 }
 0xe45   :  { %v2290_v4 = vmul.f32 %v2272_v12, %v2272_v12 }
 0xe46   :  { %v2295_v6 = vmul.f32 %v2291_v16, %v2277_v5 }
 0xe47   :  { %v2294_v59 = vmul.f32 %v2290_v4, %v2272_v12 }
 0xe48   :  { %v2299_v2 = vmul.f32 0.044715, %v2295_v6  ;;  %v9991_v18 = vpop.f32.mrb[32].mxu1 }
 0xe49   :  { %v2298_v1 = vmul.f32 0.044715, %v2294_v59  ;;  %v2287_v23 = vadd.f32 %v9991_v18, %v8785_v0  ;;  %v2281_v25 = vpop.f32.mrb[33].mxu1 }
 0xe4a   :  { %v2303_v41 = vadd.f32 %v2299_v2, %v2277_v5  ;;  %v2282_v42 = vadd.f32 %v8785_v0, %v2281_v25 }
 0xe4b   :  { %v2302_v43 = vadd.f32 %v2298_v1, %v2272_v12  ;;  %v2293_v24 = vmul.f32 %v2287_v23, %v2287_v23 }
 0xe4c   :  { %v2307_v32 = vmul.f32 0.7978846, %v2303_v41  ;;  %v2292_v21 = vmul.f32 %v2282_v42, %v2282_v42 }
 0xe4d   :  { %v2306_v31 = vmul.f32 0.7978846, %v2302_v43  ;;  %v2297_v55 = vmul.f32 %v2293_v24, %v2287_v23 }
 0xe4e   :  { %11503 = vtanh.f32 %v2307_v32  ;;  %v2296_v44 = vmul.f32 %v2292_v21, %v2282_v42 }
 0xe4f   :  { %v2301_v47 = vmul.f32 0.044715, %v2297_v55  ;;  %11505 = vtanh.f32 %v2306_v31 }
 0xe50   :  { %v2300_v10 = vmul.f32 0.044715, %v2296_v44 }
 0xe51   :  { %v2305_v45 = vadd.f32 %v2301_v47, %v2287_v23 }
 0xe52   :  { %v2304_v17 = vadd.f32 %v2300_v10, %v2282_v42 }
 0xe53   :  { %v2309_v19 = vmul.f32 0.7978846, %v2305_v45 }
 0xe54   :  { %v2308_v46 = vmul.f32 0.7978846, %v2304_v17 }
 0xe55   :  { %11507 = vtanh.f32 %v2309_v19 }
 0xe56   :  { %11509 = vtanh.f32 %v2308_v46 }
 0xe58   :  { %v11504_v48 = vpop.eup %11503 }
 0xe59   :  { %v11506_v49 = vpop.eup %11505  ;;  %v2315_v50 = vadd.f32 1.0, %v11504_v48 }
 0xe5a   :  { %v2314_v51 = vadd.f32 1.0, %v11506_v49 }
 0xe5b   :  { %v2319_v20 = vmul.f32 0.5, %v2315_v50 }
 0xe5c   :  { %v2318_v15 = vmul.f32 0.5, %v2314_v51 }
 0xe5d   :  { %v2323_v53 = vmul.f32 %v2319_v20, %v2277_v5 }
 0xe5e   :  { %v2322_v52 = vmul.f32 %v2318_v15, %v2272_v12 }
 0xe5f   :  { %v11508_v35 = vpop.eup %11507 }
 0xe60   :  { %v11510_v56 = vpop.eup %11509  ;;  %10024 = vmatprep.mubr.f32.mxu0 %v2322_v52  ;;  %v2317_v54 = vadd.f32 1.0, %v11508_v35 }
 0xe61   :  { %10025 = vmatmul.mubr.f32.vlgmr.msra.gmra.mrb[40].mxu0 %v2323_v53  ;;  %v2316_v38 = vadd.f32 1.0, %v11510_v56 }
 0xe62   :  { %v2321_v57 = vmul.f32 0.5, %v2317_v54 }
 0xe63   :  { %v2320_v58 = vmul.f32 0.5, %v2316_v38  ;;  %v8803_v38 = vld [vmem:[%s13710_s10 + $0x20] sm:$0xff] }
 0xe64   :  { %v2325_v61 = vmul.f32 %v2321_v57, %v2287_v23  ;;  %v8804_v57 = vld [vmem:[%s13710_s10 + $0x28] sm:$0xff] }
 0xe65   :  { %v2324_v63 = vmul.f32 %v2320_v58, %v2282_v42  ;;  %v8819_v58 = vld [vmem:[%s13712_s12 + $0x20] sm:$0xff] }
 0xe67   :  { %10027 = vmatprep.mubr.f32.mxu0 %v2324_v63 }
 0xe68   :  { %10028 = vmatmul.mubr.f32.gmra.mrb[42].mxu0 %v2325_v61  ;;  %v11022_v61 = vpack.c.bf16 %v8804_v57, %v8803_v38 }
 0xf34   :  { %v10026_v62 = vpop.f32.mrb[40].mxu0 }
 0xf35   :  { %v2428_v0 = vadd.f32 %v10026_v62, %v12374_v13  ;;  %v2408_v9 = vpop.f32.mrb[41].mxu0  ;;  %v8820_v62 = vld [vmem:[%s13712_s12 + $0x28] sm:$0xff] }
 0xf36   :  { %v2427_v5 = vadd.f32 %v2408_v9, %v12372_v11  ;;  %v8805_v9 = vld [vmem:[%s13710_s10 + $0x30] sm:$0xff] }
 0xf37   :  { %v12483_v16 = vadd.f32 %v8790_v3, %v2428_v0 }
 0xf38   :  { %v12481_v12 = vadd.f32 %v8790_v3, %v2427_v5  ;;  %v8806_v5 = vld [vmem:[%s13710_s10 + $0x38] sm:$0xff] }
 0xf3a   :  { %10038 = vmatprep.mubr.msk.f32.mxu1 %vm356_vm8, %v12481_v12 }
 0xf3b   :  { %v10029_v4 = vpop.f32.mrb[42].mxu0  ;;  %10039 = vmatmul.mubr.msk.f32.vlgmr.msra.gmra.mrb[34].mxu1 %vm356_vm8, %v12483_v16 }
 0xf3c   :  { %v2430_v13 = vadd.f32 %v10029_v4, %v12384_v8  ;;  %v2418_v6 = vpop.f32.mrb[43].mxu0  ;;  %11019 = vmatpush3.bf16.msra.mxu1 %v11715_v14  ;;  %v8821_v4 = vld [vmem:[%s13712_s12 + $0x30] sm:$0xff] }
 0xf3d   :  { %v2429_v59 = vadd.f32 %v2418_v6, %v12382_v60  ;;  %11020 = vmatprep.subr.bf16.mxu1 %v11715_v14  ;;  %v8822_v6 = vld [vmem:[%s13712_s12 + $0x38] sm:$0xff] }
 0xf3e   :  { %v12495_v2 = vadd.f32 %v8790_v3, %v2430_v13  ;;  %v11026_v13 = vpack.c.bf16 %v8806_v5, %v8805_v9 }
 0xf3f   :  { %v12493_v11 = vadd.f32 %v8790_v3, %v2429_v59  ;;  %v11038_v3 = vpack.c.bf16 %v8820_v62, %v8819_v58  ;;  %v11042_v59 = vpack.c.bf16 %v8822_v6, %v8821_v4 }
 0xf40   :  { %11021 = vmatpush3.bf16.msra.mxu1 %v11715_v14 }
 0xf41   :  { %10041 = vmatprep.mubr.msk.f32.mxu1 %vm356_vm8, %v12493_v11  ;;  %11023 = vmatprep.subr.bf16.mxu1 %v11022_v61 }
 0xf42   :  { %10042 = vmatmul.mubr.msk.f32.gmra.mrb[36].mxu1 %vm356_vm8, %v12495_v2  ;;  %11039 = vmatprep.subr.bf16.mxu0 %v11038_v3 }
 0xf43   :  { %11041 = vmatpush3.bf16.msra.mxu0 %v11038_v3 }
 0xf44   :  { %11043 = vmatprep.subr.bf16.mxu0 %v11042_v59 }
 0xf47   :  { %11045 = vmatpush3.bf16.msra.mxu0 %v11042_v59 }
 0xf48   :  { %11054 = vmatprep.subr.bf16.mxu0 %v11717_v34 }
0x100e   :  { %v10040_v8 = vpop.f32.mrb[34].mxu1 }
0x100f   :  { %v2544_v18 = vmul.f32 0.03125, %v10040_v8  ;;  %v2524_v1 = vpop.f32.mrb[35].mxu1 }
0x1010   :  { %v2543_v23 = vmul.f32 0.03125, %v2524_v1  ;;  %v8811_v1 = vld [vmem:[%s13711_s11 + $0x20] sm:$0xff] }
0x1011   :  { %2554 = vperm.xlu1 %11452, %v2544_v18  }
0x1012   :  { %2549 = vperm.xlu0 %11451, %v2543_v23   ;;  %v8812_v23 = vld [vmem:[%s13711_s11 + $0x28] sm:$0xff] }
0x1015   :  { %v10043_v60 = vpop.f32.mrb[36].mxu1 }
0x1016   :  { %v2546_v25 = vmul.f32 0.03125, %v10043_v60  ;;  %v2534_v41 = vpop.f32.mrb[37].mxu1  ;;  %v11030_v60 = vpack.c.bf16 %v8812_v23, %v8811_v1 }
0x1017   :  { %v2545_v42 = vmul.f32 0.03125, %v2534_v41 }
0x1018   :  { %2564 = vperm.xlu1 %11452, %v2546_v25   ;;  %v8801_v25 = vld [vmem:[%s13708_s8 + $0x1] ss:$0 sm:$0xff] }
0x1019   :  { %2559 = vperm.xlu0 %11451, %v2545_v42  }
0x1090   :  { %v2555_v43 = vpop.permute.xlu1 %2554 }
0x1091   :  { %v12503_v24 = vsub.f32 %v12483_v16, %v2555_v43  ;;  %v2550_v32 = vpop.permute.xlu0 %2549 }
0x1092   :  { %v12506_v21 = vsub.f32 %v12481_v12, %v2550_v32 }
0x1093   :  { %v2572_v55 = vmul.f32 %v12503_v24, %v12503_v24 }
0x1094   :  { %v2571_v31 = vmul.f32 %v12506_v21, %v12506_v21 }
0x1096   :  { %10052 = vmatprep.mubr.msk.f32.mxu1 %vm356_vm8, %v2571_v31  ;;  %v8802_v31 = vld [vmem:[%s13709_s9 + $0x1] ss:$0 sm:$0xff] }
0x1097   :  { %10053 = vmatmul.mubr.msk.f32.vlgmr.msra.gmra.mrb[38].mxu1 %vm356_vm8, %v2572_v55  ;;  %v2565_v44 = vpop.permute.xlu1 %2564 }
0x1098   :  { %v12515_v47 = vsub.f32 %v12495_v2, %v2565_v44  ;;  %v2560_v10 = vpop.permute.xlu0 %2559  ;;  %11025 = vmatpush3.bf16.msra.mxu1 %v11022_v61 }
0x1099   :  { %v12518_v45 = vsub.f32 %v12493_v11, %v2560_v10  ;;  %11027 = vmatprep.subr.bf16.mxu1 %v11026_v13  ;;  %v8813_v10 = vld [vmem:[%s13711_s11 + $0x30] sm:$0xff] }
0x109a   :  { %v2574_v19 = vmul.f32 %v12515_v47, %v12515_v47 }
0x109b   :  { %v2573_v17 = vmul.f32 %v12518_v45, %v12518_v45 }
0x109c   :  { %11029 = vmatpush3.bf16.msra.mxu1 %v11026_v13 }
0x109d   :  { %10055 = vmatprep.mubr.msk.f32.mxu1 %vm356_vm8, %v2573_v17  ;;  %11031 = vmatprep.subr.bf16.mxu1 %v11030_v60  ;;  %v8814_v17 = vld [vmem:[%s13711_s11 + $0x38] sm:$0xff] }
0x109e   :  { %10056 = vmatmul.mubr.msk.f32.gmra.mrb[40].mxu1 %vm356_vm8, %v2574_v19 }
0x116a   :  { %v10054_v46 = vpop.f32.mrb[38].mxu1 }
0x116b   :  { %v2673_v48 = vmul.f32 0.03125, %v10054_v46  ;;  %v2653_v49 = vpop.f32.mrb[39].mxu1 }
0x116c   :  { %v2672_v50 = vmul.f32 0.03125, %v2653_v49 }
0x116d   :  { %v2677_v51 = vadd.f32 1e-05, %v2673_v48  ;;  %v11034_v48 = vpack.c.bf16 %v8814_v17, %v8813_v10 }
0x116e   :  { %v2676_v20 = vadd.f32 1e-05, %v2672_v50 }
0x116f   :  { %11511 = vrsqrt.f32 %v2677_v51 }
0x1170   :  { %11513 = vrsqrt.f32 %v2676_v20 }
0x1171   :  { %v10057_v15 = vpop.f32.mrb[40].mxu1 }
0x1172   :  { %v2675_v52 = vmul.f32 0.03125, %v10057_v15  ;;  %v2663_v35 = vpop.f32.mrb[41].mxu1 }
0x1173   :  { %v2674_v53 = vmul.f32 0.03125, %v2663_v35 }
0x1174   :  { %v2679_v56 = vadd.f32 1e-05, %v2675_v52 }
0x1175   :  { %v2678_v54 = vadd.f32 1e-05, %v2674_v53 }
0x1176   :  { %11515 = vrsqrt.f32 %v2679_v56 }
0x1177   :  { %11517 = vrsqrt.f32 %v2678_v54 }
0x1179   :  { %v11512_v63 = vpop.eup %11511 }
0x117a   :  { %v11514_v0 = vpop.eup %11513  ;;  %2691 = vperm.xlu1 %11452, %v11512_v63  }
0x117b   :  { %2686 = vperm.xlu0 %11451, %v11514_v0  }
0x1180   :  { %v11516_v8 = vpop.eup %11515 }
0x1181   :  { %v11518_v18 = vpop.eup %11517  ;;  %2701 = vperm.xlu1 %11452, %v11516_v8  }
0x1182   :  { %2696 = vperm.xlu0 %11451, %v11518_v18  }
0x11f9   :  { %v2692_v41 = vpop.permute.xlu1 %2691 }
0x11fa   :  { %v2705_v42 = vmul.f32 %v2692_v41, %v12503_v24  ;;  %v2687_v43 = vpop.permute.xlu0 %2686 }
0x11fb   :  { %v2704_v32 = vmul.f32 %v2687_v43, %v12506_v21 }
0x11fc   :  { %v2715_v55 = vmul.f32 %v8801_v25, %v2705_v42 }
0x11fd   :  { %v2714_v44 = vmul.f32 %v8801_v25, %v2704_v32 }
0x11fe   :  { %v2725_v46 = vadd.f32 %v8802_v31, %v2715_v55 }
0x11ff   :  { %v2724_v19 = vadd.f32 %v8802_v31, %v2714_v44 }
0x1200   :  { %v2702_v24 = vpop.permute.xlu1 %2701 }
0x1201   :  { %v2707_v21 = vmul.f32 %v2702_v24, %v12515_v47  ;;  %10066 = vmatprep.mubr.msk.f32.mxu1 %vm356_vm8, %v2724_v19  ;;  %10094 = vmatprep.mubr.msk.f32.mxu0 %vm356_vm8, %v2724_v19  ;;  %v2697_v49 = vpop.permute.xlu0 %2696 }
0x1202   :  { %v2706_v50 = vmul.f32 %v2697_v49, %v12518_v45  ;;  %10067 = vmatmul.mubr.msk.f32.vlgmr.msra.gmra.mrb[42].mxu1 %vm356_vm8, %v2725_v46  ;;  %10095 = vmatmul.mubr.msk.f32.vlgmr.msra.gmra.mrb[44].mxu0 %vm356_vm8, %v2725_v46 }
0x1203   :  { %v2717_v51 = vmul.f32 %v8801_v25, %v2707_v21  ;;  %11033 = vmatpush3.bf16.msra.mxu1 %v11030_v60 }
0x1204   :  { %v2716_v20 = vmul.f32 %v8801_v25, %v2706_v50  ;;  %11035 = vmatprep.subr.bf16.mxu1 %v11034_v48 }
0x1205   :  { %v2727_v52 = vadd.f32 %v8802_v31, %v2717_v51 }
0x1206   :  { %v2726_v15 = vadd.f32 %v8802_v31, %v2716_v20 }
0x1207   :  { %11037 = vmatpush3.bf16.msra.mxu1 %v11034_v48 }
0x1208   :  { %10069 = vmatprep.mubr.msk.f32.mxu1 %vm356_vm8, %v2726_v15  ;;  %10097 = vmatprep.mubr.msk.f32.mxu0 %vm356_vm8, %v2726_v15 }
0x1209   :  { %10070 = vmatmul.mubr.msk.f32.gmra.mrb[44].mxu1 %vm356_vm8, %v2727_v52  ;;  %10098 = vmatmul.mubr.msk.f32.gmra.mrb[46].mxu0 %vm356_vm8, %v2727_v52 }
0x120a   :  { %10080 = vmatprep.mubr.msk.f32.mxu1 %vm356_vm8, %v2724_v19  ;;  %11047 = vmatprep.subr.bf16.mxu1 %v12155_v30 }
0x120b   :  { %10122 = vmatprep.mubr.msk.f32.mxu0 %vm11718_vm9, %v11714_v7 }
0x120d   :  { %10081 = vmatmul.mubr.msk.f32.vlgmr.msra.gmra.mrb[46].mxu1 %vm356_vm8, %v2725_v46 }
0x120e   :  { %10083 = vmatprep.mubr.msk.f32.mxu1 %vm356_vm8, %v2726_v15  ;;  %11049 = vmatpush3.bf16.msra.mxu1 %v12155_v30 }
0x120f   :  { %11051 = vmatprep.subr.bf16.mxu1 %v12171_v33 }
0x1211   :  { %10084 = vmatmul.mubr.msk.f32.gmra.mrb[48].mxu1 %vm356_vm8, %v2727_v52  ;;  %v11663_v52 = vld [vmem:[%s13748_s30] sm:$0x3] }
0x1212   :  { %11053 = vmatpush3.bf16.msra.mxu1 %v12171_v33 }
0x12d5   :  { %v12591_v47 = vpop.f32.mrb[42].mxu1  ;;  %v10096_v45 = vpop.f32.mrb[44].mxu0 }
0x12d6   :  { %v12593_v35 = vpop.f32.mrb[43].mxu1  ;;  %v2991_v53 = vpop.f32.mrb[45].mxu0  ;;  %v3013_v56 = vsel %vm356_vm8, %v12591_v47, -inf }
0x12d7   :  { %v12597_v54 = vpack.c.bf16 %v10096_v45, %v2991_v53  ;;  %3014 = vmax.xlane.f32.xlu1 %v3013_v56  ;;  %v3010_v38 = vsel %vm356_vm8, %v12593_v35, -inf  ;;  %v11664_v45 = vld [vmem:[%s13749_s5] sm:$0xff] }
0x12d8   :  { %3011 = vmax.xlane.f32.xlu0 %v3010_v38 }
0x12d9   :  { %11062 = vmatprep.subr.bf16.mxu1 %v12597_v54 }
0x12dc   :  { %v12602_v57 = vpop.f32.mrb[44].mxu1  ;;  %v10099_v58 = vpop.f32.mrb[46].mxu0 }
0x12dd   :  { %v2821_v63 = vpop.f32.mrb[45].mxu1  ;;  %v3001_v61 = vpop.f32.mrb[47].mxu0  ;;  %v3019_v13 = vsel %vm927_vm10, %v12602_v57, -inf }
0x12de   :  { %v12604_v62 = vpack.c.bf16 %v10099_v58, %v3001_v61  ;;  %v3016_v0 = vsel %vm356_vm8, %v2821_v63, -inf }
0x12df   :  { %3017 = vmax.xlane.f32.xlu0 %v3016_v0 }
0x12e0   :  { %v10082_v3 = vpop.f32.mrb[46].mxu1 }
0x12e1   :  { %v3140_v9 = vsel %vm356_vm8, %v10082_v3, -inf  ;;  %v2901_v5 = vpop.f32.mrb[47].mxu1 }
0x12e2   :  { %v3139_v4 = vsel %vm356_vm8, %v2901_v5, -inf }
0x12e3   :  { %v3143_v6 = vmax.f32 %v3139_v4, %v3140_v9  ;;  %3020 = vmax.xlane.f32.xlu0 %v3019_v13 }
0x12e4   :  { %v10085_v59 = vpop.f32.mrb[48].mxu1 }
0x12e5   :  { %v3142_v8 = vsel %vm927_vm10, %v10085_v59, -inf  ;;  %v2911_v18 = vpop.f32.mrb[49].mxu1 }
0x12e6   :  { %v3141_v1 = vsel %vm356_vm8, %v2911_v18, -inf }
0x12e7   :  { %v3144_v23 = vmax.f32 %v3141_v1, %v3142_v8  ;;  %v11665_v1 = vld [vmem:[%s13749_s5 + $0x8] sm:$0xff] }
0x12e9   :  { %v3145_v60 = vmax.f32 %v3143_v6, %v3144_v23  ;;  %v11666_v23 = vld [vmem:[%s13749_s5 + $0x10] sm:$0xff] }
0x12eb   :  { %v3146_v25 = vrot.slane %v3145_v60, 4 }
0x12ed   :  { %v3147_v41 = vmax.f32 %v3145_v60, %v3146_v25  ;;  %v11667_v60 = vld [vmem:[%s13749_s5 + $0x18] sm:$0x3f] }
0x12ef   :  { %v3148_v42 = vrot.slane %v3147_v41, 2 }
0x12f1   :  { %v3149_v43 = vmax.f32 %v3147_v41, %v3148_v42 }
0x12f3   :  { %v3150_v32 = vrot.slane %v3149_v43, 1 }
0x12f5   :  { %v3151_v31 = vmax.f32 %v3149_v43, %v3150_v32 }
0x12f7   :  { %v3152_v55 = vsub.f32 %v2901_v5, %v3151_v31  ;;  %v3153_v44 = vsub.f32 %v10082_v3, %v3151_v31  ;;  %v3154_v10 = vsub.f32 %v2911_v18, %v3151_v31  ;;  %v3155_v17 = vsub.f32 %v10085_v59, %v3151_v31 }
0x12f9   :  { %v3156_v19 = vmul.f32 1.442695, %v3152_v55  ;;  %v3158_v46 = vmul.f32 1.442695, %v3153_v44  ;;  %v3160_v24 = vmul.f32 1.442695, %v3154_v10 }
0x12fa   :  { %v3162_v48 = vmul.f32 1.442695, %v3155_v17 }
0x12fb   :  { %11519 = vpow2.f32 %v3156_v19 }
0x12fc   :  { %11521 = vpow2.f32 %v3158_v46 }
0x12fd   :  { %11523 = vpow2.f32 %v3160_v24 }
0x12fe   :  { %11525 = vpow2.f32 %v3162_v48 }
0x1305   :  { %v12613_v21 = vpop.eup %11519 }
0x1306   :  { %v12615_v49 = vpop.eup %11521 }
0x1307   :  { %v12617_v50 = vpop.eup %11523  ;;  %v11055_v51 = vpack.c.bf16 %v12615_v49, %v12613_v21 }
0x1308   :  { %v12621_v20 = vpop.eup %11525 }
0x1309   :  { %11056 = vmatpush3.bf16.msra.mxu0 %v11055_v51  ;;  %v11058_v15 = vpack.c.bf16 %v12621_v20, %v12617_v50 }
0x130a   :  { %11057 = vmatprep.subr.bf16.mxu0 %v11717_v34 }
0x130d   :  { %11060 = vmatpush3.bf16.msk.msra.mxu0 %vm12214_vm13, %v11058_v15 }
0x1310   :  { %10123 = vmatmul.mubr.msk.f32.vlgmr.msra.gmra.mrb[48].mxu0 %vm1073_vm14, %v11663_v52 }
0x1311   :  { %10127 = vmatprep.mubr.msk.f32.mxu0 %vm1152_vm15, %v11664_v45 }
0x1364   :  { %v3015_v53 = vpop.xlane.xlu1 %3014 }
0x1365   :  { %v3023_v56 = vsub.f32 %v12591_v47, %v3015_v53  ;;  %v3012_v38 = vpop.xlane.xlu0 %3011 }
0x1366   :  { %v3022_v58 = vsub.f32 %v12593_v35, %v3012_v38 }
0x1367   :  { %v3028_v61 = vmul.f32 1.442695, %v3023_v56 }
0x1368   :  { %v3026_v0 = vmul.f32 1.442695, %v3022_v58 }
0x136a   :  { %11527 = vpow2.f32 %v3026_v0 }
0x136b   :  { %11529 = vpow2.f32 %v3028_v61 }
0x136c   :  { %v3018_v3 = vpop.xlane.xlu0 %3017 }
0x136d   :  { %v3024_v9 = vsub.f32 %v2821_v63, %v3018_v3 }
0x136f   :  { %v3030_v5 = vmul.f32 1.442695, %v3024_v9 }
0x1370   :  { %v3021_v4 = vpop.xlane.xlu0 %3020 }
0x1371   :  { %11531 = vpow2.f32 %v3030_v5  ;;  %v3025_v13 = vsub.f32 %v12602_v57, %v3021_v4  ;;  %v11668_v5 = vld [vmem:[%s13745_s2 + $0x8] sm:$0xff] }
0x1373   :  { %v3032_v6 = vmul.f32 1.442695, %v3025_v13  ;;  %v11669_v13 = vld [vmem:[%s13745_s2] sm:$0xff] }
0x1374   :  { %v11528_v59 = vpop.eup %11527 }
0x1375   :  { %v12639_v8 = vpop.eup %11529  ;;  %11533 = vpow2.f32 %v3032_v6  ;;  %10108 = vmatprep.mubr.msk.f32.mxu1 %vm356_vm8, %v11528_v59 }
0x1376   :  { %10109 = vmatmul.mubr.msk.f32.vlgmr.msra.gmra.mrb[50].mxu1 %vm356_vm8, %v12639_v8 }
0x1377   :  { %11064 = vmatpush3.bf16.msra.mxu1 %v12597_v54 }
0x1378   :  { %11067 = vmatprep.subr.msk.bf16.mxu1 %vm12214_vm13, %v12604_v62 }
0x137b   :  { %v12648_v47 = vpop.eup %11531  ;;  %11070 = vmatpush3.bf16.msk.msra.mxu1 %vm12214_vm13, %v12604_v62 }
0x137c   :  { %11080 = vmatprep.subr.bf16.mxu1 %v12597_v54  ;;  %10111 = vmatprep.mubr.msk.f32.mxu1 %vm356_vm8, %v12648_v47 }
0x137f   :  { %v12656_v35 = vpop.eup %11533 }
0x1380   :  { %10112 = vmatmul.mubr.msk.f32.gmra.mrb[52].mxu1 %vm356_vm8, %v12656_v35 }
0x13e3   :  { %v3233_v57 = vpop.f32.mrb[48].mxu0 }
0x13e4   :  { %11535 = vrcp.f32 %v3233_v57  ;;  %v10124_v63 = vpop.f32.mrb[49].mxu0 }
0x13e5   :  { %v11670_v63 = vld [vmem:[%s13745_s2 + $0x18] sm:$0xff] }
0x13ee   :  { %v11536_v18 = vpop.eup %11535 }
0x13ef   :  { %10125 = vmatprep.subr.msk.mxu0 %vm1165_vm0, %v11536_v18 }
0x13f0   :  { %10126 = vmatpush3.msk.msra.mxu0 %vm1165_vm0, %v11536_v18 }
0x13f1   :  { %10128 = vmatmul.mubr.msk.f32.vlgmr.msra.gmra.mrb[50].mxu0 %vm1152_vm15, %v11665_v1 }
0x13f2   :  { %10130 = vmatprep.mubr.msk.f32.mxu0 %vm1152_vm15, %v11666_v23  ;;  %v11671_v23 = vld [vmem:[%s13745_s2 + $0x10] sm:$0xff] }
0x13f5   :  { %10131 = vmatmul.mubr.msk.f32.gmra.mrb[52].mxu0 %vm1152_vm15, %v11667_v60 }
0x1449   :  { %v10110_v25 = vpop.f32.mrb[50].mxu1 }
0x144a   :  { %v3112_v41 = vpop.f32.mrb[51].mxu1 }
0x144b   :  { %11537 = vrcp.f32 %v3112_v41 }
0x144c   :  { %11539 = vrcp.f32 %v10110_v25 }
0x1453   :  { %v10113_v42 = vpop.f32.mrb[52].mxu1 }
0x1454   :  { %v3122_v43 = vpop.f32.mrb[53].mxu1 }
0x1455   :  { %v11538_v32 = vpop.eup %11537  ;;  %11541 = vrcp.f32 %v3122_v43 }
0x1456   :  { %v12674_v31 = vmul.f32 %v11538_v32, %v11528_v59  ;;  %11543 = vrcp.f32 %v10113_v42  ;;  %v11540_v25 = vpop.eup %11539 }
0x1458   :  { %10155 = vmatprep.mubr.msk.f32.mxu0 %vm356_vm8, %v12674_v31 }
0x14c4   :  { %v10129_v55 = vpop.f32.mrb[50].mxu0 }
0x14c5   :  { %v3307_v44 = vpop.f32.mrb[51].mxu0  ;;  %v3327_v17 = vmul.f32 %v12615_v49, %v10129_v55 }
0x14c6   :  { %v3326_v10 = vmul.f32 %v12613_v21, %v3307_v44  ;;  %v11542_v44 = vpop.eup %11541 }
0x14c7   :  { %v3331_v51 = vmul.f32 %v3327_v17, %v12232_v29  ;;  %v3576_v15 = vmul.f32 %v3327_v17, %v12240_v40 }
0x14c8   :  { %v3330_v19 = vmul.f32 %v3326_v10, %v12226_v26  ;;  %v3575_v46 = vmul.f32 %v3326_v10, %v12230_v28  ;;  %v10132_v24 = vpop.f32.mrb[52].mxu0  ;;  %v3136_v10 = vmul.f32 %v11540_v25, %v12639_v8  ;;  %v8856_v8 = vld [vmem:[%s13713_s13 + $0x20] sm:$0xff] }
0x14c9   :  { %v3317_v48 = vpop.f32.mrb[53].mxu0  ;;  %v3329_v21 = vmul.f32 %v12621_v20, %v10132_v24 }
0x14ca   :  { %3579 = vxpose.xlu0.b32.start [1/4] (short) (narrow) %v3575_v46, 32  ;;  %3334 = vxpose.xlu1.b32.start [1/4] (short) (narrow) %v3330_v19, 32  ;;  %v3328_v52 = vmul.f32 %v12617_v50, %v3317_v48  ;;  %v11544_v46 = vpop.eup %11543 }
0x14cb   :  { %v3333_v53 = vmul.f32 %v3329_v21, %v12236_v37  ;;  %v3578_v56 = vmul.f32 %v3329_v21, %v12238_v39  ;;  %v3138_v21 = vmul.f32 %v11544_v46, %v12656_v35 }
0x14cc   :  { %v3332_v49 = vmul.f32 %v3328_v52, %v12228_v27  ;;  %v3577_v45 = vmul.f32 %v3328_v52, %v12234_v36 }
0x14ce   :  { %3580 = vxpose.xlu0.b32.cont [2/4] (short) (narrow) %v3576_v15, 32  ;;  %3335 = vxpose.xlu1.b32.cont [2/4] (short) (narrow) %v3331_v51, 32  ;;  %v3137_v51 = vmul.f32 %v11542_v44, %v12648_v47  ;;  %v8857_v47 = vld [vmem:[%s13713_s13 + $0x28] sm:$0xff] }
0x14cf   :  { %v11097_v35 = vpack.c.bf16 %v8857_v47, %v8856_v8 }
0x14d2   :  { %3581 = vxpose.xlu0.b32.cont [3/4] (short) (narrow) %v3577_v45, 32  ;;  %3336 = vxpose.xlu1.b32.cont [3/4] (short) (narrow) %v3332_v49, 32  ;;  %v8859_v49 = vld [vmem:[%s13713_s13 + $0x38] sm:$0xff] }
0x14d6   :  { %3582 = vxpose.xlu0.b32.end [4/4] (short) (narrow) %v3578_v56, 32  ;;  %3337 = vxpose.xlu1.b32.end [4/4] (short) (narrow) %v3333_v53, 32 }
0x154a   :  { %v3350_v38 = vpop.trf.xlu1  ;;  %v3595_v58 = vpop.trf.xlu0 }
0x154b   :  { %10141 = vmatprep.mubr.msk.f32.mxu1 %vm1073_vm14, %v3350_v38 }
0x154e   :  { %v3351_v50 = vpop.trf.xlu1  ;;  %v3596_v20 = vpop.trf.xlu0 }
0x154f   :  { %10142 = vmatmul.mubr.msk.f32.vlgmr.msra.gmra.mrb[54].mxu1 %vm1073_vm14, %v3351_v50 }
0x1550   :  { %11082 = vmatpush3.bf16.msra.mxu1 %v12597_v54 }
0x1551   :  { %11085 = vmatprep.subr.msk.bf16.mxu1 %vm12214_vm13, %v12604_v62 }
0x1552   :  { %v3352_v61 = vpop.trf.xlu1  ;;  %v3597_v3 = vpop.trf.xlu0 }
0x1553   :  { %10144 = vmatprep.mubr.msk.f32.mxu1 %vm1073_vm14, %v3352_v61 }
0x1554   :  { %11088 = vmatpush3.bf16.msk.msra.mxu1 %vm12214_vm13, %v12604_v62 }
0x1555   :  { %11098 = vmatprep.subr.bf16.mxu1 %v11097_v35 }
0x1556   :  { %v3353_v0 = vpop.trf.xlu1  ;;  %v3598_v54 = vpop.trf.xlu0 }
0x1557   :  { %10145 = vmatmul.mubr.msk.f32.gmra.mrb[56].mxu1 %vm1073_vm14, %v3353_v0 }
0x1558   :  { %10169 = vmatprep.mubr.msk.f32.mxu1 %vm1073_vm14, %v3595_v58 }
0x155b   :  { %10170 = vmatmul.mubr.msk.f32.vlgmr.msra.gmra.mrb[58].mxu1 %vm1073_vm14, %v3596_v20 }
0x155c   :  { %10172 = vmatprep.mubr.msk.f32.mxu1 %vm1073_vm14, %v3597_v3  ;;  %11100 = vmatpush3.bf16.msra.mxu1 %v11097_v35 }
0x155f   :  { %10173 = vmatmul.mubr.msk.f32.gmra.mrb[60].mxu1 %vm1073_vm14, %v3598_v54 }
0x1622   :  { %v10143_v9 = vpop.f32.mrb[54].mxu1 }
0x1623   :  { %v3467_v4 = vmul.f32 %v11668_v5, %v10143_v9  ;;  %v3447_v62 = vpop.f32.mrb[55].mxu1 }
0x1624   :  { %v3466_v6 = vmul.f32 %v11669_v13, %v3447_v62 }
0x1626   :  { %v11071_v59 = vpack.c.bf16 %v3467_v4, %v3466_v6 }
0x1628   :  { %11072 = vmatprep.subr.bf16.mxu0 %v11071_v59 }
0x1629   :  { %11074 = vmatpush3.bf16.msra.mxu0 %v11071_v59 }
0x162a   :  { %v10146_v57 = vpop.f32.mrb[56].mxu1 }
0x162b   :  { %v3469_v18 = vmul.f32 %v11670_v63, %v10146_v57  ;;  %v3457_v1 = vpop.f32.mrb[57].mxu1 }
0x162c   :  { %v3468_v60 = vmul.f32 %v11671_v23, %v3457_v1 }
0x162e   :  { %v11075_v41 = vpack.c.bf16 %v3469_v18, %v3468_v60  ;;  %v10171_v32 = vpop.f32.mrb[58].mxu1  ;;  %v8865_v60 = vld [vmem:[%s13714_s14 + $0x1] ss:$0 sm:$0xff] }
0x162f   :  { %v3709_v43 = vmul.f32 %v11668_v5, %v10171_v32  ;;  %v3689_v55 = vpop.f32.mrb[59].mxu1 }
0x1630   :  { %v3708_v42 = vmul.f32 %v11669_v13, %v3689_v55  ;;  %11076 = vmatprep.subr.bf16.mxu0 %v11075_v41 }
0x1631   :  { %11078 = vmatpush3.bf16.msra.mxu0 %v11075_v41 }
0x1632   :  { %v11089_v17 = vpack.c.bf16 %v3709_v43, %v3708_v42  ;;  %v10174_v19 = vpop.f32.mrb[60].mxu1 }
0x1633   :  { %v3711_v24 = vmul.f32 %v11670_v63, %v10174_v19  ;;  %v3699_v48 = vpop.f32.mrb[61].mxu1 }
0x1634   :  { %v3710_v15 = vmul.f32 %v11671_v23, %v3699_v48  ;;  %10156 = vmatmul.mubr.msk.f32.vlgmr.msra.gmra.mrb[54].mxu0 %vm356_vm8, %v3136_v10  ;;  %11090 = vmatprep.subr.bf16.mxu0 %v11089_v17 }
0x1635   :  { %10158 = vmatprep.mubr.msk.f32.mxu0 %vm356_vm8, %v3137_v51  ;;  %11092 = vmatpush3.bf16.msra.mxu0 %v11089_v17 }
0x1636   :  { %v11093_v52 = vpack.c.bf16 %v3711_v24, %v3710_v15 }
0x1638   :  { %10159 = vmatmul.mubr.msk.f32.gmra.mrb[56].mxu0 %vm356_vm8, %v3138_v21  ;;  %11094 = vmatprep.subr.bf16.mxu0 %v11093_v52 }
0x1639   :  { %11096 = vmatpush3.bf16.msra.mxu0 %v11093_v52  ;;  %10183 = vmatprep.mubr.msk.f32.mxu0 %vm356_vm8, %v12674_v31  ;;  %v8858_v31 = vld [vmem:[%s13713_s13 + $0x30] sm:$0xff] }
0x163a   :  { %11105 = vmatprep.subr.bf16.mxu0 %v11715_v14  ;;  %v11101_v45 = vpack.c.bf16 %v8859_v49, %v8858_v31 }
0x163c   :  { %10184 = vmatmul.mubr.msk.f32.vlgmr.msra.gmra.mrb[58].mxu0 %vm356_vm8, %v3136_v10  ;;  %11102 = vmatprep.subr.bf16.mxu1 %v11101_v45 }
0x163d   :  { %10186 = vmatprep.mubr.msk.f32.mxu0 %vm356_vm8, %v3137_v51  ;;  %11106 = vmatpush3.bf16.msra.mxu0 %v11715_v14 }
0x163e   :  { %11107 = vmatprep.subr.bf16.mxu0 %v11715_v14  ;;  %11104 = vmatpush3.bf16.msra.mxu1 %v11101_v45 }
0x163f   :  { %11109 = vmatprep.subr.bf16.mxu1 %v11715_v14 }
0x1640   :  { %10187 = vmatmul.mubr.msk.f32.gmra.mrb[60].mxu0 %vm356_vm8, %v3138_v21 }
0x1641   :  { %11108 = vmatpush3.bf16.msra.mxu0 %v11715_v14 }
0x1707   :  { %v10157_v53 = vpop.f32.mrb[54].mxu0 }
0x1708   :  { %v3548_v56 = vpop.f32.mrb[55].mxu0  ;;  %v3568_v20 = vmul.f32 %v10157_v53, %v12232_v29 }
0x1709   :  { %v3567_v3 = vmul.f32 %v3548_v56, %v12226_v26 }
0x170b   :  { %v10160_v38 = vpop.f32.mrb[56].mxu0 }
0x170c   :  { %v3558_v58 = vpop.f32.mrb[57].mxu0  ;;  %v3570_v62 = vmul.f32 %v10160_v38, %v12236_v37 }
0x170d   :  { %v3569_v59 = vmul.f32 %v3558_v58, %v12228_v27 }
0x170f   :  { %v10185_v50 = vpop.f32.mrb[58].mxu0 }
0x1710   :  { %v3798_v61 = vmul.f32 %v10185_v50, %v12240_v40  ;;  %v3778_v0 = vpop.f32.mrb[59].mxu0 }
0x1711   :  { %v3797_v54 = vmul.f32 %v3778_v0, %v12230_v28 }
0x1712   :  { %v3802_v9 = vadd.f32 %v3798_v61, %v3568_v20 }
0x1713   :  { %v3801_v5 = vadd.f32 %v3797_v54, %v3567_v3  ;;  %v10188_v4 = vpop.f32.mrb[60].mxu0 }
0x1714   :  { %v3800_v13 = vmul.f32 %v10188_v4, %v12238_v39  ;;  %v3788_v6 = vpop.f32.mrb[61].mxu0 }
0x1715   :  { %v3799_v57 = vmul.f32 %v3788_v6, %v12234_v36  ;;  %10197 = vmatprep.mubr.msk.f32.mxu1 %vm356_vm8, %v3801_v5  ;;  %v8878_v6 = vld [vmem:[%s13717_s17 + $0x20] sm:$0xff] }
0x1716   :  { %v3804_v63 = vadd.f32 %v3800_v13, %v3570_v62  ;;  %10198 = vmatmul.mubr.msk.f32.vlgmr.msra.gmra.mrb[62].mxu1 %vm356_vm8, %v3802_v9 }
0x1717   :  { %v3803_v18 = vadd.f32 %v3799_v57, %v3569_v59  ;;  %11110 = vmatpush3.bf16.msra.mxu1 %v11715_v14  ;;  %v8879_v59 = vld [vmem:[%s13717_s17 + $0x28] sm:$0xff] }
0x1718   :  { %11111 = vmatprep.subr.bf16.mxu1 %v11715_v14 }
0x1719   :  { %10200 = vmatprep.mubr.msk.f32.mxu1 %vm356_vm8, %v3803_v18 }
0x171a   :  { %10201 = vmatmul.mubr.msk.f32.gmra.mrb[64].mxu1 %vm356_vm8, %v3804_v63  ;;  %v11113_v63 = vpack.c.bf16 %v8879_v59, %v8878_v6  ;;  %v8900_v6 = vld [vmem:[%s13719_s19 + $0xe0] sm:$0xff]  ;;  %v8901_v59 = vld [vmem:[%s13719_s19 + $0xe8] sm:$0xff] }
0x171b   :  { %11112 = vmatpush3.bf16.msra.mxu1 %v11715_v14 }
0x171c   :  { %11114 = vmatprep.subr.bf16.mxu0 %v11113_v63 }
0x17e9   :  { %v10199_v1 = vpop.f32.mrb[62].mxu1 }
0x17ea   :  { %v3908_v23 = vadd.f32 %v10199_v1, %v12483_v16  ;;  %v3888_v41 = vpop.f32.mrb[63].mxu1  ;;  %v8880_v1 = vld [vmem:[%s13717_s17 + $0x30] sm:$0xff] }
0x17eb   :  { %v3907_v32 = vadd.f32 %v3888_v41, %v12481_v12 }
0x17ec   :  { %v12767_v55 = vadd.f32 %v8865_v60, %v3908_v23  ;;  %v8881_v23 = vld [vmem:[%s13717_s17 + $0x38] sm:$0xff] }
0x17ed   :  { %v12765_v25 = vadd.f32 %v8865_v60, %v3907_v32  ;;  %v10202_v43 = vpop.f32.mrb[64].mxu1 }
0x17ee   :  { %v3910_v44 = vadd.f32 %v10202_v43, %v12495_v2  ;;  %v3898_v42 = vpop.f32.mrb[65].mxu1  ;;  %v8876_v43 = vld [vmem:[%s13715_s15 + $0x1] ss:$0 sm:$0xff] }
0x17ef   :  { %v3909_v10 = vadd.f32 %v3898_v42, %v12493_v11  ;;  %10211 = vmatprep.mubr.msk.f32.mxu0 %vm356_vm8, %v12765_v25 }
0x17f0   :  { %10212 = vmatmul.mubr.msk.f32.vlgmr.msra.gmra.mrb[62].mxu0 %vm356_vm8, %v12767_v55  ;;  %v12777_v17 = vadd.f32 %v8865_v60, %v3910_v44 }
0x17f1   :  { %v12775_v16 = vadd.f32 %v8865_v60, %v3909_v10  ;;  %11116 = vmatpush3.bf16.msra.mxu0 %v11113_v63  ;;  %v11117_v60 = vpack.c.bf16 %v8881_v23, %v8880_v1  ;;  %v8902_v63 = vld [vmem:[%s13719_s19 + $0xf0] sm:$0xff]  ;;  %v8883_v23 = vld [vmem:[%s13718_s18 + $0x1] ss:$0 sm:$0xff] }
0x17f3   :  { %10214 = vmatprep.mubr.msk.f32.mxu0 %vm356_vm8, %v12775_v16  ;;  %11118 = vmatprep.subr.bf16.mxu0 %v11117_v60 }
0x17f4   :  { %10215 = vmatmul.mubr.msk.f32.gmra.mrb[64].mxu0 %vm356_vm8, %v12777_v17 }
0x17f5   :  { %11120 = vmatpush3.bf16.msra.mxu0 %v11117_v60 }
0x17f6   :  { %11153 = vmatprep.subr.bf16.mxu0 %v11715_v14 }
0x18c3   :  { %v10213_v12 = vpop.f32.mrb[62].mxu0 }
0x18c4   :  { %v4025_v2 = vmul.f32 0.03125, %v10213_v12  ;;  %v4005_v19 = vpop.f32.mrb[63].mxu0 }
0x18c5   :  { %v4024_v11 = vmul.f32 0.03125, %v4005_v19 }
0x18c6   :  { %4035 = vperm.xlu1 %11452, %v4025_v2   ;;  %v8877_v2 = vld [vmem:[%s13716_s16 + $0x1] ss:$0 sm:$0xff] }
0x18c7   :  { %4030 = vperm.xlu0 %11451, %v4024_v11   ;;  %v10216_v46 = vpop.f32.mrb[64].mxu0 }
0x18c8   :  { %v4015_v24 = vpop.f32.mrb[65].mxu0  ;;  %v4027_v51 = vmul.f32 0.03125, %v10216_v46 }
0x18c9   :  { %v4026_v48 = vmul.f32 0.03125, %v4015_v24 }
0x18cb   :  { %4040 = vperm.xlu1 %11452, %v4026_v48  }
0x18cf   :  { %4045 = vperm.xlu1 %11452, %v4027_v51  }
0x1945   :  { %v4036_v15 = vpop.permute.xlu1 %4035 }
0x1946   :  { %v4049_v52 = vsub.f32 %v12767_v55, %v4036_v15  ;;  %v4031_v21 = vpop.permute.xlu0 %4030 }
0x1947   :  { %v4048_v8 = vsub.f32 %v12765_v25, %v4031_v21 }
0x1948   :  { %v4053_v35 = vmul.f32 %v4049_v52, %v4049_v52 }
0x1949   :  { %v4052_v47 = vmul.f32 %v4048_v8, %v4048_v8 }
0x194a   :  { %v4041_v31 = vpop.permute.xlu1 %4040 }
0x194b   :  { %v4050_v49 = vsub.f32 %v12775_v16, %v4041_v31  ;;  %10225 = vmatprep.mubr.msk.f32.mxu1 %vm356_vm8, %v4052_v47  ;;  %v8888_v31 = vld [vmem:[%s13719_s19 + $0x80] sm:$0xff] }
0x194c   :  { %10226 = vmatmul.mubr.msk.f32.vlgmr.msra.gmra.mrb[66].mxu1 %vm356_vm8, %v4053_v35 }
0x194d   :  { %v4054_v45 = vmul.f32 %v4050_v49, %v4050_v49 }
0x194e   :  { %v4046_v53 = vpop.permute.xlu1 %4045 }
0x194f   :  { %v4051_v56 = vsub.f32 %v12777_v17, %v4046_v53  ;;  %10228 = vmatprep.mubr.msk.f32.mxu1 %vm356_vm8, %v4054_v45  ;;  %v8890_v53 = vld [vmem:[%s13719_s19 + $0x90] sm:$0xff] }
0x1951   :  { %v4055_v38 = vmul.f32 %v4051_v56, %v4051_v56 }
0x1953   :  { %10229 = vmatmul.mubr.msk.f32.gmra.mrb[68].mxu1 %vm356_vm8, %v4055_v38 }
0x1a1f   :  { %v10227_v58 = vpop.f32.mrb[66].mxu1 }
0x1a20   :  { %v4154_v50 = vmul.f32 0.03125, %v10227_v58  ;;  %v4134_v20 = vpop.f32.mrb[67].mxu1  ;;  %v8892_v58 = vld [vmem:[%s13719_s19 + $0xa0] sm:$0xff] }
0x1a21   :  { %v4153_v61 = vmul.f32 0.03125, %v4134_v20 }
0x1a22   :  { %v4158_v0 = vadd.f32 1e-05, %v4154_v50  ;;  %v8893_v50 = vld [vmem:[%s13719_s19 + $0xa8] sm:$0xff] }
0x1a23   :  { %v4157_v3 = vadd.f32 1e-05, %v4153_v61  ;;  %v11129_v20 = vpack.c.bf16 %v8893_v50, %v8892_v58  ;;  %v8894_v61 = vld [vmem:[%s13719_s19 + $0xb0] sm:$0xff] }
0x1a24   :  { %11545 = vrsqrt.f32 %v4158_v0  ;;  %v8895_v0 = vld [vmem:[%s13719_s19 + $0xb8] sm:$0xff] }
0x1a25   :  { %11547 = vrsqrt.f32 %v4157_v3  ;;  %v11133_v3 = vpack.c.bf16 %v8895_v0, %v8894_v61 }
0x1a26   :  { %v10230_v54 = vpop.f32.mrb[68].mxu1 }
0x1a27   :  { %v4156_v9 = vmul.f32 0.03125, %v10230_v54  ;;  %v4144_v5 = vpop.f32.mrb[69].mxu1  ;;  %v8896_v54 = vld [vmem:[%s13719_s19 + $0xc0] sm:$0xff] }
0x1a28   :  { %v4155_v4 = vmul.f32 0.03125, %v4144_v5 }
0x1a29   :  { %v4160_v62 = vadd.f32 1e-05, %v4156_v9  ;;  %v8897_v9 = vld [vmem:[%s13719_s19 + $0xc8] sm:$0xff] }
0x1a2a   :  { %v4159_v13 = vadd.f32 1e-05, %v4155_v4  ;;  %v11137_v5 = vpack.c.bf16 %v8897_v9, %v8896_v54  ;;  %v8898_v4 = vld [vmem:[%s13719_s19 + $0xd0] sm:$0xff] }
0x1a2b   :  { %11549 = vrsqrt.f32 %v4160_v62  ;;  %v8899_v62 = vld [vmem:[%s13719_s19 + $0xd8] sm:$0xff] }
0x1a2c   :  { %11551 = vrsqrt.f32 %v4159_v13  ;;  %v11141_v13 = vpack.c.bf16 %v8899_v62, %v8898_v4 }
0x1a2e   :  { %v11546_v57 = vpop.eup %11545 }
0x1a2f   :  { %v11548_v18 = vpop.eup %11547  ;;  %4172 = vperm.xlu1 %11452, %v11546_v57   ;;  %v11145_v57 = vpack.c.bf16 %v8901_v59, %v8900_v6 }
0x1a30   :  { %4167 = vperm.xlu0 %11451, %v11548_v18   ;;  %v8903_v18 = vld [vmem:[%s13719_s19 + $0xf8] sm:$0xff] }
0x1a31   :  { %v11149_v1 = vpack.c.bf16 %v8903_v18, %v8902_v63 }
0x1a35   :  { %v11550_v41 = vpop.eup %11549 }
0x1a36   :  { %v11552_v32 = vpop.eup %11551  ;;  %4182 = vperm.xlu1 %11452, %v11550_v41  }
0x1a37   :  { %4177 = vperm.xlu0 %11451, %v11552_v32  }
0x1aae   :  { %v4173_v44 = vpop.permute.xlu1 %4172 }
0x1aaf   :  { %v4186_v42 = vmul.f32 %v4173_v44, %v4049_v52  ;;  %v4168_v10 = vpop.permute.xlu0 %4167 }
0x1ab0   :  { %v4185_v12 = vmul.f32 %v4168_v10, %v4048_v8 }
0x1ab1   :  { %v4196_v19 = vmul.f32 %v8876_v43, %v4186_v42 }
0x1ab2   :  { %v4195_v11 = vmul.f32 %v8876_v43, %v4185_v12 }
0x1ab3   :  { %v4206_v24 = vadd.f32 %v8877_v2, %v4196_v19 }
0x1ab4   :  { %v4205_v46 = vadd.f32 %v8877_v2, %v4195_v11 }
0x1ab5   :  { %v4183_v48 = vpop.permute.xlu1 %4182 }
0x1ab6   :  { %v4188_v51 = vmul.f32 %v4183_v48, %v4051_v56  ;;  %10239 = vmatprep.mubr.msk.f32.mxu0 %vm356_vm8, %v4205_v46  ;;  %v4178_v15 = vpop.permute.xlu0 %4177  ;;  %v8891_v56 = vld [vmem:[%s13719_s19 + $0x98] sm:$0xff] }
0x1ab7   :  { %v4187_v21 = vmul.f32 %v4178_v15, %v4050_v49  ;;  %10240 = vmatmul.mubr.msk.f32.vlgmr.msra.gmra.mrb[66].mxu0 %vm356_vm8, %v4206_v24  ;;  %v8889_v49 = vld [vmem:[%s13719_s19 + $0x88] sm:$0xff]  ;;  %v11125_v38 = vpack.c.bf16 %v8891_v56, %v8890_v53 }
0x1ab8   :  { %v4198_v47 = vmul.f32 %v8876_v43, %v4188_v51  ;;  %11154 = vmatpush3.bf16.msra.mxu0 %v11715_v14  ;;  %v11121_v45 = vpack.c.bf16 %v8889_v49, %v8888_v31 }
0x1ab9   :  { %v4197_v52 = vmul.f32 %v8876_v43, %v4187_v21  ;;  %11155 = vmatprep.subr.bf16.mxu0 %v11715_v14 }
0x1aba   :  { %v4208_v35 = vadd.f32 %v8877_v2, %v4198_v47  ;;  %11122 = vmatprep.subr.bf16.mxu1 %v11121_v45 }
0x1abb   :  { %v4207_v8 = vadd.f32 %v8877_v2, %v4197_v52  ;;  %11124 = vmatpush3.bf16.msra.mxu1 %v11121_v45 }
0x1abc   :  { %11156 = vmatpush3.bf16.msra.mxu0 %v11715_v14  ;;  %11126 = vmatprep.subr.bf16.mxu1 %v11125_v38 }
0x1abd   :  { %10242 = vmatprep.mubr.msk.f32.mxu0 %vm356_vm8, %v4207_v8  ;;  %11157 = vmatprep.subr.bf16.mxu0 %v11715_v14 }
0x1abe   :  { %10243 = vmatmul.mubr.msk.f32.gmra.mrb[68].mxu0 %vm356_vm8, %v4208_v35 }
0x1abf   :  { %11128 = vmatpush3.bf16.msra.mxu1 %v11125_v38 }
0x1ac0   :  { %11130 = vmatprep.subr.bf16.mxu1 %v11129_v20 }
0x1ac3   :  { %11132 = vmatpush3.bf16.msra.mxu1 %v11129_v20 }
0x1ac4   :  { %11134 = vmatprep.subr.bf16.mxu1 %v11133_v3 }
0x1ac7   :  { %11136 = vmatpush3.bf16.msra.mxu1 %v11133_v3 }
0x1ac8   :  { %11138 = vmatprep.subr.bf16.mxu1 %v11137_v5 }
0x1acb   :  { %11140 = vmatpush3.bf16.msra.mxu1 %v11137_v5 }
0x1acc   :  { %11142 = vmatprep.subr.bf16.mxu1 %v11141_v13 }
0x1acf   :  { %11144 = vmatpush3.bf16.msra.mxu1 %v11141_v13 }
0x1ad0   :  { %11146 = vmatprep.subr.bf16.mxu1 %v11145_v57 }
0x1ad3   :  { %11148 = vmatpush3.bf16.msra.mxu1 %v11145_v57 }
0x1ad4   :  { %11150 = vmatprep.subr.bf16.mxu1 %v11149_v1 }
0x1ad7   :  { %11152 = vmatpush3.bf16.msra.mxu1 %v11149_v1 }
0x1b8a   :  { %v10241_v60 = vpop.f32.mrb[66].mxu0 }
0x1b8b   :  { %v4306_v41 = vadd.f32 %v10241_v60, %v8883_v23  ;;  %v4300_v32 = vpop.f32.mrb[67].mxu0  ;;  %v8905_v60 = vld [vmem:[%s13720_s20 + $0x1] ss:$0 sm:$0xff] }
0x1b8c   :  { %v4301_v43 = vadd.f32 %v8883_v23, %v4300_v32 }
0x1b8d   :  { %v4320_v44 = vmul.f32 %v4306_v41, %v4306_v41 }
0x1b8e   :  { %v4319_v42 = vmul.f32 %v4301_v43, %v4301_v43 }
0x1b8f   :  { %v4324_v10 = vmul.f32 %v4320_v44, %v4306_v41 }
0x1b90   :  { %v4323_v12 = vmul.f32 %v4319_v42, %v4301_v43 }
0x1b91   :  { %v4328_v2 = vmul.f32 0.044715, %v4324_v10  ;;  %v10244_v19 = vpop.f32.mrb[68].mxu0 }
0x1b92   :  { %v4327_v11 = vmul.f32 0.044715, %v4323_v12  ;;  %v4316_v46 = vadd.f32 %v10244_v19, %v8883_v23  ;;  %v4310_v24 = vpop.f32.mrb[69].mxu0 }
0x1b93   :  { %v4332_v48 = vadd.f32 %v4328_v2, %v4306_v41  ;;  %v4311_v51 = vadd.f32 %v8883_v23, %v4310_v24 }
0x1b94   :  { %v4331_v15 = vadd.f32 %v4327_v11, %v4301_v43  ;;  %v4322_v21 = vmul.f32 %v4316_v46, %v4316_v46 }
0x1b95   :  { %v4336_v47 = vmul.f32 0.7978846, %v4332_v48  ;;  %v4321_v52 = vmul.f32 %v4311_v51, %v4311_v51 }
0x1b96   :  { %v4335_v8 = vmul.f32 0.7978846, %v4331_v15  ;;  %v4326_v35 = vmul.f32 %v4322_v21, %v4316_v46 }
0x1b97   :  { %11553 = vtanh.f32 %v4336_v47  ;;  %v4325_v31 = vmul.f32 %v4321_v52, %v4311_v51 }
0x1b98   :  { %v4330_v49 = vmul.f32 0.044715, %v4326_v35  ;;  %11555 = vtanh.f32 %v4335_v8 }
0x1b99   :  { %v4329_v45 = vmul.f32 0.044715, %v4325_v31 }
0x1b9a   :  { %v4334_v53 = vadd.f32 %v4330_v49, %v4316_v46 }
0x1b9b   :  { %v4333_v56 = vadd.f32 %v4329_v45, %v4311_v51 }
0x1b9c   :  { %v4338_v38 = vmul.f32 0.7978846, %v4334_v53 }
0x1b9d   :  { %v4337_v58 = vmul.f32 0.7978846, %v4333_v56 }
0x1b9e   :  { %11557 = vtanh.f32 %v4338_v38 }
0x1b9f   :  { %11559 = vtanh.f32 %v4337_v58 }
0x1ba1   :  { %v11554_v50 = vpop.eup %11553 }
0x1ba2   :  { %v11556_v20 = vpop.eup %11555  ;;  %v4344_v61 = vadd.f32 1.0, %v11554_v50 }
0x1ba3   :  { %v4343_v0 = vadd.f32 1.0, %v11556_v20 }
0x1ba4   :  { %v4348_v3 = vmul.f32 0.5, %v4344_v61 }
0x1ba5   :  { %v4347_v54 = vmul.f32 0.5, %v4343_v0 }
0x1ba6   :  { %v4352_v4 = vmul.f32 %v4348_v3, %v4306_v41 }
0x1ba7   :  { %v4351_v9 = vmul.f32 %v4347_v54, %v4301_v43 }
0x1ba8   :  { %v11558_v5 = vpop.eup %11557 }
0x1ba9   :  { %v11560_v62 = vpop.eup %11559  ;;  %10277 = vmatprep.mubr.f32.mxu1 %v4351_v9  ;;  %v4346_v13 = vadd.f32 1.0, %v11558_v5 }
0x1baa   :  { %10278 = vmatmul.mubr.f32.vlgmr.msra.gmra.mrb[70].mxu1 %v4352_v4  ;;  %v4345_v6 = vadd.f32 1.0, %v11560_v62 }
0x1bab   :  { %v4350_v59 = vmul.f32 0.5, %v4346_v13 }
0x1bac   :  { %v4349_v57 = vmul.f32 0.5, %v4345_v6  ;;  %v8918_v6 = vld [vmem:[%s13710_s10 + $0x40] sm:$0xff] }
0x1bad   :  { %v4354_v18 = vmul.f32 %v4350_v59, %v4316_v46  ;;  %v8919_v59 = vld [vmem:[%s13710_s10 + $0x48] sm:$0xff] }
0x1bae   :  { %v4353_v63 = vmul.f32 %v4349_v57, %v4311_v51  ;;  %v8934_v57 = vld [vmem:[%s13712_s12 + $0x40] sm:$0xff] }
0x1bb0   :  { %10280 = vmatprep.mubr.f32.mxu1 %v4353_v63 }
0x1bb1   :  { %10281 = vmatmul.mubr.f32.gmra.mrb[72].mxu1 %v4354_v18  ;;  %v11161_v18 = vpack.c.bf16 %v8919_v59, %v8918_v6 }
0x1c7d   :  { %v10279_v1 = vpop.f32.mrb[70].mxu1 }
0x1c7e   :  { %v4458_v23 = vadd.f32 %v10279_v1, %v12767_v55  ;;  %v4438_v32 = vpop.f32.mrb[71].mxu1  ;;  %v8935_v1 = vld [vmem:[%s13712_s12 + $0x48] sm:$0xff] }
0x1c7f   :  { %v4457_v41 = vadd.f32 %v4438_v32, %v12765_v25  ;;  %v8920_v32 = vld [vmem:[%s13710_s10 + $0x50] sm:$0xff] }
0x1c80   :  { %v12876_v44 = vadd.f32 %v8905_v60, %v4458_v23 }
0x1c81   :  { %v12874_v43 = vadd.f32 %v8905_v60, %v4457_v41  ;;  %v8921_v41 = vld [vmem:[%s13710_s10 + $0x58] sm:$0xff] }
0x1c83   :  { %10291 = vmatprep.mubr.msk.f32.mxu0 %vm356_vm8, %v12874_v43 }
0x1c84   :  { %v10282_v42 = vpop.f32.mrb[72].mxu1  ;;  %10292 = vmatmul.mubr.msk.f32.vlgmr.msra.gmra.mrb[70].mxu0 %vm356_vm8, %v12876_v44 }
0x1c85   :  { %v4460_v55 = vadd.f32 %v10282_v42, %v12777_v17  ;;  %v4448_v10 = vpop.f32.mrb[73].mxu1  ;;  %11158 = vmatpush3.bf16.msra.mxu0 %v11715_v14  ;;  %v8936_v42 = vld [vmem:[%s13712_s12 + $0x50] sm:$0xff] }
0x1c86   :  { %v4459_v12 = vadd.f32 %v4448_v10, %v12775_v16  ;;  %11159 = vmatprep.subr.bf16.mxu0 %v11715_v14  ;;  %v8937_v10 = vld [vmem:[%s13712_s12 + $0x58] sm:$0xff] }
0x1c87   :  { %v12888_v2 = vadd.f32 %v8905_v60, %v4460_v55  ;;  %v11165_v55 = vpack.c.bf16 %v8921_v41, %v8920_v32 }
0x1c88   :  { %v12886_v25 = vadd.f32 %v8905_v60, %v4459_v12  ;;  %v11177_v60 = vpack.c.bf16 %v8935_v1, %v8934_v57  ;;  %v11181_v12 = vpack.c.bf16 %v8937_v10, %v8936_v42 }
0x1c89   :  { %11160 = vmatpush3.bf16.msra.mxu0 %v11715_v14 }
0x1c8a   :  { %10294 = vmatprep.mubr.msk.f32.mxu0 %vm356_vm8, %v12886_v25  ;;  %11162 = vmatprep.subr.bf16.mxu0 %v11161_v18 }
0x1c8b   :  { %10295 = vmatmul.mubr.msk.f32.gmra.mrb[72].mxu0 %vm356_vm8, %v12888_v2  ;;  %11178 = vmatprep.subr.bf16.mxu1 %v11177_v60 }
0x1c8c   :  { %11180 = vmatpush3.bf16.msra.mxu1 %v11177_v60 }
0x1c8d   :  { %11182 = vmatprep.subr.bf16.mxu1 %v11181_v12 }
0x1c90   :  { %11184 = vmatpush3.bf16.msra.mxu1 %v11181_v12 }
0x1c91   :  { %11193 = vmatprep.subr.bf16.mxu1 %v11717_v34 }
0x1d57   :  { %v10293_v17 = vpop.f32.mrb[70].mxu0 }
0x1d58   :  { %v4575_v19 = vmul.f32 0.03125, %v10293_v17  ;;  %v4555_v11 = vpop.f32.mrb[71].mxu0 }
0x1d59   :  { %v4574_v46 = vmul.f32 0.03125, %v4555_v11  ;;  %v8926_v11 = vld [vmem:[%s13711_s11 + $0x40] sm:$0xff] }
0x1d5a   :  { %4585 = vperm.xlu1 %11452, %v4575_v19  }
0x1d5b   :  { %4580 = vperm.xlu0 %11451, %v4574_v46   ;;  %v8927_v46 = vld [vmem:[%s13711_s11 + $0x48] sm:$0xff] }
0x1d5e   :  { %v10296_v16 = vpop.f32.mrb[72].mxu0 }
0x1d5f   :  { %v4577_v24 = vmul.f32 0.03125, %v10296_v16  ;;  %v4565_v48 = vpop.f32.mrb[73].mxu0  ;;  %v11169_v16 = vpack.c.bf16 %v8927_v46, %v8926_v11 }
0x1d60   :  { %v4576_v51 = vmul.f32 0.03125, %v4565_v48 }
0x1d61   :  { %4595 = vperm.xlu1 %11452, %v4577_v24   ;;  %v8916_v24 = vld [vmem:[%s13708_s8 + $0x2] ss:$0 sm:$0xff] }
0x1d62   :  { %4590 = vperm.xlu0 %11451, %v4576_v51  }
0x1dd9   :  { %v4586_v15 = vpop.permute.xlu1 %4585 }
0x1dda   :  { %v12896_v21 = vsub.f32 %v12876_v44, %v4586_v15  ;;  %v4581_v47 = vpop.permute.xlu0 %4580 }
0x1ddb   :  { %v12899_v52 = vsub.f32 %v12874_v43, %v4581_v47 }
0x1ddc   :  { %v4603_v35 = vmul.f32 %v12896_v21, %v12896_v21 }
0x1ddd   :  { %v4602_v8 = vmul.f32 %v12899_v52, %v12899_v52 }
0x1ddf   :  { %10305 = vmatprep.mubr.msk.f32.mxu0 %vm356_vm8, %v4602_v8  ;;  %v8917_v8 = vld [vmem:[%s13709_s9 + $0x2] ss:$0 sm:$0xff] }
0x1de0   :  { %10306 = vmatmul.mubr.msk.f32.vlgmr.msra.gmra.mrb[74].mxu0 %vm356_vm8, %v4603_v35  ;;  %v4596_v31 = vpop.permute.xlu1 %4595 }
0x1de1   :  { %v12908_v49 = vsub.f32 %v12888_v2, %v4596_v31  ;;  %v4591_v45 = vpop.permute.xlu0 %4590  ;;  %11164 = vmatpush3.bf16.msra.mxu0 %v11161_v18 }
0x1de2   :  { %v12911_v53 = vsub.f32 %v12886_v25, %v4591_v45  ;;  %11166 = vmatprep.subr.bf16.mxu0 %v11165_v55  ;;  %v8928_v45 = vld [vmem:[%s13711_s11 + $0x50] sm:$0xff] }
0x1de3   :  { %v4605_v38 = vmul.f32 %v12908_v49, %v12908_v49 }
0x1de4   :  { %v4604_v56 = vmul.f32 %v12911_v53, %v12911_v53 }
0x1de5   :  { %11168 = vmatpush3.bf16.msra.mxu0 %v11165_v55 }
0x1de6   :  { %10308 = vmatprep.mubr.msk.f32.mxu0 %vm356_vm8, %v4604_v56  ;;  %11170 = vmatprep.subr.bf16.mxu0 %v11169_v16  ;;  %v8929_v56 = vld [vmem:[%s13711_s11 + $0x58] sm:$0xff] }
0x1de7   :  { %10309 = vmatmul.mubr.msk.f32.gmra.mrb[76].mxu0 %vm356_vm8, %v4605_v38 }
0x1eb3   :  { %v10307_v58 = vpop.f32.mrb[74].mxu0 }
0x1eb4   :  { %v4704_v50 = vmul.f32 0.03125, %v10307_v58  ;;  %v4684_v20 = vpop.f32.mrb[75].mxu0 }
0x1eb5   :  { %v4703_v61 = vmul.f32 0.03125, %v4684_v20 }
0x1eb6   :  { %v4708_v0 = vadd.f32 1e-05, %v4704_v50  ;;  %v11173_v50 = vpack.c.bf16 %v8929_v56, %v8928_v45 }
0x1eb7   :  { %v4707_v3 = vadd.f32 1e-05, %v4703_v61 }
0x1eb8   :  { %11561 = vrsqrt.f32 %v4708_v0 }
0x1eb9   :  { %11563 = vrsqrt.f32 %v4707_v3 }
0x1eba   :  { %v10310_v54 = vpop.f32.mrb[76].mxu0 }
0x1ebb   :  { %v4706_v9 = vmul.f32 0.03125, %v10310_v54  ;;  %v4694_v5 = vpop.f32.mrb[77].mxu0 }
0x1ebc   :  { %v4705_v4 = vmul.f32 0.03125, %v4694_v5 }
0x1ebd   :  { %v4710_v62 = vadd.f32 1e-05, %v4706_v9 }
0x1ebe   :  { %v4709_v13 = vadd.f32 1e-05, %v4705_v4 }
0x1ebf   :  { %11565 = vrsqrt.f32 %v4710_v62 }
0x1ec0   :  { %11567 = vrsqrt.f32 %v4709_v13 }
0x1ec2   :  { %v11562_v63 = vpop.eup %11561 }
0x1ec3   :  { %v11564_v23 = vpop.eup %11563  ;;  %4722 = vperm.xlu1 %11452, %v11562_v63  }
0x1ec4   :  { %4717 = vperm.xlu0 %11451, %v11564_v23  }
0x1ec9   :  { %v11566_v17 = vpop.eup %11565 }
0x1eca   :  { %v11568_v19 = vpop.eup %11567  ;;  %4732 = vperm.xlu1 %11452, %v11566_v17  }
0x1ecb   :  { %4727 = vperm.xlu0 %11451, %v11568_v19  }
0x1f42   :  { %v4723_v48 = vpop.permute.xlu1 %4722 }
0x1f43   :  { %v4736_v51 = vmul.f32 %v4723_v48, %v12896_v21  ;;  %v4718_v15 = vpop.permute.xlu0 %4717 }
0x1f44   :  { %v4735_v47 = vmul.f32 %v4718_v15, %v12899_v52 }
0x1f45   :  { %v4746_v35 = vmul.f32 %v8916_v24, %v4736_v51 }
0x1f46   :  { %v4745_v31 = vmul.f32 %v8916_v24, %v4735_v47 }
0x1f47   :  { %v4756_v58 = vadd.f32 %v8917_v8, %v4746_v35 }
0x1f48   :  { %v4755_v38 = vadd.f32 %v8917_v8, %v4745_v31 }
0x1f49   :  { %v4733_v21 = vpop.permute.xlu1 %4732 }
0x1f4a   :  { %v4738_v52 = vmul.f32 %v4733_v21, %v12908_v49  ;;  %10319 = vmatprep.mubr.msk.f32.mxu0 %vm356_vm8, %v4755_v38  ;;  %10347 = vmatprep.mubr.msk.f32.mxu1 %vm356_vm8, %v4755_v38  ;;  %v4728_v20 = vpop.permute.xlu0 %4727 }
0x1f4b   :  { %v4737_v61 = vmul.f32 %v4728_v20, %v12911_v53  ;;  %10320 = vmatmul.mubr.msk.f32.vlgmr.msra.gmra.mrb[78].mxu0 %vm356_vm8, %v4756_v58  ;;  %10348 = vmatmul.mubr.msk.f32.vlgmr.msra.gmra.mrb[74].mxu1 %vm356_vm8, %v4756_v58 }
0x1f4c   :  { %v4748_v0 = vmul.f32 %v8916_v24, %v4738_v52  ;;  %11172 = vmatpush3.bf16.msra.mxu0 %v11169_v16 }
0x1f4d   :  { %v4747_v3 = vmul.f32 %v8916_v24, %v4737_v61  ;;  %11174 = vmatprep.subr.bf16.mxu0 %v11173_v50 }
0x1f4e   :  { %v4758_v9 = vadd.f32 %v8917_v8, %v4748_v0 }
0x1f4f   :  { %v4757_v54 = vadd.f32 %v8917_v8, %v4747_v3 }
0x1f50   :  { %11176 = vmatpush3.bf16.msra.mxu0 %v11173_v50 }
0x1f51   :  { %10322 = vmatprep.mubr.msk.f32.mxu0 %vm356_vm8, %v4757_v54  ;;  %10350 = vmatprep.mubr.msk.f32.mxu1 %vm356_vm8, %v4757_v54 }
0x1f52   :  { %10323 = vmatmul.mubr.msk.f32.gmra.mrb[80].mxu0 %vm356_vm8, %v4758_v9  ;;  %10351 = vmatmul.mubr.msk.f32.gmra.mrb[76].mxu1 %vm356_vm8, %v4758_v9 }
0x1f53   :  { %10333 = vmatprep.mubr.msk.f32.mxu0 %vm356_vm8, %v4755_v38  ;;  %11186 = vmatprep.subr.bf16.mxu0 %v12155_v30 }
0x1f54   :  { %10375 = vmatprep.mubr.msk.f32.mxu1 %vm11718_vm9, %v11714_v7 }
0x1f56   :  { %10334 = vmatmul.mubr.msk.f32.vlgmr.msra.gmra.mrb[82].mxu0 %vm356_vm8, %v4756_v58 }
0x1f57   :  { %10336 = vmatprep.mubr.msk.f32.mxu0 %vm356_vm8, %v4757_v54  ;;  %11188 = vmatpush3.bf16.msra.mxu0 %v12155_v30 }
0x1f58   :  { %11190 = vmatprep.subr.bf16.mxu0 %v12171_v33 }
0x1f5a   :  { %10337 = vmatmul.mubr.msk.f32.gmra.mrb[84].mxu0 %vm356_vm8, %v4758_v9  ;;  %v11672_v9 = vld [vmem:[%s13748_s30] sm:$0x3] }
0x1f5b   :  { %11192 = vmatpush3.bf16.msra.mxu0 %v12171_v33 }
0x201e   :  { %v12984_v49 = vpop.f32.mrb[78].mxu0  ;;  %v10349_v53 = vpop.f32.mrb[74].mxu1 }
0x201f   :  { %v12986_v5 = vpop.f32.mrb[79].mxu0  ;;  %v5022_v4 = vpop.f32.mrb[75].mxu1  ;;  %v5044_v62 = vsel %vm356_vm8, %v12984_v49, -inf }
0x2020   :  { %v12990_v13 = vpack.c.bf16 %v10349_v53, %v5022_v4  ;;  %5045 = vmax.xlane.f32.xlu1 %v5044_v62  ;;  %v5041_v6 = vsel %vm356_vm8, %v12986_v5, -inf  ;;  %v11673_v53 = vld [vmem:[%s13749_s5] sm:$0xff] }
0x2021   :  { %5042 = vmax.xlane.f32.xlu0 %v5041_v6 }
0x2022   :  { %11201 = vmatprep.subr.bf16.mxu0 %v12990_v13 }
0x2025   :  { %v12995_v59 = vpop.f32.mrb[80].mxu0  ;;  %v10352_v57 = vpop.f32.mrb[76].mxu1 }
0x2026   :  { %v4852_v63 = vpop.f32.mrb[81].mxu0  ;;  %v5032_v18 = vpop.f32.mrb[77].mxu1  ;;  %v5050_v55 = vsel %vm927_vm10, %v12995_v59, -inf }
0x2027   :  { %v12997_v1 = vpack.c.bf16 %v10352_v57, %v5032_v18  ;;  %v5047_v23 = vsel %vm356_vm8, %v4852_v63, -inf }
0x2028   :  { %5048 = vmax.xlane.f32.xlu0 %v5047_v23 }
0x2029   :  { %v10335_v60 = vpop.f32.mrb[82].mxu0 }
0x202a   :  { %v5171_v32 = vsel %vm356_vm8, %v10335_v60, -inf  ;;  %v4932_v41 = vpop.f32.mrb[83].mxu0 }
0x202b   :  { %v5170_v42 = vsel %vm356_vm8, %v4932_v41, -inf }
0x202c   :  { %v5174_v10 = vmax.f32 %v5170_v42, %v5171_v32  ;;  %5051 = vmax.xlane.f32.xlu0 %v5050_v55 }
0x202d   :  { %v10338_v12 = vpop.f32.mrb[84].mxu0 }
0x202e   :  { %v5173_v17 = vsel %vm927_vm10, %v10338_v12, -inf  ;;  %v4942_v19 = vpop.f32.mrb[85].mxu0 }
0x202f   :  { %v5172_v11 = vsel %vm356_vm8, %v4942_v19, -inf }
0x2030   :  { %v5175_v46 = vmax.f32 %v5172_v11, %v5173_v17  ;;  %v11674_v11 = vld [vmem:[%s13749_s5 + $0x8] sm:$0xff] }
0x2032   :  { %v5176_v16 = vmax.f32 %v5174_v10, %v5175_v46  ;;  %v11675_v46 = vld [vmem:[%s13749_s5 + $0x10] sm:$0xff] }
0x2034   :  { %v5177_v24 = vrot.slane %v5176_v16, 4 }
0x2036   :  { %v5178_v48 = vmax.f32 %v5176_v16, %v5177_v24  ;;  %v11676_v16 = vld [vmem:[%s13749_s5 + $0x18] sm:$0x3f] }
0x2038   :  { %v5179_v51 = vrot.slane %v5178_v48, 2 }
0x203a   :  { %v5180_v15 = vmax.f32 %v5178_v48, %v5179_v51 }
0x203c   :  { %v5181_v47 = vrot.slane %v5180_v15, 1 }
0x203e   :  { %v5182_v8 = vmax.f32 %v5180_v15, %v5181_v47 }
0x2040   :  { %v5183_v35 = vsub.f32 %v4932_v41, %v5182_v8  ;;  %v5184_v31 = vsub.f32 %v10335_v60, %v5182_v8  ;;  %v5185_v45 = vsub.f32 %v4942_v19, %v5182_v8  ;;  %v5186_v56 = vsub.f32 %v10338_v12, %v5182_v8 }
0x2042   :  { %v5187_v38 = vmul.f32 1.442695, %v5183_v35  ;;  %v5189_v58 = vmul.f32 1.442695, %v5184_v31  ;;  %v5191_v21 = vmul.f32 1.442695, %v5185_v45 }
0x2043   :  { %v5193_v50 = vmul.f32 1.442695, %v5186_v56 }
0x2044   :  { %11569 = vpow2.f32 %v5187_v38 }
0x2045   :  { %11571 = vpow2.f32 %v5189_v58 }
0x2046   :  { %11573 = vpow2.f32 %v5191_v21 }
0x2047   :  { %11575 = vpow2.f32 %v5193_v50 }
0x204e   :  { %v13006_v52 = vpop.eup %11569 }
0x204f   :  { %v13008_v20 = vpop.eup %11571 }
0x2050   :  { %v13010_v61 = vpop.eup %11573  ;;  %v11194_v0 = vpack.c.bf16 %v13008_v20, %v13006_v52 }
0x2051   :  { %v13014_v3 = vpop.eup %11575 }
0x2052   :  { %11195 = vmatpush3.bf16.msra.mxu1 %v11194_v0  ;;  %v11197_v54 = vpack.c.bf16 %v13014_v3, %v13010_v61 }
0x2053   :  { %11196 = vmatprep.subr.bf16.mxu1 %v11717_v34 }
0x2056   :  { %11199 = vmatpush3.bf16.msk.msra.mxu1 %vm12214_vm13, %v11197_v54 }
0x2059   :  { %10376 = vmatmul.mubr.msk.f32.vlgmr.msra.gmra.mrb[78].mxu1 %vm1073_vm14, %v11672_v9 }
0x205a   :  { %10380 = vmatprep.mubr.msk.f32.mxu1 %vm1152_vm15, %v11673_v53 }
0x20ad   :  { %v5046_v4 = vpop.xlane.xlu1 %5045 }
0x20ae   :  { %v5054_v62 = vsub.f32 %v12984_v49, %v5046_v4  ;;  %v5043_v6 = vpop.xlane.xlu0 %5042 }
0x20af   :  { %v5053_v57 = vsub.f32 %v12986_v5, %v5043_v6 }
0x20b0   :  { %v5059_v18 = vmul.f32 1.442695, %v5054_v62 }
0x20b1   :  { %v5057_v23 = vmul.f32 1.442695, %v5053_v57 }
0x20b3   :  { %11577 = vpow2.f32 %v5057_v23 }
0x20b4   :  { %11579 = vpow2.f32 %v5059_v18 }
0x20b5   :  { %v5049_v60 = vpop.xlane.xlu0 %5048 }
0x20b6   :  { %v5055_v32 = vsub.f32 %v4852_v63, %v5049_v60 }
0x20b8   :  { %v5061_v41 = vmul.f32 1.442695, %v5055_v32 }
0x20b9   :  { %v5052_v42 = vpop.xlane.xlu0 %5051 }
0x20ba   :  { %11581 = vpow2.f32 %v5061_v41  ;;  %v5056_v55 = vsub.f32 %v12995_v59, %v5052_v42  ;;  %v11677_v41 = vld [vmem:[%s13745_s2 + $0x8] sm:$0xff] }
0x20bc   :  { %v5063_v10 = vmul.f32 1.442695, %v5056_v55  ;;  %v11678_v55 = vld [vmem:[%s13745_s2] sm:$0xff] }
0x20bd   :  { %v11578_v12 = vpop.eup %11577 }
0x20be   :  { %v13032_v17 = vpop.eup %11579  ;;  %11583 = vpow2.f32 %v5063_v10  ;;  %10361 = vmatprep.mubr.msk.f32.mxu0 %vm356_vm8, %v11578_v12 }
0x20bf   :  { %10362 = vmatmul.mubr.msk.f32.vlgmr.msra.gmra.mrb[86].mxu0 %vm356_vm8, %v13032_v17 }
0x20c0   :  { %11203 = vmatpush3.bf16.msra.mxu0 %v12990_v13 }
0x20c1   :  { %11206 = vmatprep.subr.msk.bf16.mxu0 %vm12214_vm13, %v12997_v1 }
0x20c4   :  { %v13041_v49 = vpop.eup %11581  ;;  %11209 = vmatpush3.bf16.msk.msra.mxu0 %vm12214_vm13, %v12997_v1 }
0x20c5   :  { %11219 = vmatprep.subr.bf16.mxu0 %v12990_v13  ;;  %10364 = vmatprep.mubr.msk.f32.mxu0 %vm356_vm8, %v13041_v49 }
0x20c8   :  { %v13049_v5 = vpop.eup %11583 }
0x20c9   :  { %10365 = vmatmul.mubr.msk.f32.gmra.mrb[88].mxu0 %vm356_vm8, %v13049_v5 }
0x212c   :  { %v5264_v59 = vpop.f32.mrb[78].mxu1 }
0x212d   :  { %11585 = vrcp.f32 %v5264_v59  ;;  %v10377_v63 = vpop.f32.mrb[79].mxu1 }
0x212e   :  { %v11679_v63 = vld [vmem:[%s13745_s2 + $0x18] sm:$0xff] }
0x2137   :  { %v11586_v19 = vpop.eup %11585 }
0x2138   :  { %10378 = vmatprep.subr.msk.mxu1 %vm1165_vm0, %v11586_v19 }
0x2139   :  { %10379 = vmatpush3.msk.msra.mxu1 %vm1165_vm0, %v11586_v19 }
0x213a   :  { %10381 = vmatmul.mubr.msk.f32.vlgmr.msra.gmra.mrb[80].mxu1 %vm1152_vm15, %v11674_v11 }
0x213b   :  { %10383 = vmatprep.mubr.msk.f32.mxu1 %vm1152_vm15, %v11675_v46  ;;  %v11680_v46 = vld [vmem:[%s13745_s2 + $0x10] sm:$0xff] }
0x213e   :  { %10384 = vmatmul.mubr.msk.f32.gmra.mrb[82].mxu1 %vm1152_vm15, %v11676_v16 }
0x2192   :  { %v10363_v24 = vpop.f32.mrb[86].mxu0 }
0x2193   :  { %v5143_v48 = vpop.f32.mrb[87].mxu0 }
0x2194   :  { %11587 = vrcp.f32 %v5143_v48 }
0x2195   :  { %11589 = vrcp.f32 %v10363_v24 }
0x219c   :  { %v10366_v51 = vpop.f32.mrb[88].mxu0 }
0x219d   :  { %v5153_v15 = vpop.f32.mrb[89].mxu0 }
0x219e   :  { %v11588_v47 = vpop.eup %11587  ;;  %11591 = vrcp.f32 %v5153_v15 }
0x219f   :  { %v13067_v8 = vmul.f32 %v11588_v47, %v11578_v12  ;;  %11593 = vrcp.f32 %v10366_v51  ;;  %v11590_v24 = vpop.eup %11589 }
0x21a1   :  { %10408 = vmatprep.mubr.msk.f32.mxu1 %vm356_vm8, %v13067_v8 }
0x220d   :  { %v10382_v35 = vpop.f32.mrb[80].mxu1 }
0x220e   :  { %v5338_v31 = vpop.f32.mrb[81].mxu1  ;;  %v5358_v56 = vmul.f32 %v13008_v20, %v10382_v35 }
0x220f   :  { %v5357_v45 = vmul.f32 %v13006_v52, %v5338_v31  ;;  %v11592_v31 = vpop.eup %11591 }
0x2210   :  { %v5362_v0 = vmul.f32 %v5358_v56, %v12232_v29  ;;  %v5607_v54 = vmul.f32 %v5358_v56, %v12240_v40 }
0x2211   :  { %v5361_v38 = vmul.f32 %v5357_v45, %v12226_v26  ;;  %v5606_v58 = vmul.f32 %v5357_v45, %v12230_v28  ;;  %v10385_v21 = vpop.f32.mrb[82].mxu1  ;;  %v5167_v45 = vmul.f32 %v11590_v24, %v13032_v17  ;;  %v8971_v17 = vld [vmem:[%s13713_s13 + $0x40] sm:$0xff] }
0x2212   :  { %v5348_v50 = vpop.f32.mrb[83].mxu1  ;;  %v5360_v52 = vmul.f32 %v13014_v3, %v10385_v21 }
0x2213   :  { %5610 = vxpose.xlu0.b32.start [1/4] (short) (narrow) %v5606_v58, 32  ;;  %5365 = vxpose.xlu1.b32.start [1/4] (short) (narrow) %v5361_v38, 32  ;;  %v5359_v9 = vmul.f32 %v13010_v61, %v5348_v50  ;;  %v11594_v58 = vpop.eup %11593 }
0x2214   :  { %v5364_v4 = vmul.f32 %v5360_v52, %v12236_v37  ;;  %v5609_v62 = vmul.f32 %v5360_v52, %v12238_v39  ;;  %v5169_v52 = vmul.f32 %v11594_v58, %v13049_v5 }
0x2215   :  { %v5363_v20 = vmul.f32 %v5359_v9, %v12228_v27  ;;  %v5608_v53 = vmul.f32 %v5359_v9, %v12234_v36 }
0x2217   :  { %5611 = vxpose.xlu0.b32.cont [2/4] (short) (narrow) %v5607_v54, 32  ;;  %5366 = vxpose.xlu1.b32.cont [2/4] (short) (narrow) %v5362_v0, 32  ;;  %v5168_v0 = vmul.f32 %v11592_v31, %v13041_v49  ;;  %v8972_v49 = vld [vmem:[%s13713_s13 + $0x48] sm:$0xff] }
0x2218   :  { %v11236_v5 = vpack.c.bf16 %v8972_v49, %v8971_v17 }
0x221b   :  { %5612 = vxpose.xlu0.b32.cont [3/4] (short) (narrow) %v5608_v53, 32  ;;  %5367 = vxpose.xlu1.b32.cont [3/4] (short) (narrow) %v5363_v20, 32  ;;  %v8974_v20 = vld [vmem:[%s13713_s13 + $0x58] sm:$0xff] }
0x221f   :  { %5613 = vxpose.xlu0.b32.end [4/4] (short) (narrow) %v5609_v62, 32  ;;  %5368 = vxpose.xlu1.b32.end [4/4] (short) (narrow) %v5364_v4, 32 }
0x2293   :  { %v5381_v6 = vpop.trf.xlu1  ;;  %v5626_v57 = vpop.trf.xlu0 }
0x2294   :  { %10394 = vmatprep.mubr.msk.f32.mxu0 %vm1073_vm14, %v5381_v6 }
0x2297   :  { %v5382_v61 = vpop.trf.xlu1  ;;  %v5627_v3 = vpop.trf.xlu0 }
0x2298   :  { %10395 = vmatmul.mubr.msk.f32.vlgmr.msra.gmra.mrb[90].mxu0 %vm1073_vm14, %v5382_v61 }
0x2299   :  { %11221 = vmatpush3.bf16.msra.mxu0 %v12990_v13 }
0x229a   :  { %11224 = vmatprep.subr.msk.bf16.mxu0 %vm12214_vm13, %v12997_v1 }
0x229b   :  { %v5383_v18 = vpop.trf.xlu1  ;;  %v5628_v60 = vpop.trf.xlu0 }
0x229c   :  { %10397 = vmatprep.mubr.msk.f32.mxu0 %vm1073_vm14, %v5383_v18 }
0x229d   :  { %11227 = vmatpush3.bf16.msk.msra.mxu0 %vm12214_vm13, %v12997_v1 }
0x229e   :  { %11237 = vmatprep.subr.bf16.mxu0 %v11236_v5 }
0x229f   :  { %v5384_v23 = vpop.trf.xlu1  ;;  %v5629_v13 = vpop.trf.xlu0 }
0x22a0   :  { %10398 = vmatmul.mubr.msk.f32.gmra.mrb[92].mxu0 %vm1073_vm14, %v5384_v23 }
0x22a1   :  { %10422 = vmatprep.mubr.msk.f32.mxu0 %vm1073_vm14, %v5626_v57 }
0x22a4   :  { %10423 = vmatmul.mubr.msk.f32.vlgmr.msra.gmra.mrb[94].mxu0 %vm1073_vm14, %v5627_v3 }
0x22a5   :  { %10425 = vmatprep.mubr.msk.f32.mxu0 %vm1073_vm14, %v5628_v60  ;;  %11239 = vmatpush3.bf16.msra.mxu0 %v11236_v5 }
0x22a8   :  { %10426 = vmatmul.mubr.msk.f32.gmra.mrb[96].mxu0 %vm1073_vm14, %v5629_v13 }
0x236b   :  { %v10396_v32 = vpop.f32.mrb[90].mxu0 }
0x236c   :  { %v5498_v42 = vmul.f32 %v11677_v41, %v10396_v32  ;;  %v5478_v1 = vpop.f32.mrb[91].mxu0 }
0x236d   :  { %v5497_v10 = vmul.f32 %v11678_v55, %v5478_v1 }
0x236f   :  { %v11210_v12 = vpack.c.bf16 %v5498_v42, %v5497_v10 }
0x2371   :  { %11211 = vmatprep.subr.bf16.mxu1 %v11210_v12 }
0x2372   :  { %11213 = vmatpush3.bf16.msra.mxu1 %v11210_v12 }
0x2373   :  { %v10399_v59 = vpop.f32.mrb[92].mxu0 }
0x2374   :  { %v5500_v19 = vmul.f32 %v11679_v63, %v10399_v59  ;;  %v5488_v11 = vpop.f32.mrb[93].mxu0 }
0x2375   :  { %v5499_v16 = vmul.f32 %v11680_v46, %v5488_v11 }
0x2377   :  { %v11214_v48 = vpack.c.bf16 %v5500_v19, %v5499_v16  ;;  %v10424_v47 = vpop.f32.mrb[94].mxu0  ;;  %v8980_v16 = vld [vmem:[%s13714_s14 + $0x2] ss:$0 sm:$0xff] }
0x2378   :  { %v5740_v15 = vmul.f32 %v11677_v41, %v10424_v47  ;;  %v5720_v35 = vpop.f32.mrb[95].mxu0 }
0x2379   :  { %v5739_v51 = vmul.f32 %v11678_v55, %v5720_v35  ;;  %11215 = vmatprep.subr.bf16.mxu1 %v11214_v48 }
0x237a   :  { %11217 = vmatpush3.bf16.msra.mxu1 %v11214_v48 }
0x237b   :  { %v11228_v56 = vpack.c.bf16 %v5740_v15, %v5739_v51  ;;  %v10427_v38 = vpop.f32.mrb[96].mxu0 }
0x237c   :  { %v5742_v21 = vmul.f32 %v11679_v63, %v10427_v38  ;;  %v5730_v50 = vpop.f32.mrb[97].mxu0 }
0x237d   :  { %v5741_v54 = vmul.f32 %v11680_v46, %v5730_v50  ;;  %10409 = vmatmul.mubr.msk.f32.vlgmr.msra.gmra.mrb[84].mxu1 %vm356_vm8, %v5167_v45  ;;  %11229 = vmatprep.subr.bf16.mxu1 %v11228_v56 }
0x237e   :  { %10411 = vmatprep.mubr.msk.f32.mxu1 %vm356_vm8, %v5168_v0  ;;  %11231 = vmatpush3.bf16.msra.mxu1 %v11228_v56 }
0x237f   :  { %v11232_v9 = vpack.c.bf16 %v5742_v21, %v5741_v54 }
0x2381   :  { %10412 = vmatmul.mubr.msk.f32.gmra.mrb[86].mxu1 %vm356_vm8, %v5169_v52  ;;  %11233 = vmatprep.subr.bf16.mxu1 %v11232_v9 }
0x2382   :  { %11235 = vmatpush3.bf16.msra.mxu1 %v11232_v9  ;;  %10436 = vmatprep.mubr.msk.f32.mxu1 %vm356_vm8, %v13067_v8  ;;  %v8973_v8 = vld [vmem:[%s13713_s13 + $0x50] sm:$0xff] }
0x2383   :  { %11244 = vmatprep.subr.bf16.mxu1 %v11715_v14  ;;  %v11240_v53 = vpack.c.bf16 %v8974_v20, %v8973_v8 }
0x2385   :  { %10437 = vmatmul.mubr.msk.f32.vlgmr.msra.gmra.mrb[88].mxu1 %vm356_vm8, %v5167_v45  ;;  %11241 = vmatprep.subr.bf16.mxu0 %v11240_v53 }
0x2386   :  { %10439 = vmatprep.mubr.msk.f32.mxu1 %vm356_vm8, %v5168_v0  ;;  %11245 = vmatpush3.bf16.msra.mxu1 %v11715_v14 }
0x2387   :  { %11246 = vmatprep.subr.bf16.mxu1 %v11715_v14  ;;  %11243 = vmatpush3.bf16.msra.mxu0 %v11240_v53 }
0x2388   :  { %11248 = vmatprep.subr.bf16.mxu0 %v11715_v14 }
0x2389   :  { %10440 = vmatmul.mubr.msk.f32.gmra.mrb[90].mxu1 %vm356_vm8, %v5169_v52 }
0x238a   :  { %11247 = vmatpush3.bf16.msra.mxu1 %v11715_v14 }
0x2450   :  { %v10410_v4 = vpop.f32.mrb[84].mxu1 }
0x2451   :  { %v5579_v62 = vpop.f32.mrb[85].mxu1  ;;  %v5599_v3 = vmul.f32 %v10410_v4, %v12232_v29 }
0x2452   :  { %v5598_v60 = vmul.f32 %v5579_v62, %v12226_v26 }
0x2454   :  { %v10413_v6 = vpop.f32.mrb[86].mxu1 }
0x2455   :  { %v5589_v57 = vpop.f32.mrb[87].mxu1  ;;  %v5601_v1 = vmul.f32 %v10413_v6, %v12236_v37 }
0x2456   :  { %v5600_v12 = vmul.f32 %v5589_v57, %v12228_v27 }
0x2458   :  { %v10438_v61 = vpop.f32.mrb[88].mxu1 }
0x2459   :  { %v5829_v18 = vmul.f32 %v10438_v61, %v12240_v40  ;;  %v5809_v23 = vpop.f32.mrb[89].mxu1 }
0x245a   :  { %v5828_v13 = vmul.f32 %v5809_v23, %v12230_v28 }
0x245b   :  { %v5833_v32 = vadd.f32 %v5829_v18, %v5599_v3 }
0x245c   :  { %v5832_v41 = vadd.f32 %v5828_v13, %v5598_v60  ;;  %v10441_v42 = vpop.f32.mrb[90].mxu1 }
0x245d   :  { %v5831_v55 = vmul.f32 %v10441_v42, %v12238_v39  ;;  %v5819_v10 = vpop.f32.mrb[91].mxu1 }
0x245e   :  { %v5830_v59 = vmul.f32 %v5819_v10, %v12234_v36  ;;  %10450 = vmatprep.mubr.msk.f32.mxu0 %vm356_vm8, %v5832_v41  ;;  %v8993_v10 = vld [vmem:[%s13717_s17 + $0x40] sm:$0xff] }
0x245f   :  { %v5835_v63 = vadd.f32 %v5831_v55, %v5601_v1  ;;  %10451 = vmatmul.mubr.msk.f32.vlgmr.msra.gmra.mrb[98].mxu0 %vm356_vm8, %v5833_v32 }
0x2460   :  { %v5834_v19 = vadd.f32 %v5830_v59, %v5600_v12  ;;  %11249 = vmatpush3.bf16.msra.mxu0 %v11715_v14  ;;  %v8994_v12 = vld [vmem:[%s13717_s17 + $0x48] sm:$0xff] }
0x2461   :  { %11250 = vmatprep.subr.bf16.mxu0 %v11715_v14 }
0x2462   :  { %10453 = vmatprep.mubr.msk.f32.mxu0 %vm356_vm8, %v5834_v19 }
0x2463   :  { %10454 = vmatmul.mubr.msk.f32.gmra.mrb[100].mxu0 %vm356_vm8, %v5835_v63  ;;  %v11252_v63 = vpack.c.bf16 %v8994_v12, %v8993_v10  ;;  %v9015_v10 = vld [vmem:[%s13719_s19 + $0x160] sm:$0xff]  ;;  %v9016_v12 = vld [vmem:[%s13719_s19 + $0x168] sm:$0xff] }
0x2464   :  { %11251 = vmatpush3.bf16.msra.mxu0 %v11715_v14 }
0x2465   :  { %11253 = vmatprep.subr.bf16.mxu1 %v11252_v63 }
0x2532   :  { %v10452_v11 = vpop.f32.mrb[98].mxu0 }
0x2533   :  { %v5939_v46 = vadd.f32 %v10452_v11, %v12876_v44  ;;  %v5919_v48 = vpop.f32.mrb[99].mxu0  ;;  %v8995_v11 = vld [vmem:[%s13717_s17 + $0x50] sm:$0xff] }
0x2534   :  { %v5938_v47 = vadd.f32 %v5919_v48, %v12874_v43 }
0x2535   :  { %v13160_v35 = vadd.f32 %v8980_v16, %v5939_v46  ;;  %v8996_v46 = vld [vmem:[%s13717_s17 + $0x58] sm:$0xff] }
0x2536   :  { %v13158_v24 = vadd.f32 %v8980_v16, %v5938_v47  ;;  %v10455_v15 = vpop.f32.mrb[100].mxu0 }
0x2537   :  { %v5941_v31 = vadd.f32 %v10455_v15, %v12888_v2  ;;  %v5929_v51 = vpop.f32.mrb[101].mxu0  ;;  %v8991_v15 = vld [vmem:[%s13715_s15 + $0x2] ss:$0 sm:$0xff] }
0x2538   :  { %v5940_v45 = vadd.f32 %v5929_v51, %v12886_v25  ;;  %10464 = vmatprep.mubr.msk.f32.mxu1 %vm356_vm8, %v13158_v24 }
0x2539   :  { %10465 = vmatmul.mubr.msk.f32.vlgmr.msra.gmra.mrb[92].mxu1 %vm356_vm8, %v13160_v35  ;;  %v13170_v56 = vadd.f32 %v8980_v16, %v5941_v31 }
0x253a   :  { %v13168_v44 = vadd.f32 %v8980_v16, %v5940_v45  ;;  %11255 = vmatpush3.bf16.msra.mxu1 %v11252_v63  ;;  %v11256_v16 = vpack.c.bf16 %v8996_v46, %v8995_v11  ;;  %v9017_v63 = vld [vmem:[%s13719_s19 + $0x170] sm:$0xff]  ;;  %v8998_v46 = vld [vmem:[%s13718_s18 + $0x2] ss:$0 sm:$0xff] }
0x253c   :  { %10467 = vmatprep.mubr.msk.f32.mxu1 %vm356_vm8, %v13168_v44  ;;  %11257 = vmatprep.subr.bf16.mxu1 %v11256_v16 }
0x253d   :  { %10468 = vmatmul.mubr.msk.f32.gmra.mrb[94].mxu1 %vm356_vm8, %v13170_v56 }
0x253e   :  { %11259 = vmatpush3.bf16.msra.mxu1 %v11256_v16 }
0x253f   :  { %11292 = vmatprep.subr.bf16.mxu1 %v11715_v14 }
0x260c   :  { %v10466_v43 = vpop.f32.mrb[92].mxu1 }
0x260d   :  { %v6056_v2 = vmul.f32 0.03125, %v10466_v43  ;;  %v6036_v38 = vpop.f32.mrb[93].mxu1 }
0x260e   :  { %v6055_v25 = vmul.f32 0.03125, %v6036_v38 }
0x260f   :  { %6066 = vperm.xlu1 %11452, %v6056_v2   ;;  %v8992_v2 = vld [vmem:[%s13716_s16 + $0x2] ss:$0 sm:$0xff] }
0x2610   :  { %6061 = vperm.xlu0 %11451, %v6055_v25   ;;  %v10469_v58 = vpop.f32.mrb[94].mxu1 }
0x2611   :  { %v6046_v21 = vpop.f32.mrb[95].mxu1  ;;  %v6058_v0 = vmul.f32 0.03125, %v10469_v58 }
0x2612   :  { %v6057_v50 = vmul.f32 0.03125, %v6046_v21 }
0x2614   :  { %6071 = vperm.xlu1 %11452, %v6057_v50  }
0x2618   :  { %6076 = vperm.xlu1 %11452, %v6058_v0  }
0x268e   :  { %v6067_v54 = vpop.permute.xlu1 %6066 }
0x268f   :  { %v6080_v9 = vsub.f32 %v13160_v35, %v6067_v54  ;;  %v6062_v52 = vpop.permute.xlu0 %6061 }
0x2690   :  { %v6079_v17 = vsub.f32 %v13158_v24, %v6062_v52 }
0x2691   :  { %v6084_v5 = vmul.f32 %v6080_v9, %v6080_v9 }
0x2692   :  { %v6083_v49 = vmul.f32 %v6079_v17, %v6079_v17 }
0x2693   :  { %v6072_v8 = vpop.permute.xlu1 %6071 }
0x2694   :  { %v6081_v20 = vsub.f32 %v13168_v44, %v6072_v8  ;;  %10478 = vmatprep.mubr.msk.f32.mxu0 %vm356_vm8, %v6083_v49  ;;  %v9003_v8 = vld [vmem:[%s13719_s19 + $0x100] sm:$0xff] }
0x2695   :  { %10479 = vmatmul.mubr.msk.f32.vlgmr.msra.gmra.mrb[102].mxu0 %vm356_vm8, %v6084_v5 }
0x2696   :  { %v6085_v53 = vmul.f32 %v6081_v20, %v6081_v20 }
0x2697   :  { %v6077_v4 = vpop.permute.xlu1 %6076 }
0x2698   :  { %v6082_v62 = vsub.f32 %v13170_v56, %v6077_v4  ;;  %10481 = vmatprep.mubr.msk.f32.mxu0 %vm356_vm8, %v6085_v53  ;;  %v9005_v4 = vld [vmem:[%s13719_s19 + $0x110] sm:$0xff] }
0x269a   :  { %v6086_v6 = vmul.f32 %v6082_v62, %v6082_v62 }
0x269c   :  { %10482 = vmatmul.mubr.msk.f32.gmra.mrb[104].mxu0 %vm356_vm8, %v6086_v6 }
0x2768   :  { %v10480_v57 = vpop.f32.mrb[102].mxu0 }
0x2769   :  { %v6185_v61 = vmul.f32 0.03125, %v10480_v57  ;;  %v6165_v3 = vpop.f32.mrb[103].mxu0  ;;  %v9007_v57 = vld [vmem:[%s13719_s19 + $0x120] sm:$0xff] }
0x276a   :  { %v6184_v18 = vmul.f32 0.03125, %v6165_v3 }
0x276b   :  { %v6189_v23 = vadd.f32 1e-05, %v6185_v61  ;;  %v9008_v61 = vld [vmem:[%s13719_s19 + $0x128] sm:$0xff] }
0x276c   :  { %v6188_v60 = vadd.f32 1e-05, %v6184_v18  ;;  %v11268_v3 = vpack.c.bf16 %v9008_v61, %v9007_v57  ;;  %v9009_v18 = vld [vmem:[%s13719_s19 + $0x130] sm:$0xff] }
0x276d   :  { %11595 = vrsqrt.f32 %v6189_v23  ;;  %v9010_v23 = vld [vmem:[%s13719_s19 + $0x138] sm:$0xff] }
0x276e   :  { %11597 = vrsqrt.f32 %v6188_v60  ;;  %v11272_v60 = vpack.c.bf16 %v9010_v23, %v9009_v18 }
0x276f   :  { %v10483_v13 = vpop.f32.mrb[104].mxu0 }
0x2770   :  { %v6187_v32 = vmul.f32 0.03125, %v10483_v13  ;;  %v6175_v41 = vpop.f32.mrb[105].mxu0  ;;  %v9011_v13 = vld [vmem:[%s13719_s19 + $0x140] sm:$0xff] }
0x2771   :  { %v6186_v42 = vmul.f32 0.03125, %v6175_v41 }
0x2772   :  { %v6191_v1 = vadd.f32 1e-05, %v6187_v32  ;;  %v9012_v32 = vld [vmem:[%s13719_s19 + $0x148] sm:$0xff] }
0x2773   :  { %v6190_v55 = vadd.f32 1e-05, %v6186_v42  ;;  %v11276_v41 = vpack.c.bf16 %v9012_v32, %v9011_v13  ;;  %v9013_v42 = vld [vmem:[%s13719_s19 + $0x150] sm:$0xff] }
0x2774   :  { %11599 = vrsqrt.f32 %v6191_v1  ;;  %v9014_v1 = vld [vmem:[%s13719_s19 + $0x158] sm:$0xff] }
0x2775   :  { %11601 = vrsqrt.f32 %v6190_v55  ;;  %v11280_v55 = vpack.c.bf16 %v9014_v1, %v9013_v42 }
0x2777   :  { %v11596_v59 = vpop.eup %11595 }
0x2778   :  { %v11598_v19 = vpop.eup %11597  ;;  %6203 = vperm.xlu1 %11452, %v11596_v59   ;;  %v11284_v59 = vpack.c.bf16 %v9016_v12, %v9015_v10 }
0x2779   :  { %6198 = vperm.xlu0 %11451, %v11598_v19   ;;  %v9018_v19 = vld [vmem:[%s13719_s19 + $0x178] sm:$0xff] }
0x277a   :  { %v11288_v11 = vpack.c.bf16 %v9018_v19, %v9017_v63 }
0x277e   :  { %v11600_v48 = vpop.eup %11599 }
0x277f   :  { %v11602_v47 = vpop.eup %11601  ;;  %6213 = vperm.xlu1 %11452, %v11600_v48  }
0x2780   :  { %6208 = vperm.xlu0 %11451, %v11602_v47  }
0x27f7   :  { %v6204_v31 = vpop.permute.xlu1 %6203 }
0x27f8   :  { %v6217_v51 = vmul.f32 %v6204_v31, %v6080_v9  ;;  %v6199_v45 = vpop.permute.xlu0 %6198 }
0x27f9   :  { %v6216_v43 = vmul.f32 %v6199_v45, %v6079_v17 }
0x27fa   :  { %v6227_v38 = vmul.f32 %v8991_v15, %v6217_v51 }
0x27fb   :  { %v6226_v25 = vmul.f32 %v8991_v15, %v6216_v43 }
0x27fc   :  { %v6237_v21 = vadd.f32 %v8992_v2, %v6227_v38 }
0x27fd   :  { %v6236_v58 = vadd.f32 %v8992_v2, %v6226_v25 }
0x27fe   :  { %v6214_v50 = vpop.permute.xlu1 %6213 }
0x27ff   :  { %v6219_v0 = vmul.f32 %v6214_v50, %v6082_v62  ;;  %10492 = vmatprep.mubr.msk.f32.mxu1 %vm356_vm8, %v6236_v58  ;;  %v6209_v54 = vpop.permute.xlu0 %6208  ;;  %v9006_v62 = vld [vmem:[%s13719_s19 + $0x118] sm:$0xff] }
0x2800   :  { %v6218_v52 = vmul.f32 %v6209_v54, %v6081_v20  ;;  %10493 = vmatmul.mubr.msk.f32.vlgmr.msra.gmra.mrb[96].mxu1 %vm356_vm8, %v6237_v21  ;;  %v9004_v20 = vld [vmem:[%s13719_s19 + $0x108] sm:$0xff]  ;;  %v11264_v6 = vpack.c.bf16 %v9006_v62, %v9005_v4 }
0x2801   :  { %v6229_v49 = vmul.f32 %v8991_v15, %v6219_v0  ;;  %11293 = vmatpush3.bf16.msra.mxu1 %v11715_v14  ;;  %v11260_v53 = vpack.c.bf16 %v9004_v20, %v9003_v8 }
0x2802   :  { %v6228_v9 = vmul.f32 %v8991_v15, %v6218_v52  ;;  %11294 = vmatprep.subr.bf16.mxu1 %v11715_v14 }
0x2803   :  { %v6239_v5 = vadd.f32 %v8992_v2, %v6229_v49  ;;  %11261 = vmatprep.subr.bf16.mxu0 %v11260_v53 }
0x2804   :  { %v6238_v17 = vadd.f32 %v8992_v2, %v6228_v9  ;;  %11263 = vmatpush3.bf16.msra.mxu0 %v11260_v53 }
0x2805   :  { %11295 = vmatpush3.bf16.msra.mxu1 %v11715_v14  ;;  %11265 = vmatprep.subr.bf16.mxu0 %v11264_v6 }
0x2806   :  { %10495 = vmatprep.mubr.msk.f32.mxu1 %vm356_vm8, %v6238_v17  ;;  %11296 = vmatprep.subr.bf16.mxu1 %v11715_v14 }
0x2807   :  { %10496 = vmatmul.mubr.msk.f32.gmra.mrb[98].mxu1 %vm356_vm8, %v6239_v5 }
0x2808   :  { %11267 = vmatpush3.bf16.msra.mxu0 %v11264_v6 }
0x2809   :  { %11269 = vmatprep.subr.bf16.mxu0 %v11268_v3 }
0x280c   :  { %11271 = vmatpush3.bf16.msra.mxu0 %v11268_v3 }
0x280d   :  { %11273 = vmatprep.subr.bf16.mxu0 %v11272_v60 }
0x2810   :  { %11275 = vmatpush3.bf16.msra.mxu0 %v11272_v60 }
0x2811   :  { %11277 = vmatprep.subr.bf16.mxu0 %v11276_v41 }
0x2814   :  { %11279 = vmatpush3.bf16.msra.mxu0 %v11276_v41 }
0x2815   :  { %11281 = vmatprep.subr.bf16.mxu0 %v11280_v55 }
0x2818   :  { %11283 = vmatpush3.bf16.msra.mxu0 %v11280_v55 }
0x2819   :  { %11285 = vmatprep.subr.bf16.mxu0 %v11284_v59 }
0x281c   :  { %11287 = vmatpush3.bf16.msra.mxu0 %v11284_v59 }
0x281d   :  { %11289 = vmatprep.subr.bf16.mxu0 %v11288_v11 }
0x2820   :  { %11291 = vmatpush3.bf16.msra.mxu0 %v11288_v11 }
0x28d3   :  { %v10494_v16 = vpop.f32.mrb[96].mxu1 }
0x28d4   :  { %v6337_v48 = vadd.f32 %v10494_v16, %v8998_v46  ;;  %v6331_v47 = vpop.f32.mrb[97].mxu1  ;;  %v9020_v16 = vld [vmem:[%s13720_s20 + $0x2] ss:$0 sm:$0xff] }
0x28d5   :  { %v6332_v15 = vadd.f32 %v8998_v46, %v6331_v47 }
0x28d6   :  { %v6351_v31 = vmul.f32 %v6337_v48, %v6337_v48 }
0x28d7   :  { %v6350_v51 = vmul.f32 %v6332_v15, %v6332_v15 }
0x28d8   :  { %v6355_v45 = vmul.f32 %v6351_v31, %v6337_v48 }
0x28d9   :  { %v6354_v43 = vmul.f32 %v6350_v51, %v6332_v15 }
0x28da   :  { %v6359_v2 = vmul.f32 0.044715, %v6355_v45  ;;  %v10497_v38 = vpop.f32.mrb[98].mxu1 }
0x28db   :  { %v6358_v25 = vmul.f32 0.044715, %v6354_v43  ;;  %v6347_v58 = vadd.f32 %v10497_v38, %v8998_v46  ;;  %v6341_v21 = vpop.f32.mrb[99].mxu1 }
0x28dc   :  { %v6363_v50 = vadd.f32 %v6359_v2, %v6337_v48  ;;  %v6342_v0 = vadd.f32 %v8998_v46, %v6341_v21 }
0x28dd   :  { %v6362_v54 = vadd.f32 %v6358_v25, %v6332_v15  ;;  %v6353_v52 = vmul.f32 %v6347_v58, %v6347_v58 }
0x28de   :  { %v6367_v49 = vmul.f32 0.7978846, %v6363_v50  ;;  %v6352_v9 = vmul.f32 %v6342_v0, %v6342_v0 }
0x28df   :  { %v6366_v17 = vmul.f32 0.7978846, %v6362_v54  ;;  %v6357_v5 = vmul.f32 %v6353_v52, %v6347_v58 }
0x28e0   :  { %11603 = vtanh.f32 %v6367_v49  ;;  %v6356_v8 = vmul.f32 %v6352_v9, %v6342_v0 }
0x28e1   :  { %v6361_v20 = vmul.f32 0.044715, %v6357_v5  ;;  %11605 = vtanh.f32 %v6366_v17 }
0x28e2   :  { %v6360_v53 = vmul.f32 0.044715, %v6356_v8 }
0x28e3   :  { %v6365_v4 = vadd.f32 %v6361_v20, %v6347_v58 }
0x28e4   :  { %v6364_v62 = vadd.f32 %v6360_v53, %v6342_v0 }
0x28e5   :  { %v6369_v6 = vmul.f32 0.7978846, %v6365_v4 }
0x28e6   :  { %v6368_v57 = vmul.f32 0.7978846, %v6364_v62 }
0x28e7   :  { %11607 = vtanh.f32 %v6369_v6 }
0x28e8   :  { %11609 = vtanh.f32 %v6368_v57 }
0x28ea   :  { %v11604_v61 = vpop.eup %11603 }
0x28eb   :  { %v11606_v3 = vpop.eup %11605  ;;  %v6375_v18 = vadd.f32 1.0, %v11604_v61 }
0x28ec   :  { %v6374_v23 = vadd.f32 1.0, %v11606_v3 }
0x28ed   :  { %v6379_v60 = vmul.f32 0.5, %v6375_v18 }
0x28ee   :  { %v6378_v13 = vmul.f32 0.5, %v6374_v23 }
0x28ef   :  { %v6383_v42 = vmul.f32 %v6379_v60, %v6337_v48 }
0x28f0   :  { %v6382_v32 = vmul.f32 %v6378_v13, %v6332_v15 }
0x28f1   :  { %v11608_v41 = vpop.eup %11607 }
0x28f2   :  { %v11610_v1 = vpop.eup %11609  ;;  %10530 = vmatprep.mubr.f32.mxu0 %v6382_v32  ;;  %v6377_v55 = vadd.f32 1.0, %v11608_v41 }
0x28f3   :  { %10531 = vmatmul.mubr.f32.vlgmr.msra.gmra.mrb[106].mxu0 %v6383_v42  ;;  %v6376_v10 = vadd.f32 1.0, %v11610_v1 }
0x28f4   :  { %v6381_v12 = vmul.f32 0.5, %v6377_v55 }
0x28f5   :  { %v6380_v59 = vmul.f32 0.5, %v6376_v10  ;;  %v9033_v10 = vld [vmem:[%s13710_s10 + $0x60] sm:$0xff] }
0x28f6   :  { %v6385_v19 = vmul.f32 %v6381_v12, %v6347_v58  ;;  %v9034_v12 = vld [vmem:[%s13710_s10 + $0x68] sm:$0xff] }
0x28f7   :  { %v6384_v63 = vmul.f32 %v6380_v59, %v6342_v0  ;;  %v9049_v59 = vld [vmem:[%s13712_s12 + $0x60] sm:$0xff] }
0x28f9   :  { %10533 = vmatprep.mubr.f32.mxu0 %v6384_v63 }
0x28fa   :  { %10534 = vmatmul.mubr.f32.gmra.mrb[108].mxu0 %v6385_v19  ;;  %v11300_v19 = vpack.c.bf16 %v9034_v12, %v9033_v10 }
0x29c6   :  { %v10532_v11 = vpop.f32.mrb[106].mxu0 }
0x29c7   :  { %v6489_v46 = vadd.f32 %v10532_v11, %v13160_v35  ;;  %v6469_v47 = vpop.f32.mrb[107].mxu0  ;;  %v9050_v11 = vld [vmem:[%s13712_s12 + $0x68] sm:$0xff] }
0x29c8   :  { %v6488_v48 = vadd.f32 %v6469_v47, %v13158_v24  ;;  %v9035_v47 = vld [vmem:[%s13710_s10 + $0x70] sm:$0xff] }
0x29c9   :  { %v13269_v31 = vadd.f32 %v9020_v16, %v6489_v46 }
0x29ca   :  { %v13267_v15 = vadd.f32 %v9020_v16, %v6488_v48  ;;  %v9036_v48 = vld [vmem:[%s13710_s10 + $0x78] sm:$0xff] }
0x29cc   :  { %10544 = vmatprep.mubr.msk.f32.mxu1 %vm356_vm8, %v13267_v15 }
0x29cd   :  { %v10535_v51 = vpop.f32.mrb[108].mxu0  ;;  %10545 = vmatmul.mubr.msk.f32.vlgmr.msra.gmra.mrb[100].mxu1 %vm356_vm8, %v13269_v31 }
0x29ce   :  { %v6491_v35 = vadd.f32 %v10535_v51, %v13170_v56  ;;  %v6479_v45 = vpop.f32.mrb[109].mxu0  ;;  %11297 = vmatpush3.bf16.msra.mxu1 %v11715_v14  ;;  %v9051_v51 = vld [vmem:[%s13712_s12 + $0x70] sm:$0xff] }
0x29cf   :  { %v6490_v43 = vadd.f32 %v6479_v45, %v13168_v44  ;;  %11298 = vmatprep.subr.bf16.mxu1 %v11715_v14  ;;  %v9052_v45 = vld [vmem:[%s13712_s12 + $0x78] sm:$0xff]  ;;  %s11720_s12 = smov [#allocation2]  }
0x29d0   :  { %v13281_v2 = vadd.f32 %v9020_v16, %v6491_v35  ;;  %v11304_v35 = vpack.c.bf16 %v9036_v48, %v9035_v47 }
0x29d1   :  { %v13279_v24 = vadd.f32 %v9020_v16, %v6490_v43  ;;  %v11316_v16 = vpack.c.bf16 %v9050_v11, %v9049_v59  ;;  %v11320_v43 = vpack.c.bf16 %v9052_v45, %v9051_v51 }
0x29d2   :  { %11299 = vmatpush3.bf16.msra.mxu1 %v11715_v14 }
0x29d3   :  { %10547 = vmatprep.mubr.msk.f32.mxu1 %vm356_vm8, %v13279_v24  ;;  %11301 = vmatprep.subr.bf16.mxu1 %v11300_v19 }
0x29d4   :  { %10548 = vmatmul.mubr.msk.f32.gmra.mrb[102].mxu1 %vm356_vm8, %v13281_v2  ;;  %11317 = vmatprep.subr.bf16.mxu0 %v11316_v16 }
0x29d5   :  { %11319 = vmatpush3.bf16.msra.mxu0 %v11316_v16 }
0x29d6   :  { %11321 = vmatprep.subr.bf16.mxu0 %v11320_v43 }
0x29d9   :  { %11323 = vmatpush3.bf16.msra.mxu0 %v11320_v43 }
0x29da   :  { %11332 = vmatprep.subr.bf16.mxu0 %v11717_v34 }
0x2aa0   :  { %v10546_v56 = vpop.f32.mrb[100].mxu1 }
0x2aa1   :  { %v6606_v38 = vmul.f32 0.03125, %v10546_v56  ;;  %v6586_v25 = vpop.f32.mrb[101].mxu1 }
0x2aa2   :  { %v6605_v58 = vmul.f32 0.03125, %v6586_v25  ;;  %v9041_v25 = vld [vmem:[%s13711_s11 + $0x60] sm:$0xff] }
0x2aa3   :  { %6616 = vperm.xlu1 %11452, %v6606_v38  }
0x2aa4   :  { %6611 = vperm.xlu0 %11451, %v6605_v58   ;;  %v9042_v58 = vld [vmem:[%s13711_s11 + $0x68] sm:$0xff] }
0x2aa7   :  { %v10549_v44 = vpop.f32.mrb[102].mxu1 }
0x2aa8   :  { %v6608_v21 = vmul.f32 0.03125, %v10549_v44  ;;  %v6596_v50 = vpop.f32.mrb[103].mxu1  ;;  %v11308_v44 = vpack.c.bf16 %v9042_v58, %v9041_v25 }
0x2aa9   :  { %v6607_v0 = vmul.f32 0.03125, %v6596_v50 }
0x2aaa   :  { %6626 = vperm.xlu1 %11452, %v6608_v21   ;;  %v9031_v21 = vld [vmem:[%s13708_s8 + $0x3] ss:$0 sm:$0xff] }
0x2aab   :  { %6621 = vperm.xlu0 %11451, %v6607_v0  }
0x2b22   :  { %v6617_v54 = vpop.permute.xlu1 %6616 }
0x2b23   :  { %v13289_v52 = vsub.f32 %v13269_v31, %v6617_v54  ;;  %v6612_v49 = vpop.permute.xlu0 %6611 }
0x2b24   :  { %v13292_v9 = vsub.f32 %v13267_v15, %v6612_v49 }
0x2b25   :  { %v6634_v5 = vmul.f32 %v13289_v52, %v13289_v52 }
0x2b26   :  { %v6633_v17 = vmul.f32 %v13292_v9, %v13292_v9 }
0x2b28   :  { %10558 = vmatprep.mubr.msk.f32.mxu1 %vm356_vm8, %v6633_v17  ;;  %v9032_v17 = vld [vmem:[%s13709_s9 + $0x3] ss:$0 sm:$0xff] }
0x2b29   :  { %10559 = vmatmul.mubr.msk.f32.vlgmr.msra.gmra.mrb[104].mxu1 %vm356_vm8, %v6634_v5  ;;  %v6627_v8 = vpop.permute.xlu1 %6626 }
0x2b2a   :  { %v13301_v20 = vsub.f32 %v13281_v2, %v6627_v8  ;;  %v6622_v53 = vpop.permute.xlu0 %6621  ;;  %11303 = vmatpush3.bf16.msra.mxu1 %v11300_v19 }
0x2b2b   :  { %v13304_v4 = vsub.f32 %v13279_v24, %v6622_v53  ;;  %11305 = vmatprep.subr.bf16.mxu1 %v11304_v35  ;;  %v9043_v53 = vld [vmem:[%s13711_s11 + $0x70] sm:$0xff] }
0x2b2c   :  { %v6636_v6 = vmul.f32 %v13301_v20, %v13301_v20 }
0x2b2d   :  { %v6635_v62 = vmul.f32 %v13304_v4, %v13304_v4 }
0x2b2e   :  { %11307 = vmatpush3.bf16.msra.mxu1 %v11304_v35 }
0x2b2f   :  { %10561 = vmatprep.mubr.msk.f32.mxu1 %vm356_vm8, %v6635_v62  ;;  %11309 = vmatprep.subr.bf16.mxu1 %v11308_v44  ;;  %v9044_v62 = vld [vmem:[%s13711_s11 + $0x78] sm:$0xff] }
0x2b30   :  { %10562 = vmatmul.mubr.msk.f32.gmra.mrb[106].mxu1 %vm356_vm8, %v6636_v6 }
0x2bfc   :  { %v10560_v57 = vpop.f32.mrb[104].mxu1 }
0x2bfd   :  { %v6735_v61 = vmul.f32 0.03125, %v10560_v57  ;;  %v6715_v3 = vpop.f32.mrb[105].mxu1 }
0x2bfe   :  { %v6734_v18 = vmul.f32 0.03125, %v6715_v3 }
0x2bff   :  { %v6739_v23 = vadd.f32 1e-05, %v6735_v61  ;;  %v11312_v61 = vpack.c.bf16 %v9044_v62, %v9043_v53 }
0x2c00   :  { %v6738_v60 = vadd.f32 1e-05, %v6734_v18 }
0x2c01   :  { %11611 = vrsqrt.f32 %v6739_v23 }
0x2c02   :  { %11613 = vrsqrt.f32 %v6738_v60 }
0x2c03   :  { %v10563_v13 = vpop.f32.mrb[106].mxu1 }
0x2c04   :  { %v6737_v32 = vmul.f32 0.03125, %v10563_v13  ;;  %v6725_v41 = vpop.f32.mrb[107].mxu1 }
0x2c05   :  { %v6736_v42 = vmul.f32 0.03125, %v6725_v41 }
0x2c06   :  { %v6741_v1 = vadd.f32 1e-05, %v6737_v32 }
0x2c07   :  { %v6740_v55 = vadd.f32 1e-05, %v6736_v42 }
0x2c08   :  { %11615 = vrsqrt.f32 %v6741_v1 }
0x2c09   :  { %11617 = vrsqrt.f32 %v6740_v55 }
0x2c0b   :  { %v11612_v63 = vpop.eup %11611 }
0x2c0c   :  { %v11614_v46 = vpop.eup %11613  ;;  %6753 = vperm.xlu1 %11452, %v11612_v63  }
0x2c0d   :  { %6748 = vperm.xlu0 %11451, %v11614_v46  }
0x2c12   :  { %v11616_v56 = vpop.eup %11615 }
0x2c13   :  { %v11618_v38 = vpop.eup %11617  ;;  %6763 = vperm.xlu1 %11452, %v11616_v56  }
0x2c14   :  { %6758 = vperm.xlu0 %11451, %v11618_v38  }
0x2c8b   :  { %v6754_v50 = vpop.permute.xlu1 %6753 }
0x2c8c   :  { %v6767_v0 = vmul.f32 %v6754_v50, %v13289_v52  ;;  %v6749_v54 = vpop.permute.xlu0 %6748 }
0x2c8d   :  { %v6766_v49 = vmul.f32 %v6749_v54, %v13292_v9 }
0x2c8e   :  { %v6777_v5 = vmul.f32 %v9031_v21, %v6767_v0 }
0x2c8f   :  { %v6776_v8 = vmul.f32 %v9031_v21, %v6766_v49 }
0x2c90   :  { %v6787_v57 = vadd.f32 %v9032_v17, %v6777_v5 }
0x2c91   :  { %v6786_v6 = vadd.f32 %v9032_v17, %v6776_v8 }
0x2c92   :  { %v6764_v52 = vpop.permute.xlu1 %6763 }
0x2c93   :  { %v6769_v9 = vmul.f32 %v6764_v52, %v13301_v20  ;;  %10572 = vmatprep.mubr.msk.f32.mxu1 %vm356_vm8, %v6786_v6  ;;  %10600 = vmatprep.mubr.msk.f32.mxu0 %vm356_vm8, %v6786_v6  ;;  %v6759_v3 = vpop.permute.xlu0 %6758 }
0x2c94   :  { %v6768_v18 = vmul.f32 %v6759_v3, %v13304_v4  ;;  %10573 = vmatmul.mubr.msk.f32.vlgmr.msra.gmra.mrb[108].mxu1 %vm356_vm8, %v6787_v57  ;;  %10601 = vmatmul.mubr.msk.f32.vlgmr.msra.gmra.mrb[110].mxu0 %vm356_vm8, %v6787_v57 }
0x2c95   :  { %v6779_v23 = vmul.f32 %v9031_v21, %v6769_v9  ;;  %11311 = vmatpush3.bf16.msra.mxu1 %v11308_v44 }
0x2c96   :  { %v6778_v60 = vmul.f32 %v9031_v21, %v6768_v18  ;;  %11313 = vmatprep.subr.bf16.mxu1 %v11312_v61 }
0x2c97   :  { %v6789_v32 = vadd.f32 %v9032_v17, %v6779_v23 }
0x2c98   :  { %v6788_v13 = vadd.f32 %v9032_v17, %v6778_v60  ;;  %v13417_v60 = vld [vmem:[%s13748_s30] sm:$0x3] }
0x2c99   :  { %11315 = vmatpush3.bf16.msra.mxu1 %v11312_v61 }
0x2c9a   :  { %10575 = vmatprep.mubr.msk.f32.mxu1 %vm356_vm8, %v6788_v13  ;;  %10603 = vmatprep.mubr.msk.f32.mxu0 %vm356_vm8, %v6788_v13 }
0x2c9b   :  { %10576 = vmatmul.mubr.msk.f32.gmra.mrb[110].mxu1 %vm356_vm8, %v6789_v32  ;;  %10604 = vmatmul.mubr.msk.f32.gmra.mrb[112].mxu0 %vm356_vm8, %v6789_v32 }
0x2c9c   :  { %10586 = vmatprep.mubr.msk.f32.mxu1 %vm356_vm8, %v6786_v6  ;;  %11325 = vmatprep.subr.bf16.mxu1 %v12155_v30 }
0x2c9d   :  { %10628 = vmatprep.mubr.msk.f32.mxu0 %vm11718_vm9, %v11714_v7 }
0x2c9f   :  { %10587 = vmatmul.mubr.msk.f32.vlgmr.msra.gmra.mrb[112].mxu1 %vm356_vm8, %v6787_v57 }
0x2ca0   :  { %10589 = vmatprep.mubr.msk.f32.mxu1 %vm356_vm8, %v6788_v13  ;;  %11327 = vmatpush3.bf16.msra.mxu1 %v12155_v30  ;;  %v11682_v13 = vld [vmem:[%s13749_s5] sm:$0xff] }
0x2ca1   :  { %11329 = vmatprep.subr.bf16.mxu1 %v12171_v33 }
0x2ca3   :  { %10590 = vmatmul.mubr.msk.f32.gmra.mrb[114].mxu1 %vm356_vm8, %v6789_v32 }
0x2ca4   :  { %11331 = vmatpush3.bf16.msra.mxu1 %v12171_v33 }
0x2d67   :  { %v13377_v20 = vpop.f32.mrb[108].mxu1  ;;  %v10602_v4 = vpop.f32.mrb[110].mxu0 }
0x2d68   :  { %v13379_v41 = vpop.f32.mrb[109].mxu1  ;;  %v7053_v42 = vpop.f32.mrb[111].mxu0  ;;  %v7075_v1 = vsel %vm356_vm8, %v13377_v20, -inf }
0x2d69   :  { %v13383_v55 = vpack.c.bf16 %v10602_v4, %v7053_v42  ;;  %7076 = vmax.xlane.f32.xlu1 %v7075_v1  ;;  %v7072_v30 = vsel %vm356_vm8, %v13379_v41, -inf }
0x2d6a   :  { %7073 = vmax.xlane.f32.xlu0 %v7072_v30 }
0x2d6b   :  { %11340 = vmatprep.subr.bf16.mxu1 %v13383_v55 }
0x2d6e   :  { %v13388_v10 = vpop.f32.mrb[110].mxu1  ;;  %v10605_v33 = vpop.f32.mrb[112].mxu0 }
0x2d6f   :  { %v6883_v12 = vpop.f32.mrb[111].mxu1  ;;  %v7063_v59 = vpop.f32.mrb[113].mxu0  ;;  %v7081_v48 = vsel %vm927_vm10, %v13388_v10, -inf }
0x2d70   :  { %v13390_v63 = vpack.c.bf16 %v10605_v33, %v7063_v59  ;;  %v7078_v19 = vsel %vm356_vm8, %v6883_v12, -inf }
0x2d71   :  { %7079 = vmax.xlane.f32.xlu0 %v7078_v19 }
0x2d72   :  { %v10588_v11 = vpop.f32.mrb[112].mxu1 }
0x2d73   :  { %v7202_v46 = vsel %vm356_vm8, %v10588_v11, -inf  ;;  %v6963_v16 = vpop.f32.mrb[113].mxu1 }
0x2d74   :  { %v7201_v47 = vsel %vm356_vm8, %v6963_v16, -inf }
0x2d75   :  { %v7205_v51 = vmax.f32 %v7201_v47, %v7202_v46  ;;  %7082 = vmax.xlane.f32.xlu0 %v7081_v48 }
0x2d76   :  { %v10591_v35 = vpop.f32.mrb[114].mxu1 }
0x2d77   :  { %v7204_v45 = vsel %vm927_vm10, %v10591_v35, -inf  ;;  %v6973_v43 = vpop.f32.mrb[115].mxu1 }
0x2d78   :  { %v7203_v56 = vsel %vm356_vm8, %v6973_v43, -inf }
0x2d79   :  { %v7206_v38 = vmax.f32 %v7203_v56, %v7204_v45  ;;  %v11683_v45 = vld [vmem:[%s13749_s5 + $0x8] sm:$0xff]  ;;  %v11685_v56 = vld [vmem:[%s13749_s5 + $0x18] sm:$0x3f] }
0x2d7b   :  { %v7207_v25 = vmax.f32 %v7205_v51, %v7206_v38 }
0x2d7d   :  { %v7208_v58 = vrot.slane %v7207_v25, 4 }
0x2d7f   :  { %v7209_v44 = vmax.f32 %v7207_v25, %v7208_v58 }
0x2d81   :  { %v7210_v21 = vrot.slane %v7209_v44, 2 }
0x2d83   :  { %v7211_v50 = vmax.f32 %v7209_v44, %v7210_v21 }
0x2d85   :  { %v7212_v0 = vrot.slane %v7211_v50, 1 }
0x2d87   :  { %v7213_v54 = vmax.f32 %v7211_v50, %v7212_v0 }
0x2d89   :  { %v7214_v49 = vsub.f32 %v6963_v16, %v7213_v54  ;;  %v7215_v17 = vsub.f32 %v10588_v11, %v7213_v54  ;;  %v7216_v5 = vsub.f32 %v6973_v43, %v7213_v54  ;;  %v7217_v8 = vsub.f32 %v10591_v35, %v7213_v54  ;;  %v11684_v43 = vld [vmem:[%s13749_s5 + $0x10] sm:$0xff] }
0x2d8b   :  { %v7218_v53 = vmul.f32 1.442695, %v7214_v49  ;;  %v7220_v62 = vmul.f32 1.442695, %v7215_v17  ;;  %v7222_v6 = vmul.f32 1.442695, %v7216_v5 }
0x2d8c   :  { %v7224_v57 = vmul.f32 1.442695, %v7217_v8 }
0x2d8d   :  { %11619 = vpow2.f32 %v7218_v53 }
0x2d8e   :  { %11621 = vpow2.f32 %v7220_v62 }
0x2d8f   :  { %11623 = vpow2.f32 %v7222_v6 }
0x2d90   :  { %11625 = vpow2.f32 %v7224_v57 }
0x2d97   :  { %v13399_v52 = vpop.eup %11619 }
0x2d98   :  { %v13401_v61 = vpop.eup %11621 }
0x2d99   :  { %v13403_v9 = vpop.eup %11623  ;;  %v11333_v3 = vpack.c.bf16 %v13401_v61, %v13399_v52 }
0x2d9a   :  { %v13407_v18 = vpop.eup %11625 }
0x2d9b   :  { %11334 = vmatpush3.bf16.msra.mxu0 %v11333_v3  ;;  %v11336_v23 = vpack.c.bf16 %v13407_v18, %v13403_v9 }
0x2d9c   :  { %11335 = vmatprep.subr.bf16.mxu0 %v11717_v34 }
0x2d9f   :  { %11338 = vmatpush3.bf16.msk.msra.mxu0 %vm12214_vm13, %v11336_v23 }
0x2da2   :  { %10629 = vmatmul.mubr.msk.f32.vlgmr.msra.gmra.mrb[114].mxu0 %vm1073_vm14, %v13417_v60 }
0x2da3   :  { %10633 = vmatprep.mubr.msk.f32.mxu0 %vm1152_vm15, %v11682_v13 }
0x2df6   :  { %v7077_v32 = vpop.xlane.xlu1 %7076 }
0x2df7   :  { %v7085_v4 = vsub.f32 %v13377_v20, %v7077_v32  ;;  %v7074_v42 = vpop.xlane.xlu0 %7073 }
0x2df8   :  { %v7084_v1 = vsub.f32 %v13379_v41, %v7074_v42 }
0x2df9   :  { %v7090_v30 = vmul.f32 1.442695, %v7085_v4 }
0x2dfa   :  { %v7088_v33 = vmul.f32 1.442695, %v7084_v1 }
0x2dfc   :  { %11627 = vpow2.f32 %v7088_v33 }
0x2dfd   :  { %11629 = vpow2.f32 %v7090_v30 }
0x2dfe   :  { %v7080_v59 = vpop.xlane.xlu0 %7079 }
0x2dff   :  { %v7086_v19 = vsub.f32 %v6883_v12, %v7080_v59 }
0x2e01   :  { %v7092_v11 = vmul.f32 1.442695, %v7086_v19  ;;  %v11686_v19 = vld [vmem:[%s13745_s2 + $0x8] sm:$0xff] }
0x2e02   :  { %v7083_v46 = vpop.xlane.xlu0 %7082 }
0x2e03   :  { %11631 = vpow2.f32 %v7092_v11  ;;  %v7087_v16 = vsub.f32 %v13388_v10, %v7083_v46  ;;  %v11687_v46 = vld [vmem:[%s13745_s2] sm:$0xff] }
0x2e05   :  { %v7094_v47 = vmul.f32 1.442695, %v7087_v16 }
0x2e06   :  { %v11628_v48 = vpop.eup %11627 }
0x2e07   :  { %v13428_v51 = vpop.eup %11629  ;;  %11633 = vpow2.f32 %v7094_v47  ;;  %10614 = vmatprep.mubr.msk.f32.mxu1 %vm356_vm8, %v11628_v48 }
0x2e08   :  { %10615 = vmatmul.mubr.msk.f32.vlgmr.msra.gmra.mrb[116].mxu1 %vm356_vm8, %v13428_v51 }
0x2e09   :  { %11342 = vmatpush3.bf16.msra.mxu1 %v13383_v55 }
0x2e0a   :  { %11345 = vmatprep.subr.msk.bf16.mxu1 %vm12214_vm13, %v13390_v63 }
0x2e0d   :  { %v13437_v20 = vpop.eup %11631  ;;  %11348 = vmatpush3.bf16.msk.msra.mxu1 %vm12214_vm13, %v13390_v63 }
0x2e0e   :  { %11358 = vmatprep.subr.bf16.mxu1 %v13383_v55  ;;  %10617 = vmatprep.mubr.msk.f32.mxu1 %vm356_vm8, %v13437_v20 }
0x2e11   :  { %v13445_v41 = vpop.eup %11633 }
0x2e12   :  { %10618 = vmatmul.mubr.msk.f32.gmra.mrb[118].mxu1 %vm356_vm8, %v13445_v41 }
0x2e75   :  { %v7295_v10 = vpop.f32.mrb[114].mxu0 }
0x2e76   :  { %11635 = vrcp.f32 %v7295_v10  ;;  %v10630_v12 = vpop.f32.mrb[115].mxu0  ;;  %v11688_v10 = vld [vmem:[%s13745_s2 + $0x18] sm:$0xff] }
0x2e80   :  { %v11636_v35 = vpop.eup %11635 }
0x2e81   :  { %10631 = vmatprep.subr.msk.mxu0 %vm1165_vm0, %v11636_v35 }
0x2e82   :  { %10632 = vmatpush3.msk.msra.mxu0 %vm1165_vm0, %v11636_v35 }
0x2e83   :  { %10634 = vmatmul.mubr.msk.f32.vlgmr.msra.gmra.mrb[116].mxu0 %vm1152_vm15, %v11683_v45  ;;  %v11689_v45 = vld [vmem:[%s13745_s2 + $0x10] sm:$0xff] }
0x2e84   :  { %10636 = vmatprep.mubr.msk.f32.mxu0 %vm1152_vm15, %v11684_v43 }
0x2e87   :  { %10637 = vmatmul.mubr.msk.f32.gmra.mrb[118].mxu0 %vm1152_vm15, %v11685_v56 }
0x2edb   :  { %v10616_v38 = vpop.f32.mrb[116].mxu1 }
0x2edc   :  { %v7174_v25 = vpop.f32.mrb[117].mxu1 }
0x2edd   :  { %11637 = vrcp.f32 %v7174_v25 }
0x2ede   :  { %11639 = vrcp.f32 %v10616_v38 }
0x2ee5   :  { %v10619_v58 = vpop.f32.mrb[118].mxu1 }
0x2ee6   :  { %v7184_v44 = vpop.f32.mrb[119].mxu1 }
0x2ee7   :  { %v11638_v21 = vpop.eup %11637  ;;  %11641 = vrcp.f32 %v7184_v44 }
0x2ee8   :  { %v13463_v50 = vmul.f32 %v11638_v21, %v11628_v48  ;;  %11643 = vrcp.f32 %v10619_v58  ;;  %v11640_v38 = vpop.eup %11639 }
0x2eea   :  { %10661 = vmatprep.mubr.msk.f32.mxu0 %vm356_vm8, %v13463_v50 }
0x2f56   :  { %v10635_v0 = vpop.f32.mrb[116].mxu0 }
0x2f57   :  { %v7369_v54 = vpop.f32.mrb[117].mxu0  ;;  %v7389_v17 = vmul.f32 %v13401_v61, %v10635_v0  ;;  %v11642_v0 = vpop.eup %11641 }
0x2f58   :  { %v7388_v49 = vmul.f32 %v13399_v52, %v7369_v54  ;;  %v7198_v54 = vmul.f32 %v11640_v38, %v13428_v51  ;;  %v9086_v51 = vld [vmem:[%s13713_s13 + $0x60] sm:$0xff] }
0x2f59   :  { %v7393_v6 = vmul.f32 %v7389_v17, %v12232_v29  ;;  %v7638_v57 = vmul.f32 %v7389_v17, %v12240_v40 }
0x2f5a   :  { %v7392_v5 = vmul.f32 %v7388_v49, %v12226_v26  ;;  %v7637_v8 = vmul.f32 %v7388_v49, %v12230_v28  ;;  %v10638_v53 = vpop.f32.mrb[118].mxu0 }
0x2f5b   :  { %v7379_v62 = vpop.f32.mrb[119].mxu0  ;;  %v7391_v52 = vmul.f32 %v13407_v18, %v10638_v53 }
0x2f5c   :  { %7641 = vxpose.xlu0.b32.start [1/4] (short) (narrow) %v7637_v8, 32  ;;  %7396 = vxpose.xlu1.b32.start [1/4] (short) (narrow) %v7392_v5, 32  ;;  %v7390_v3 = vmul.f32 %v13403_v9, %v7379_v62  ;;  %v11644_v5 = vpop.eup %11643  ;;  %v7199_v62 = vmul.f32 %v11642_v0, %v13437_v20  ;;  %v9087_v20 = vld [vmem:[%s13713_s13 + $0x68] sm:$0xff] }
0x2f5d   :  { %v7395_v13 = vmul.f32 %v7391_v52, %v12236_v37  ;;  %v7640_v32 = vmul.f32 %v7391_v52, %v12238_v39  ;;  %v9089_v52 = vld [vmem:[%s13713_s13 + $0x78] sm:$0xff] }
0x2f5e   :  { %v7394_v61 = vmul.f32 %v7390_v3, %v12228_v27  ;;  %v7639_v23 = vmul.f32 %v7390_v3, %v12234_v36  ;;  %v7200_v3 = vmul.f32 %v11644_v5, %v13445_v41  ;;  %v11375_v41 = vpack.c.bf16 %v9087_v20, %v9086_v51 }
0x2f60   :  { %7642 = vxpose.xlu0.b32.cont [2/4] (short) (narrow) %v7638_v57, 32  ;;  %7397 = vxpose.xlu1.b32.cont [2/4] (short) (narrow) %v7393_v6, 32 }
0x2f64   :  { %7643 = vxpose.xlu0.b32.cont [3/4] (short) (narrow) %v7639_v23, 32  ;;  %7398 = vxpose.xlu1.b32.cont [3/4] (short) (narrow) %v7394_v61, 32 }
0x2f68   :  { %7644 = vxpose.xlu0.b32.end [4/4] (short) (narrow) %v7640_v32, 32  ;;  %7399 = vxpose.xlu1.b32.end [4/4] (short) (narrow) %v7395_v13, 32 }
0x2fdc   :  { %v7412_v4 = vpop.trf.xlu1  ;;  %v7657_v42 = vpop.trf.xlu0 }
0x2fdd   :  { %10647 = vmatprep.mubr.msk.f32.mxu1 %vm1073_vm14, %v7412_v4 }
0x2fe0   :  { %v7413_v9 = vpop.trf.xlu1  ;;  %v7658_v18 = vpop.trf.xlu0 }
0x2fe1   :  { %10648 = vmatmul.mubr.msk.f32.vlgmr.msra.gmra.mrb[120].mxu1 %vm1073_vm14, %v7413_v9 }
0x2fe2   :  { %11360 = vmatpush3.bf16.msra.mxu1 %v13383_v55 }
0x2fe3   :  { %11363 = vmatprep.subr.msk.bf16.mxu1 %vm12214_vm13, %v13390_v63 }
0x2fe4   :  { %v7414_v1 = vpop.trf.xlu1  ;;  %v7659_v33 = vpop.trf.xlu0 }
0x2fe5   :  { %10650 = vmatprep.mubr.msk.f32.mxu1 %vm1073_vm14, %v7414_v1 }
0x2fe6   :  { %11366 = vmatpush3.bf16.msk.msra.mxu1 %vm12214_vm13, %v13390_v63 }
0x2fe7   :  { %11376 = vmatprep.subr.bf16.mxu1 %v11375_v41 }
0x2fe8   :  { %v7415_v30 = vpop.trf.xlu1  ;;  %v7660_v55 = vpop.trf.xlu0 }
0x2fe9   :  { %10651 = vmatmul.mubr.msk.f32.gmra.mrb[122].mxu1 %vm1073_vm14, %v7415_v30 }
0x2fea   :  { %10675 = vmatprep.mubr.msk.f32.mxu1 %vm1073_vm14, %v7657_v42 }
0x2fed   :  { %10676 = vmatmul.mubr.msk.f32.vlgmr.msra.gmra.mrb[124].mxu1 %vm1073_vm14, %v7658_v18 }
0x2fee   :  { %10678 = vmatprep.mubr.msk.f32.mxu1 %vm1073_vm14, %v7659_v33  ;;  %11378 = vmatpush3.bf16.msra.mxu1 %v11375_v41 }
0x2ff1   :  { %10679 = vmatmul.mubr.msk.f32.gmra.mrb[126].mxu1 %vm1073_vm14, %v7660_v55 }
0x30b4   :  { %v10649_v59 = vpop.f32.mrb[120].mxu1 }
0x30b5   :  { %v7529_v11 = vmul.f32 %v11686_v19, %v10649_v59  ;;  %v7509_v63 = vpop.f32.mrb[121].mxu1 }
0x30b6   :  { %v7528_v16 = vmul.f32 %v11687_v46, %v7509_v63 }
0x30b8   :  { %v11349_v47 = vpack.c.bf16 %v7529_v11, %v7528_v16 }
0x30ba   :  { %11350 = vmatprep.subr.bf16.mxu0 %v11349_v47 }
0x30bb   :  { %11352 = vmatpush3.bf16.msra.mxu0 %v11349_v47 }
0x30bc   :  { %v10652_v48 = vpop.f32.mrb[122].mxu1 }
0x30bd   :  { %v7531_v12 = vmul.f32 %v11688_v10, %v10652_v48  ;;  %v7519_v35 = vpop.f32.mrb[123].mxu1 }
0x30be   :  { %v7530_v43 = vmul.f32 %v11689_v45, %v7519_v35 }
0x30c0   :  { %v11353_v56 = vpack.c.bf16 %v7531_v12, %v7530_v43  ;;  %v10677_v25 = vpop.f32.mrb[124].mxu1 }
0x30c1   :  { %v7771_v44 = vmul.f32 %v11686_v19, %v10677_v25  ;;  %v7751_v21 = vpop.f32.mrb[125].mxu1 }
0x30c2   :  { %v7770_v58 = vmul.f32 %v11687_v46, %v7751_v21  ;;  %11354 = vmatprep.subr.bf16.mxu0 %v11353_v56 }
0x30c3   :  { %11356 = vmatpush3.bf16.msra.mxu0 %v11353_v56 }
0x30c4   :  { %v11367_v49 = vpack.c.bf16 %v7771_v44, %v7770_v58  ;;  %v10680_v17 = vpop.f32.mrb[126].mxu1 }
0x30c5   :  { %v7773_v8 = vmul.f32 %v11688_v10, %v10680_v17  ;;  %v7761_v53 = vpop.f32.mrb[127].mxu1 }
0x30c6   :  { %v7772_v6 = vmul.f32 %v11689_v45, %v7761_v53  ;;  %10662 = vmatmul.mubr.msk.f32.vlgmr.msra.gmra.mrb[120].mxu0 %vm356_vm8, %v7198_v54  ;;  %11368 = vmatprep.subr.bf16.mxu0 %v11367_v49 }
0x30c7   :  { %10664 = vmatprep.mubr.msk.f32.mxu0 %vm356_vm8, %v7199_v62  ;;  %11370 = vmatpush3.bf16.msra.mxu0 %v11367_v49 }
0x30c8   :  { %v11371_v57 = vpack.c.bf16 %v7773_v8, %v7772_v6 }
0x30ca   :  { %10665 = vmatmul.mubr.msk.f32.gmra.mrb[122].mxu0 %vm356_vm8, %v7200_v3  ;;  %11372 = vmatprep.subr.bf16.mxu0 %v11371_v57 }
0x30cb   :  { %11374 = vmatpush3.bf16.msra.mxu0 %v11371_v57  ;;  %10689 = vmatprep.mubr.msk.f32.mxu0 %vm356_vm8, %v13463_v50  ;;  %v9088_v50 = vld [vmem:[%s13713_s13 + $0x70] sm:$0xff] }
0x30cc   :  { %11383 = vmatprep.subr.bf16.mxu0 %v11715_v14  ;;  %v11379_v61 = vpack.c.bf16 %v9089_v52, %v9088_v50 }
0x30ce   :  { %10690 = vmatmul.mubr.msk.f32.vlgmr.msra.gmra.mrb[124].mxu0 %vm356_vm8, %v7198_v54  ;;  %11380 = vmatprep.subr.bf16.mxu1 %v11379_v61 }
0x30cf   :  { %10692 = vmatprep.mubr.msk.f32.mxu0 %vm356_vm8, %v7199_v62  ;;  %11384 = vmatpush3.bf16.msra.mxu0 %v11715_v14 }
0x30d0   :  { %11385 = vmatprep.subr.bf16.mxu0 %v11715_v14  ;;  %11382 = vmatpush3.bf16.msra.mxu1 %v11379_v61 }
0x30d1   :  { %11387 = vmatprep.subr.bf16.mxu1 %v11715_v14 }
0x30d2   :  { %10693 = vmatmul.mubr.msk.f32.gmra.mrb[126].mxu0 %vm356_vm8, %v7200_v3 }
0x30d3   :  { %11386 = vmatpush3.bf16.msra.mxu0 %v11715_v14 }
0x3199   :  { %v10663_v23 = vpop.f32.mrb[120].mxu0 }
0x319a   :  { %v7610_v13 = vpop.f32.mrb[121].mxu0  ;;  %v7630_v9 = vmul.f32 %v10663_v23, %v12232_v29 }
0x319b   :  { %v7629_v30 = vmul.f32 %v7610_v13, %v12226_v26 }
0x319d   :  { %v10666_v32 = vpop.f32.mrb[122].mxu0 }
0x319e   :  { %v7620_v4 = vpop.f32.mrb[123].mxu0  ;;  %v7632_v11 = vmul.f32 %v10666_v32, %v12236_v37 }
0x319f   :  { %v7631_v16 = vmul.f32 %v7620_v4, %v12228_v27 }
0x31a1   :  { %v10691_v42 = vpop.f32.mrb[124].mxu0 }
0x31a2   :  { %v7860_v18 = vmul.f32 %v10691_v42, %v12240_v40  ;;  %v7840_v1 = vpop.f32.mrb[125].mxu0 }
0x31a3   :  { %v7859_v33 = vmul.f32 %v7840_v1, %v12230_v28 }
0x31a4   :  { %v7864_v55 = vadd.f32 %v7860_v18, %v7630_v9  ;;  %v9108_v9 = vld [vmem:[%s13717_s17 + $0x60] sm:$0xff]  ;;  %v9109_v18 = vld [vmem:[%s13717_s17 + $0x68] sm:$0xff] }
0x31a5   :  { %v7863_v59 = vadd.f32 %v7859_v33, %v7629_v30  ;;  %v10694_v19 = vpop.f32.mrb[126].mxu0  ;;  %v11391_v30 = vpack.c.bf16 %v9109_v18, %v9108_v9 }
0x31a6   :  { %v7862_v63 = vmul.f32 %v10694_v19, %v12238_v39  ;;  %v7850_v46 = vpop.f32.mrb[127].mxu0 }
0x31a7   :  { %v7861_v47 = vmul.f32 %v7850_v46, %v12234_v36  ;;  %10703 = vmatprep.mubr.msk.f32.mxu1 %vm356_vm8, %v7863_v59  ;;  %v9095_v36 = vld [vmem:[%s13714_s14 + $0x3] ss:$0 sm:$0xff]  ;;  %11392 = vmatprep.subr.bf16.mxu0 %v11391_v30  ;;  %v9111_v59 = vld [vmem:[%s13717_s17 + $0x78] sm:$0xff] }
0x31a8   :  { %v7866_v29 = vadd.f32 %v7862_v63, %v7632_v11  ;;  %10704 = vmatmul.mubr.msk.f32.vlgmr.msra.gmra.mrb[128].mxu1 %vm356_vm8, %v7864_v55  ;;  %v9110_v55 = vld [vmem:[%s13717_s17 + $0x70] sm:$0xff]  ;;  %v9106_v46 = vld [vmem:[%s13715_s15 + $0x3] ss:$0 sm:$0xff] }
0x31a9   :  { %v7865_v26 = vadd.f32 %v7861_v47, %v7631_v16  ;;  %11388 = vmatpush3.bf16.msra.mxu1 %v11715_v14  ;;  %v11395_v19 = vpack.c.bf16 %v9111_v59, %v9110_v55 }
0x31aa   :  { %11389 = vmatprep.subr.bf16.mxu1 %v11715_v14 }
0x31ab   :  { %10706 = vmatprep.mubr.msk.f32.mxu1 %vm356_vm8, %v7865_v26 }
0x31ac   :  { %10707 = vmatmul.mubr.msk.f32.gmra.mrb[130].mxu1 %vm356_vm8, %v7866_v29 }
0x31ad   :  { %11390 = vmatpush3.bf16.msra.mxu1 %v11715_v14 }
0x327b   :  { %v10705_v28 = vpop.f32.mrb[128].mxu1 }
0x327c   :  { %v7970_v27 = vadd.f32 %v10705_v28, %v13269_v31  ;;  %v7950_v37 = vpop.f32.mrb[129].mxu1  ;;  %v9107_v28 = vld [vmem:[%s13716_s16 + $0x3] ss:$0 sm:$0xff] }
0x327d   :  { %v7969_v39 = vadd.f32 %v7950_v37, %v13267_v15 }
0x327e   :  { %v13556_v10 = vadd.f32 %v9095_v36, %v7970_v27 }
0x327f   :  { %v13554_v40 = vadd.f32 %v9095_v36, %v7969_v39  ;;  %v10708_v48 = vpop.f32.mrb[130].mxu1 }
0x3280   :  { %v7972_v12 = vadd.f32 %v10708_v48, %v13281_v2  ;;  %v7960_v35 = vpop.f32.mrb[131].mxu1 }
0x3281   :  { %v7971_v14 = vadd.f32 %v7960_v35, %v13279_v24  ;;  %10717 = vmatprep.mubr.msk.f32.mxu0 %vm356_vm8, %v13554_v40 }
0x3282   :  { %10718 = vmatmul.mubr.msk.f32.vlgmr.msra.gmra.mrb[128].mxu0 %vm356_vm8, %v13556_v10  ;;  %v13566_v45 = vadd.f32 %v9095_v36, %v7972_v12 }
0x3283   :  { %v13564_v31 = vadd.f32 %v9095_v36, %v7971_v14  ;;  %11394 = vmatpush3.bf16.msra.mxu0 %v11391_v30 }
0x3284   :  { %11396 = vmatprep.subr.bf16.mxu0 %v11395_v19 }
0x3285   :  { %10720 = vmatprep.mubr.msk.f32.mxu0 %vm356_vm8, %v13564_v31 }
0x3286   :  { %10721 = vmatmul.mubr.msk.f32.gmra.mrb[130].mxu0 %vm356_vm8, %v13566_v45 }
0x3287   :  { %11398 = vmatpush3.bf16.msra.mxu0 %v11395_v19 }
0x3288   :  { %11431 = vmatprep.subr.bf16.mxu0 %v11717_v34 }
0x3355   :  { %v10719_v15 = vpop.f32.mrb[128].mxu0 }
0x3356   :  { %v8087_v2 = vmul.f32 0.03125, %v10719_v15  ;;  %v8067_v43 = vpop.f32.mrb[129].mxu0 }
0x3357   :  { %v8086_v24 = vmul.f32 0.03125, %v8067_v43 }
0x3358   :  { %8097 = vperm.xlu1 %11452, %v8087_v2  }
0x3359   :  { %8092 = vperm.xlu0 %11451, %v8086_v24   ;;  %v10722_v56 = vpop.f32.mrb[130].mxu0 }
0x335a   :  { %v8077_v25 = vpop.f32.mrb[131].mxu0  ;;  %v8089_v44 = vmul.f32 0.03125, %v10722_v56  ;;  %v9118_v56 = vld [vmem:[%s13719_s19 + $0x180] sm:$0xff] }
0x335b   :  { %v8088_v38 = vmul.f32 0.03125, %v8077_v25  ;;  %v9119_v25 = vld [vmem:[%s13719_s19 + $0x188] sm:$0xff] }
0x335d   :  { %8102 = vperm.xlu1 %11452, %v8088_v38   ;;  %v11399_v38 = vpack.c.bf16 %v9119_v25, %v9118_v56 }
0x335f   :  { %11400 = vmatprep.subr.bf16.mxu1 %v11399_v38 }
0x3361   :  { %8107 = vperm.xlu1 %11452, %v8089_v44   ;;  %v9120_v44 = vld [vmem:[%s13719_s19 + $0x190] sm:$0xff] }
0x33d7   :  { %v8098_v21 = vpop.permute.xlu1 %8097 }
0x33d8   :  { %v8111_v0 = vsub.f32 %v13556_v10, %v8098_v21  ;;  %v8093_v58 = vpop.permute.xlu0 %8092  ;;  %v9121_v21 = vld [vmem:[%s13719_s19 + $0x198] sm:$0xff] }
0x33d9   :  { %v8110_v54 = vsub.f32 %v13554_v40, %v8093_v58  ;;  %v9122_v58 = vld [vmem:[%s13719_s19 + $0x1a0] sm:$0xff] }
0x33da   :  { %v8115_v17 = vmul.f32 %v8111_v0, %v8111_v0 }
0x33db   :  { %v8114_v49 = vmul.f32 %v8110_v54, %v8110_v54 }
0x33dc   :  { %v8103_v5 = vpop.permute.xlu1 %8102 }
0x33dd   :  { %v8112_v8 = vsub.f32 %v13564_v31, %v8103_v5  ;;  %10731 = vmatprep.mubr.msk.f32.mxu1 %vm356_vm8, %v8114_v49  ;;  %v9125_v5 = vld [vmem:[%s13719_s19 + $0x1b8] sm:$0xff] }
0x33de   :  { %10732 = vmatmul.mubr.msk.f32.vlgmr.msra.gmra.mrb[132].mxu1 %vm356_vm8, %v8115_v17  ;;  %v9124_v17 = vld [vmem:[%s13719_s19 + $0x1b0] sm:$0xff] }
0x33df   :  { %v8116_v53 = vmul.f32 %v8112_v8, %v8112_v8  ;;  %11402 = vmatpush3.bf16.msra.mxu1 %v11399_v38 }
0x33e0   :  { %v8108_v62 = vpop.permute.xlu1 %8107 }
0x33e1   :  { %v8113_v6 = vsub.f32 %v13566_v45, %v8108_v62  ;;  %10734 = vmatprep.mubr.msk.f32.mxu1 %vm356_vm8, %v8116_v53  ;;  %v9126_v53 = vld [vmem:[%s13719_s19 + $0x1c0] sm:$0xff]  ;;  %v9127_v62 = vld [vmem:[%s13719_s19 + $0x1c8] sm:$0xff] }
0x33e3   :  { %v8117_v57 = vmul.f32 %v8113_v6, %v8113_v6 }
0x33e5   :  { %10735 = vmatmul.mubr.msk.f32.gmra.mrb[134].mxu1 %vm356_vm8, %v8117_v57  ;;  %v9128_v57 = vld [vmem:[%s13719_s19 + $0x1d0] sm:$0xff] }
0x34b1   :  { %v10733_v3 = vpop.f32.mrb[132].mxu1 }
0x34b2   :  { %v8216_v51 = vmul.f32 0.03125, %v10733_v3  ;;  %v8196_v20 = vpop.f32.mrb[133].mxu1  ;;  %v9129_v3 = vld [vmem:[%s13719_s19 + $0x1d8] sm:$0xff] }
0x34b3   :  { %v8215_v41 = vmul.f32 0.03125, %v8196_v20  ;;  %v9130_v20 = vld [vmem:[%s13719_s19 + $0x1e0] sm:$0xff] }
0x34b4   :  { %v8220_v50 = vadd.f32 1e-05, %v8216_v51  ;;  %v11419_v51 = vpack.c.bf16 %v9129_v3, %v9128_v57 }
0x34b5   :  { %v8219_v52 = vadd.f32 1e-05, %v8215_v41  ;;  %v9131_v41 = vld [vmem:[%s13719_s19 + $0x1e8] sm:$0xff] }
0x34b6   :  { %11645 = vrsqrt.f32 %v8220_v50  ;;  %v11423_v50 = vpack.c.bf16 %v9131_v41, %v9130_v20 }
0x34b7   :  { %11647 = vrsqrt.f32 %v8219_v52  ;;  %v9132_v52 = vld [vmem:[%s13719_s19 + $0x1f0] sm:$0xff] }
0x34b8   :  { %v10736_v61 = vpop.f32.mrb[134].mxu1 }
0x34b9   :  { %v8218_v23 = vmul.f32 0.03125, %v10736_v61  ;;  %v8206_v13 = vpop.f32.mrb[135].mxu1  ;;  %v9133_v61 = vld [vmem:[%s13719_s19 + $0x1f8] sm:$0xff] }
0x34ba   :  { %v8217_v32 = vmul.f32 0.03125, %v8206_v13  ;;  %v9113_v13 = vld [vmem:[%s13718_s18 + $0x3] ss:$0 sm:$0xff] }
0x34bb   :  { %v8222_v4 = vadd.f32 1e-05, %v8218_v23  ;;  %v11427_v23 = vpack.c.bf16 %v9133_v61, %v9132_v52 }
0x34bc   :  { %v8221_v42 = vadd.f32 1e-05, %v8217_v32 }
0x34bd   :  { %11649 = vrsqrt.f32 %v8222_v4 }
0x34be   :  { %11651 = vrsqrt.f32 %v8221_v42 }
0x34c0   :  { %v11646_v1 = vpop.eup %11645 }
0x34c1   :  { %v11648_v33 = vpop.eup %11647  ;;  %8234 = vperm.xlu1 %11452, %v11646_v1  }
0x34c2   :  { %8229 = vperm.xlu0 %11451, %v11648_v33  }
0x34c7   :  { %v11650_v11 = vpop.eup %11649 }
0x34c8   :  { %v11652_v63 = vpop.eup %11651  ;;  %8244 = vperm.xlu1 %11452, %v11650_v11  }
0x34c9   :  { %8239 = vperm.xlu0 %11451, %v11652_v63  }
0x3540   :  { %v8235_v16 = vpop.permute.xlu1 %8234 }
0x3541   :  { %v8248_v47 = vmul.f32 %v8235_v16, %v8111_v0  ;;  %v8230_v29 = vpop.permute.xlu0 %8229  ;;  %v11403_v0 = vpack.c.bf16 %v9121_v21, %v9120_v44 }
0x3542   :  { %v8247_v26 = vmul.f32 %v8230_v29, %v8110_v54  ;;  %v9123_v54 = vld [vmem:[%s13719_s19 + $0x1a8] sm:$0xff] }
0x3543   :  { %v8258_v27 = vmul.f32 %v9106_v46, %v8248_v47  ;;  %11404 = vmatprep.subr.bf16.mxu1 %v11403_v0  ;;  %v11407_v49 = vpack.c.bf16 %v9123_v54, %v9122_v58 }
0x3544   :  { %v8257_v36 = vmul.f32 %v9106_v46, %v8247_v26  ;;  %11406 = vmatpush3.bf16.msra.mxu1 %v11403_v0 }
0x3545   :  { %v8268_v39 = vadd.f32 %v9107_v28, %v8258_v27  ;;  %11408 = vmatprep.subr.bf16.mxu1 %v11407_v49 }
0x3546   :  { %v8267_v37 = vadd.f32 %v9107_v28, %v8257_v36 }
0x3547   :  { %v8245_v48 = vpop.permute.xlu1 %8244 }
0x3548   :  { %v8250_v12 = vmul.f32 %v8245_v48, %v8113_v6  ;;  %10745 = vmatprep.mubr.msk.f32.mxu0 %vm356_vm8, %v8267_v37  ;;  %v8240_v35 = vpop.permute.xlu0 %8239  ;;  %11410 = vmatpush3.bf16.msra.mxu1 %v11407_v49  ;;  %v11415_v6 = vpack.c.bf16 %v9127_v62, %v9126_v53 }
0x3549   :  { %v8249_v14 = vmul.f32 %v8240_v35, %v8112_v8  ;;  %10746 = vmatmul.mubr.msk.f32.vlgmr.msra.gmra.mrb[132].mxu0 %vm356_vm8, %v8268_v39  ;;  %v11411_v8 = vpack.c.bf16 %v9125_v5, %v9124_v17 }
0x354a   :  { %v8260_v15 = vmul.f32 %v9106_v46, %v8250_v12 }
0x354b   :  { %v8259_v2 = vmul.f32 %v9106_v46, %v8249_v14  ;;  %11412 = vmatprep.subr.bf16.mxu1 %v11411_v8 }
0x354c   :  { %v8270_v24 = vadd.f32 %v9107_v28, %v8260_v15  ;;  %11414 = vmatpush3.bf16.msra.mxu1 %v11411_v8 }
0x354d   :  { %v8269_v43 = vadd.f32 %v9107_v28, %v8259_v2  ;;  %11416 = vmatprep.subr.bf16.mxu1 %v11415_v6 }
0x354f   :  { %10748 = vmatprep.mubr.msk.f32.mxu0 %vm356_vm8, %v8269_v43 }
0x3550   :  { %10749 = vmatmul.mubr.msk.f32.gmra.mrb[134].mxu0 %vm356_vm8, %v8270_v24  ;;  %11418 = vmatpush3.bf16.msra.mxu1 %v11415_v6  ;;  %v9135_v6 = vld [vmem:[%s13720_s20 + $0x3] ss:$0 sm:$0xff] }
0x3551   :  { %10797 = vmatprep.mubr.msk.f32.mxu0 %vm11718_vm9, %v11714_v7  ;;  %11420 = vmatprep.subr.bf16.mxu1 %v11419_v51 }
0x3554   :  { %11422 = vmatpush3.bf16.msra.mxu1 %v11419_v51 }
0x3555   :  { %11424 = vmatprep.subr.bf16.mxu1 %v11423_v50 }
0x3558   :  { %11426 = vmatpush3.bf16.msra.mxu1 %v11423_v50 }
0x3559   :  { %11428 = vmatprep.subr.bf16.mxu1 %v11427_v23 }
0x355c   :  { %11430 = vmatpush3.bf16.msra.mxu1 %v11427_v23 }
0x361c   :  { %v10747_v32 = vpop.f32.mrb[132].mxu0 }
0x361d   :  { %v8368_v4 = vadd.f32 %v10747_v32, %v9113_v13  ;;  %v8362_v42 = vpop.f32.mrb[133].mxu0 }
0x361e   :  { %v8363_v9 = vadd.f32 %v9113_v13, %v8362_v42 }
0x361f   :  { %v8382_v18 = vmul.f32 %v8368_v4, %v8368_v4 }
0x3620   :  { %v8381_v1 = vmul.f32 %v8363_v9, %v8363_v9 }
0x3621   :  { %v8386_v30 = vmul.f32 %v8382_v18, %v8368_v4 }
0x3622   :  { %v8385_v33 = vmul.f32 %v8381_v1, %v8363_v9 }
0x3623   :  { %v8390_v55 = vmul.f32 0.044715, %v8386_v30  ;;  %v10750_v59 = vpop.f32.mrb[134].mxu0 }
0x3624   :  { %v8389_v19 = vmul.f32 0.044715, %v8385_v33  ;;  %v8378_v11 = vadd.f32 %v10750_v59, %v9113_v13  ;;  %v8372_v63 = vpop.f32.mrb[135].mxu0  ;;  %v9139_v59 = vld [vmem:[%s13722_s22] ss:$0 sm:$0xff] }
0x3625   :  { %v8394_v46 = vadd.f32 %v8390_v55, %v8368_v4  ;;  %v8373_v16 = vadd.f32 %v9113_v13, %v8372_v63 }
0x3626   :  { %v8393_v47 = vadd.f32 %v8389_v19, %v8363_v9  ;;  %v8384_v29 = vmul.f32 %v8378_v11, %v8378_v11 }
0x3627   :  { %v8398_v26 = vmul.f32 0.7978846, %v8394_v46  ;;  %v8383_v28 = vmul.f32 %v8373_v16, %v8373_v16 }
0x3628   :  { %v8397_v27 = vmul.f32 0.7978846, %v8393_v47  ;;  %v8388_v36 = vmul.f32 %v8384_v29, %v8378_v11 }
0x3629   :  { %11653 = vtanh.f32 %v8398_v26  ;;  %v8387_v37 = vmul.f32 %v8383_v28, %v8373_v16 }
0x362a   :  { %v8392_v39 = vmul.f32 0.044715, %v8388_v36  ;;  %11655 = vtanh.f32 %v8397_v27 }
0x362b   :  { %v8391_v48 = vmul.f32 0.044715, %v8387_v37 }
0x362c   :  { %v8396_v12 = vadd.f32 %v8392_v39, %v8378_v11 }
0x362d   :  { %v8395_v35 = vadd.f32 %v8391_v48, %v8373_v16 }
0x362e   :  { %v8400_v14 = vmul.f32 0.7978846, %v8396_v12 }
0x362f   :  { %v8399_v15 = vmul.f32 0.7978846, %v8395_v35 }
0x3630   :  { %11657 = vtanh.f32 %v8400_v14 }
0x3631   :  { %11659 = vtanh.f32 %v8399_v15 }
0x3633   :  { %v11654_v2 = vpop.eup %11653 }
0x3634   :  { %v11656_v43 = vpop.eup %11655  ;;  %v8406_v24 = vadd.f32 1.0, %v11654_v2 }
0x3635   :  { %v8405_v56 = vadd.f32 1.0, %v11656_v43 }
0x3636   :  { %v8410_v25 = vmul.f32 0.5, %v8406_v24 }
0x3637   :  { %v8409_v38 = vmul.f32 0.5, %v8405_v56 }
0x3638   :  { %v8414_v0 = vmul.f32 %v8410_v25, %v8368_v4 }
0x3639   :  { %v8413_v44 = vmul.f32 %v8409_v38, %v8363_v9 }
0x363a   :  { %v11658_v21 = vpop.eup %11657 }
0x363b   :  { %v11660_v58 = vpop.eup %11659  ;;  %10783 = vmatprep.mubr.f32.mxu1 %v8413_v44  ;;  %v8408_v54 = vadd.f32 1.0, %v11658_v21 }
0x363c   :  { %10784 = vmatmul.mubr.f32.vlgmr.msra.gmra.mrb[136].mxu1 %v8414_v0  ;;  %v8407_v49 = vadd.f32 1.0, %v11660_v58 }
0x363d   :  { %v8412_v17 = vmul.f32 0.5, %v8408_v54 }
0x363e   :  { %v8411_v5 = vmul.f32 0.5, %v8407_v49 }
0x363f   :  { %v8416_v53 = vmul.f32 %v8412_v17, %v8378_v11 }
0x3640   :  { %v8415_v8 = vmul.f32 %v8411_v5, %v8373_v16 }
0x3642   :  { %10786 = vmatprep.mubr.f32.mxu1 %v8415_v8 }
0x3643   :  { %10787 = vmatmul.mubr.f32.gmra.mrb[138].mxu1 %v8416_v53 }
0x370f   :  { %v10785_v62 = vpop.f32.mrb[136].mxu1 }
0x3710   :  { %v8520_v57 = vadd.f32 %v10785_v62, %v13556_v10  ;;  %v8500_v3 = vpop.f32.mrb[137].mxu1  ;;  %v8616_v10 = vld [vmem:[%s13721_s21 + $0x8] sm:$0xff] }
0x3711   :  { %v8519_v51 = vadd.f32 %v8500_v3, %v13554_v40  ;;  %v8615_v40 = vld [vmem:[%s13721_s21] sm:$0xff] }
0x3712   :  { %v8532_v20 = vadd.f32 %v9135_v6, %v8520_v57 }
0x3713   :  { %v8531_v41 = vadd.f32 %v9135_v6, %v8519_v51 }
0x3715   :  { %v11432_v50 = vpack.c.bf16 %v8532_v20, %v8531_v41 }
0x3716   :  { %v10788_v52 = vpop.f32.mrb[138].mxu1 }
0x3717   :  { %v8522_v61 = vadd.f32 %v10788_v52, %v13566_v45  ;;  %v8510_v23 = vpop.f32.mrb[139].mxu1  ;;  %11433 = vmatpush3.bf16.msra.mxu0 %v11432_v50 }
0x3718   :  { %v8521_v13 = vadd.f32 %v8510_v23, %v13564_v31  ;;  %11434 = vmatprep.subr.bf16.mxu0 %v11717_v34  ;;  %v11439_v31 = vpack.c.bf16 %v8616_v10, %v8615_v40 }
0x3719   :  { %v8534_v32 = vadd.f32 %v9135_v6, %v8522_v61 }
0x371a   :  { %v8533_v4 = vadd.f32 %v9135_v6, %v8521_v13 }
0x371c   :  { %v11435_v42 = vpack.c.bf16 %v8534_v32, %v8533_v4 }
0x371e   :  { %11437 = vmatpush3.bf16.msk.msra.mxu0 %vm12214_vm13, %v11435_v42 }
0x371f   :  { %11438 = vmatprep.subr.bf16.mxu0 %v11717_v34 }
0x3721   :  { %10798 = vmatmul.mubr.msk.f32.vlgmr.msra.gmra.mrb[136].mxu0 %vm1073_vm14, %v13417_v60 }
0x3722   :  { %10808 = vmatprep.mubr.msk.f32.mxu0 %vm11718_vm9, %v11714_v7  ;;  %11440 = vmatpush3.bf16.msra.mxu0 %v11439_v31  ;;  %v8618_v7 = vld [vmem:[%s13721_s21 + $0x18] sm:$0xff]  ;;  %s8707_s21 = sshll.u32 %s11720_s12, 4  ;;  %s8708_s21 = int_to_ptr.vmem [resolvable:$true] %s8707_s21 }
0x3723   :  { %11441 = vmatprep.subr.bf16.mxu0 %v11717_v34  ;;  %v11442_v60 = vpack.c.bf16 %v8618_v7, %v8617_v22  ;;  %s11690_s7 = scalar_lea.vmem %s8708_s21, 32  ;;  %p11695_p1 = scmp.lt.s32.totalorder %s8708_s21, %s8708_s21 }
0x3724   :  { %p11691_p0 = scmp.ne.s32.totalorder %s8708_s21, %s11690_s7  ;;  %p11696_p2 = scmp.lt.s32.totalorder %s11690_s7, %s11690_s7 }
0x3726   :  { %11443 = vmatpush3.bf16.msra.mxu0 %v11442_v60  ;;  %p11697_p3 = por %p11696_p2, %p11695_p1 }
0x3728   :  { %p11698_p4 = pnand %p11697_p3, %p11691_p0 }
0x37f4   :  { %v8604_v45 = vpop.f32.mrb[136].mxu0 }
0x37f5   :  { %v8608_v9 = vmul.f32 0.06666667, %v8604_v45  ;;  %v10799_v18 = vpop.f32.mrb[137].mxu0 }
0x37f7   :  { %v8610_v1 = vmin.f32 %v8608_v9, 0.0  ;;  %vm8609_vm1 = vcmp.gt.f32.partialorder %v8608_v9, 0.0 }
0x37f9   :  { %v8611_v30 = vmul.f32 1.442695, %v8610_v1 }
0x37fb   :  { %11661 = vpow2.f32 %v8611_v30 }
0x3805   :  { %v11662_v33 = vpop.eup %11661 }
0x3806   :  { %v9138_v55 = vadd.f32 -1.0, %v11662_v33 }
0x3808   :  { %v8614_v34 = vsel %vm8609_vm1, %v8608_v9, %v9138_v55 }
0x3809   :  { %10809 = vmatmul.mubr.msk.f32.vlgmr.msra.gmra.mrb[138].mxu0 %vm356_vm8, %v8614_v34 }
0x38dc   :  { %v8695_v19 = vpop.f32.mrb[138].mxu0 }
0x38dd   :  { %v8696_v11 = vadd.f32 %v9139_v59, %v8695_v19  ;;  %v10810_v63 = vpop.f32.mrb[139].mxu0 }
0x38df   :  { %8700 = vst.msk [vmem:[#allocation2] sm:$0x3] %vm8699_vm2, %v8696_v11 }
0x38e0   :  { %11701 = shalt.err (!%p11698_p4)
}
0x38e1   :  { %s11702_s24 = scalar_lea.hbm %s13723_s23, 32 }
0x38e2   :  { %p11703_p5 = scmp.ne.s32.totalorder %s13723_s23, %s11702_s24  ;;  %p11706_p6 = scmp.lt.u32.totalorder %s11702_s24, %s13723_s23 }
0x38e4   :  { %p11708_p7 = pnand %p11706_p6, %p11703_p5 }
0x38e6   :  { %11711 = shalt.err (!%p11708_p7)
}
0x38e7   :  { %8710 = dma.vmem_to_hbm [thread:$0]  %s8708_s21, 32, %s13723_s23, [#allocation3]  }
0x38e8   :  { %11712 = dma.done.wait [#allocation3], 32  }
0x38e9   :  { %11713 = vsyncadd [#allocation3], 4294967264 }
0x38ea   :  { %8714 = vsyncpa [#allocation3], 1 }

</bundles_post_ra>
